<compile_context>
chip_gen: v7x
topology: tpu7x:2x2x1
jax: 0.10.0
libtpu: 0.0.40
codegen_flags: <defaults>
</compile_context>

<pallas_src>
import jax
import jax.numpy as jnp
from jax import lax
from jax.experimental import pallas as pl
from jax.experimental.pallas import tpu as pltpu


# ----------------------------------------------------------------------------
# Fused kernel: (bn1+conv+bn2+relu) -> flatten -> linear1 -> relu -> linear2
#
# xp_ref  : (C, H+2, N, W+2)  zero-padded, channel/row-major conv input
# cw_ref  : (C*9,)            bn-folded conv taps (SMEM scalars)
# bias_ref: (H, 1, W)         position-dependent bias (bn1 shift thru conv + bn2)
# w1_ref  : (H, W, 2*out_c)   linear1 weight, pre-transposed & row-split
# b1_ref  : (1, 2*out_c)
# w2_ref  : (2*out_c, out_c)  linear2 weight, pre-transposed
# b2_ref  : (1, out_c)
# o_ref   : (N, out_c)
# ----------------------------------------------------------------------------
def value_fused_kernel(xp_ref, cw_ref, bias_ref, w1_ref, b1_ref, w2_ref,
                       b2_ref, o_ref):
    C, Hp, N, Wp = xp_ref.shape
    H, W = Hp - 2, Wp - 2
    D1 = w1_ref.shape[2]                       # 2*out_c

    xp = xp_ref[...]                           # (C, H+2, N, W+2)

    # --- bn1-folded 3x3 conv (single output channel, padding handled by xp) --
    acc = jnp.zeros((H, N, W), jnp.float32)
    for c in range(C):
        xc = xp[c]                             # (H+2, N, W+2) leading-axis index
        for kw in range(3):                    # only 3 lane-axis slices / channel
            xs = xc[:, :, kw:kw + W]           # (H+2, N, W)
            for kh in range(3):                # leading-axis row picks: free
                w_tap = cw_ref[c * 9 + kh * 3 + kw]
                acc = acc + w_tap * xs[kh:kh + H]

    # bn2 + folded bn1-shift bias + relu
    y = jnp.maximum(acc + bias_ref[...], 0.0)  # (H, N, W)

    # --- flatten + linear1 fused: f @ W1^T == sum_h y[h] @ w1_r[h] -----------
    h1 = jnp.zeros((N, D1), jnp.float32)
    for hh in range(H):
        h1 = h1 + jnp.dot(y[hh], w1_ref[hh],
                          preferred_element_type=jnp.float32)
    h1 = jnp.maximum(h1 + b1_ref[...], 0.0)

    # --- linear2 (lane-dense (N, out_c) output) -------------------------------
    o_ref[...] = (jnp.dot(h1, w2_ref[...], preferred_element_type=jnp.float32)
                  + b2_ref[...])


# ----------------------------------------------------------------------------
# Wrapper: fold BN params, precompute bias map, lay out inputs, single call
# ----------------------------------------------------------------------------
def value_forward(x, params):
    N, C, H, W = x.shape
    out_c = H * W
    eps = 1e-5
    f32 = jnp.float32

    # fold bn1 / bn2 into scale+shift (inference mode)
    s1 = (params["bn1_gamma"] / jnp.sqrt(params["bn1_var"] + eps)).astype(f32)
    t1 = (params["bn1_beta"] - params["bn1_mean"] * s1).astype(f32)
    s2 = (params["bn2_gamma"] / jnp.sqrt(params["bn2_var"] + eps)).astype(f32)
    t2 = (params["bn2_beta"] - params["bn2_mean"] * s2).astype(f32)

    # fold bn1 scale and bn2 scale into the conv weights
    w = params["conv_w"][0].astype(f32)                  # (C, 3, 3)
    w_fold = w * s1[:, None, None] * s2
    cw_flat = w_fold.reshape(-1)                         # (C*9,) -> SMEM

    # position-dependent bias: conv(t1 * interior) * s2 + t2   (data-independent)
    interior = jnp.pad(jnp.ones((H, W), f32), ((1, 1), (1, 1)))   # (H+2, W+2)
    wsum = jnp.sum(w * t1[:, None, None], axis=0) * s2            # (3, 3)
    bias_map = jnp.zeros((H, W), f32)
    for kh in range(3):
        for kw in range(3):
            bias_map = bias_map + wsum[kh, kw] * interior[kh:kh + H, kw:kw + W]
    bias_map = bias_map + t2
    bias_hnw = bias_map[:, None, :]                      # (H, 1, W)

    # conv input as (C, H+2, N, W+2): W on lanes, N on sublanes; zero padding
    # (conv padding=1) and the NCHW->CHNW transpose are one-time tiny glue ops.
    x_t = jnp.transpose(x.astype(f32), (1, 2, 0, 3))     # (C, H, N, W)
    x_pad = jnp.pad(x_t, ((0, 0), (1, 1), (0, 0), (1, 1)))

    # MLP params: W1^T reshaped (H, W, 2*out_c) so the fused flatten order
    # (h*W + w) matches PyTorch's Flatten.
    w1_r = params["lin1_w"].T.reshape(H, W, 2 * out_c).astype(f32)
    b1 = params["lin1_b"].reshape(1, -1).astype(f32)
    w2t = params["lin2_w"].T.astype(f32)                 # (2*out_c, out_c)
    b2 = params["lin2_b"].reshape(1, -1).astype(f32)

    vmem = pl.BlockSpec(memory_space=pltpu.MemorySpace.VMEM)
    smem = pl.BlockSpec(memory_space=pltpu.MemorySpace.SMEM)

    return pl.pallas_call(
        value_fused_kernel,
        out_shape=jax.ShapeDtypeStruct((N, out_c), f32),
        in_specs=[vmem, smem, vmem, vmem, vmem, vmem, vmem],
        out_specs=vmem,
    )(x_pad, cw_flat, bias_hnw, w1_r, b1, w2t, b2)


# ----------------------------------------------------------------------------
# Pure-JAX reference (ground truth, HIGHEST precision)
# ----------------------------------------------------------------------------
def value_forward_ref(x, params):
    eps = 1e-5
    N, C, H, W = x.shape
    s1 = params["bn1_gamma"] / jnp.sqrt(params["bn1_var"] + eps)
    t1 = params["bn1_beta"] - params["bn1_mean"] * s1
    xn = x * s1[None, :, None, None] + t1[None, :, None, None]
    y = lax.conv_general_dilated(
        xn,
        params["conv_w"],
        window_strides=(1, 1),
        padding=((1, 1), (1, 1)),
        dimension_numbers=("NCHW", "OIHW", "NCHW"),
    )
    s2 = params["bn2_gamma"] / jnp.sqrt(params["bn2_var"] + eps)
    t2 = params["bn2_beta"] - params["bn2_mean"] * s2
    y = y * s2 + t2
    y = jnp.maximum(y, 0.0)
    f = y.reshape(N, -1)
    h = jnp.maximum(
        jnp.dot(f, params["lin1_w"].T, precision=lax.Precision.HIGHEST)
        + params["lin1_b"],
        0.0,
    )
    return (
        jnp.dot(h, params["lin2_w"].T, precision=lax.Precision.HIGHEST)
        + params["lin2_b"]
    )


# ----------------------------------------------------------------------------
# Deterministic parameter init + run
# ----------------------------------------------------------------------------
def make_params(key, in_c, out_c):
    ks = jax.random.split(key, 12)
    p = {}
    p["bn1_gamma"] = jax.random.uniform(ks[0], (in_c,), jnp.float32, 0.5, 1.5)
    p["bn1_beta"] = 0.1 * jax.random.normal(ks[1], (in_c,), jnp.float32)
    p["bn1_mean"] = 0.1 * jax.random.normal(ks[2], (in_c,), jnp.float32)
    p["bn1_var"] = jax.random.uniform(ks[3], (in_c,), jnp.float32, 0.5, 1.5)
    p["conv_w"] = (
        jax.random.normal(ks[4], (1, in_c, 3, 3), jnp.float32)
        / jnp.sqrt(in_c * 9.0)
    )
    p["bn2_gamma"] = jax.random.uniform(ks[5], (), jnp.float32, 0.5, 1.5)
    p["bn2_beta"] = 0.1 * jax.random.normal(ks[6], (), jnp.float32)
    p["bn2_mean"] = 0.1 * jax.random.normal(ks[7], (), jnp.float32)
    p["bn2_var"] = jax.random.uniform(ks[8], (), jnp.float32, 0.5, 1.5)
    p["lin1_w"] = jax.random.normal(
        ks[9], (2 * out_c, out_c), jnp.float32
    ) / jnp.sqrt(float(out_c))
    p["lin1_b"] = 0.01 * jax.random.normal(ks[10], (2 * out_c,), jnp.float32)
    p["lin2_w"] = jax.random.normal(
        ks[11], (out_c, 2 * out_c), jnp.float32
    ) / jnp.sqrt(float(2 * out_c))
    p["lin2_b"] = jnp.zeros((out_c,), jnp.float32)
    return p


if __name__ == "__main__":
    # batch=2, in_c=4, spatial 16x16 -> out_c = H*W = 256 (lane-dense MLP dims)
    N, C, H, W = 2, 4, 16, 16
    out_c = H * W

    key = jax.random.PRNGKey(0)
    k_x, k_p = jax.random.split(key)
    x = jax.random.normal(k_x, (N, C, H, W), jnp.float32)
    params = make_params(k_p, C, out_c)

    fwd = jax.jit(value_forward)
    out = jax.block_until_ready(fwd(x, params))

    ref = value_forward_ref(x, params)
    assert out.shape == (N, out_c), out.shape
    # Default (non-HIGHEST) MXU precision per the perf review -> modest tolerance
    # vs the f32 HIGHEST reference (expected max err ~1e-3 at these scales).
    if not jnp.allclose(out, ref, atol=2e-2, rtol=2e-2):
        raise AssertionError(
            f"mismatch vs reference, max abs err={jnp.max(jnp.abs(out - ref))}"
        )
    print("KERNEL_OK")
</pallas_src>

<mosaic_0001>
module attributes {stable_mosaic.version = 11 : i64} {
  func.func @value_fused_kernel(%arg0: memref<4x18x2x18xf32, #tpu.memory_space<vmem>>, %arg1: memref<36xf32, #tpu.memory_space<smem>>, %arg2: memref<16x1x16xf32, #tpu.memory_space<vmem>>, %arg3: memref<16x16x512xf32, #tpu.memory_space<vmem>>, %arg4: memref<1x512xf32, #tpu.memory_space<vmem>>, %arg5: memref<512x256xf32, #tpu.memory_space<vmem>>, %arg6: memref<1x256xf32, #tpu.memory_space<vmem>>, %arg7: memref<2x256xf32, #tpu.memory_space<vmem>>) attributes {dimension_semantics = [], scalar_prefetch = 0 : i64, scratch_operands = 0 : i64, tpu.core_type = #tpu.core_type<tc>} {
    %c0 = arith.constant 0 : index
    %c0_0 = arith.constant 0 : index
    %c0_1 = arith.constant 0 : index
    %c0_2 = arith.constant 0 : index
    %0 = vector.load %arg0[%c0, %c0_0, %c0_1, %c0_2] : memref<4x18x2x18xf32, #tpu.memory_space<vmem>>, vector<4x18x2x18xf32>
    %cst = arith.constant 0.000000e+00 : f32
    %1 = vector.broadcast %cst : f32 to vector<16x2x16xf32>
    %2 = vector.extract_strided_slice %0 {offsets = [0, 0, 0, 0], sizes = [1, 18, 2, 18], strides = [1, 1, 1, 1]} : vector<4x18x2x18xf32> to vector<1x18x2x18xf32>
    %3 = vector.shape_cast %2 : vector<1x18x2x18xf32> to vector<18x2x18xf32>
    %4 = vector.extract_strided_slice %3 {offsets = [0, 0, 0], sizes = [18, 2, 16], strides = [1, 1, 1]} : vector<18x2x18xf32> to vector<18x2x16xf32>
    %c0_3 = arith.constant 0 : index
    %5 = memref.load %arg1[%c0_3] : memref<36xf32, #tpu.memory_space<smem>>
    %6 = vector.extract_strided_slice %4 {offsets = [0, 0, 0], sizes = [16, 2, 16], strides = [1, 1, 1]} : vector<18x2x16xf32> to vector<16x2x16xf32>
    %7 = vector.broadcast %5 : f32 to vector<16x2x16xf32>
    %8 = arith.mulf %7, %6 : vector<16x2x16xf32>
    %9 = arith.addf %1, %8 : vector<16x2x16xf32>
    %c3 = arith.constant 3 : index
    %10 = memref.load %arg1[%c3] : memref<36xf32, #tpu.memory_space<smem>>
    %11 = vector.extract_strided_slice %4 {offsets = [1, 0, 0], sizes = [16, 2, 16], strides = [1, 1, 1]} : vector<18x2x16xf32> to vector<16x2x16xf32>
    %12 = vector.broadcast %10 : f32 to vector<16x2x16xf32>
    %13 = arith.mulf %12, %11 : vector<16x2x16xf32>
    %14 = arith.addf %9, %13 : vector<16x2x16xf32>
    %c6 = arith.constant 6 : index
    %15 = memref.load %arg1[%c6] : memref<36xf32, #tpu.memory_space<smem>>
    %16 = vector.extract_strided_slice %4 {offsets = [2, 0, 0], sizes = [16, 2, 16], strides = [1, 1, 1]} : vector<18x2x16xf32> to vector<16x2x16xf32>
    %17 = vector.broadcast %15 : f32 to vector<16x2x16xf32>
    %18 = arith.mulf %17, %16 : vector<16x2x16xf32>
    %19 = arith.addf %14, %18 : vector<16x2x16xf32>
    %20 = vector.extract_strided_slice %3 {offsets = [0, 0, 1], sizes = [18, 2, 16], strides = [1, 1, 1]} : vector<18x2x18xf32> to vector<18x2x16xf32>
    %c1 = arith.constant 1 : index
    %21 = memref.load %arg1[%c1] : memref<36xf32, #tpu.memory_space<smem>>
    %22 = vector.extract_strided_slice %20 {offsets = [0, 0, 0], sizes = [16, 2, 16], strides = [1, 1, 1]} : vector<18x2x16xf32> to vector<16x2x16xf32>
    %23 = vector.broadcast %21 : f32 to vector<16x2x16xf32>
    %24 = arith.mulf %23, %22 : vector<16x2x16xf32>
    %25 = arith.addf %19, %24 : vector<16x2x16xf32>
    %c4 = arith.constant 4 : index
    %26 = memref.load %arg1[%c4] : memref<36xf32, #tpu.memory_space<smem>>
    %27 = vector.extract_strided_slice %20 {offsets = [1, 0, 0], sizes = [16, 2, 16], strides = [1, 1, 1]} : vector<18x2x16xf32> to vector<16x2x16xf32>
    %28 = vector.broadcast %26 : f32 to vector<16x2x16xf32>
    %29 = arith.mulf %28, %27 : vector<16x2x16xf32>
    %30 = arith.addf %25, %29 : vector<16x2x16xf32>
    %c7 = arith.constant 7 : index
    %31 = memref.load %arg1[%c7] : memref<36xf32, #tpu.memory_space<smem>>
    %32 = vector.extract_strided_slice %20 {offsets = [2, 0, 0], sizes = [16, 2, 16], strides = [1, 1, 1]} : vector<18x2x16xf32> to vector<16x2x16xf32>
    %33 = vector.broadcast %31 : f32 to vector<16x2x16xf32>
    %34 = arith.mulf %33, %32 : vector<16x2x16xf32>
    %35 = arith.addf %30, %34 : vector<16x2x16xf32>
    %36 = vector.extract_strided_slice %3 {offsets = [0, 0, 2], sizes = [18, 2, 16], strides = [1, 1, 1]} : vector<18x2x18xf32> to vector<18x2x16xf32>
    %c2 = arith.constant 2 : index
    %37 = memref.load %arg1[%c2] : memref<36xf32, #tpu.memory_space<smem>>
    %38 = vector.extract_strided_slice %36 {offsets = [0, 0, 0], sizes = [16, 2, 16], strides = [1, 1, 1]} : vector<18x2x16xf32> to vector<16x2x16xf32>
    %39 = vector.broadcast %37 : f32 to vector<16x2x16xf32>
    %40 = arith.mulf %39, %38 : vector<16x2x16xf32>
    %41 = arith.addf %35, %40 : vector<16x2x16xf32>
    %c5 = arith.constant 5 : index
    %42 = memref.load %arg1[%c5] : memref<36xf32, #tpu.memory_space<smem>>
    %43 = vector.extract_strided_slice %36 {offsets = [1, 0, 0], sizes = [16, 2, 16], strides = [1, 1, 1]} : vector<18x2x16xf32> to vector<16x2x16xf32>
    %44 = vector.broadcast %42 : f32 to vector<16x2x16xf32>
    %45 = arith.mulf %44, %43 : vector<16x2x16xf32>
    %46 = arith.addf %41, %45 : vector<16x2x16xf32>
    %c8 = arith.constant 8 : index
    %47 = memref.load %arg1[%c8] : memref<36xf32, #tpu.memory_space<smem>>
    %48 = vector.extract_strided_slice %36 {offsets = [2, 0, 0], sizes = [16, 2, 16], strides = [1, 1, 1]} : vector<18x2x16xf32> to vector<16x2x16xf32>
    %49 = vector.broadcast %47 : f32 to vector<16x2x16xf32>
    %50 = arith.mulf %49, %48 : vector<16x2x16xf32>
    %51 = arith.addf %46, %50 : vector<16x2x16xf32>
    %52 = vector.extract_strided_slice %0 {offsets = [1, 0, 0, 0], sizes = [1, 18, 2, 18], strides = [1, 1, 1, 1]} : vector<4x18x2x18xf32> to vector<1x18x2x18xf32>
    %53 = vector.shape_cast %52 : vector<1x18x2x18xf32> to vector<18x2x18xf32>
    %54 = vector.extract_strided_slice %53 {offsets = [0, 0, 0], sizes = [18, 2, 16], strides = [1, 1, 1]} : vector<18x2x18xf32> to vector<18x2x16xf32>
    %c9 = arith.constant 9 : index
    %55 = memref.load %arg1[%c9] : memref<36xf32, #tpu.memory_space<smem>>
    %56 = vector.extract_strided_slice %54 {offsets = [0, 0, 0], sizes = [16, 2, 16], strides = [1, 1, 1]} : vector<18x2x16xf32> to vector<16x2x16xf32>
    %57 = vector.broadcast %55 : f32 to vector<16x2x16xf32>
    %58 = arith.mulf %57, %56 : vector<16x2x16xf32>
    %59 = arith.addf %51, %58 : vector<16x2x16xf32>
    %c12 = arith.constant 12 : index
    %60 = memref.load %arg1[%c12] : memref<36xf32, #tpu.memory_space<smem>>
    %61 = vector.extract_strided_slice %54 {offsets = [1, 0, 0], sizes = [16, 2, 16], strides = [1, 1, 1]} : vector<18x2x16xf32> to vector<16x2x16xf32>
    %62 = vector.broadcast %60 : f32 to vector<16x2x16xf32>
    %63 = arith.mulf %62, %61 : vector<16x2x16xf32>
    %64 = arith.addf %59, %63 : vector<16x2x16xf32>
    %c15 = arith.constant 15 : index
    %65 = memref.load %arg1[%c15] : memref<36xf32, #tpu.memory_space<smem>>
    %66 = vector.extract_strided_slice %54 {offsets = [2, 0, 0], sizes = [16, 2, 16], strides = [1, 1, 1]} : vector<18x2x16xf32> to vector<16x2x16xf32>
    %67 = vector.broadcast %65 : f32 to vector<16x2x16xf32>
    %68 = arith.mulf %67, %66 : vector<16x2x16xf32>
    %69 = arith.addf %64, %68 : vector<16x2x16xf32>
    %70 = vector.extract_strided_slice %53 {offsets = [0, 0, 1], sizes = [18, 2, 16], strides = [1, 1, 1]} : vector<18x2x18xf32> to vector<18x2x16xf32>
    %c10 = arith.constant 10 : index
    %71 = memref.load %arg1[%c10] : memref<36xf32, #tpu.memory_space<smem>>
    %72 = vector.extract_strided_slice %70 {offsets = [0, 0, 0], sizes = [16, 2, 16], strides = [1, 1, 1]} : vector<18x2x16xf32> to vector<16x2x16xf32>
    %73 = vector.broadcast %71 : f32 to vector<16x2x16xf32>
    %74 = arith.mulf %73, %72 : vector<16x2x16xf32>
    %75 = arith.addf %69, %74 : vector<16x2x16xf32>
    %c13 = arith.constant 13 : index
    %76 = memref.load %arg1[%c13] : memref<36xf32, #tpu.memory_space<smem>>
    %77 = vector.extract_strided_slice %70 {offsets = [1, 0, 0], sizes = [16, 2, 16], strides = [1, 1, 1]} : vector<18x2x16xf32> to vector<16x2x16xf32>
    %78 = vector.broadcast %76 : f32 to vector<16x2x16xf32>
    %79 = arith.mulf %78, %77 : vector<16x2x16xf32>
    %80 = arith.addf %75, %79 : vector<16x2x16xf32>
    %c16 = arith.constant 16 : index
    %81 = memref.load %arg1[%c16] : memref<36xf32, #tpu.memory_space<smem>>
    %82 = vector.extract_strided_slice %70 {offsets = [2, 0, 0], sizes = [16, 2, 16], strides = [1, 1, 1]} : vector<18x2x16xf32> to vector<16x2x16xf32>
    %83 = vector.broadcast %81 : f32 to vector<16x2x16xf32>
    %84 = arith.mulf %83, %82 : vector<16x2x16xf32>
    %85 = arith.addf %80, %84 : vector<16x2x16xf32>
    %86 = vector.extract_strided_slice %53 {offsets = [0, 0, 2], sizes = [18, 2, 16], strides = [1, 1, 1]} : vector<18x2x18xf32> to vector<18x2x16xf32>
    %c11 = arith.constant 11 : index
    %87 = memref.load %arg1[%c11] : memref<36xf32, #tpu.memory_space<smem>>
    %88 = vector.extract_strided_slice %86 {offsets = [0, 0, 0], sizes = [16, 2, 16], strides = [1, 1, 1]} : vector<18x2x16xf32> to vector<16x2x16xf32>
    %89 = vector.broadcast %87 : f32 to vector<16x2x16xf32>
    %90 = arith.mulf %89, %88 : vector<16x2x16xf32>
    %91 = arith.addf %85, %90 : vector<16x2x16xf32>
    %c14 = arith.constant 14 : index
    %92 = memref.load %arg1[%c14] : memref<36xf32, #tpu.memory_space<smem>>
    %93 = vector.extract_strided_slice %86 {offsets = [1, 0, 0], sizes = [16, 2, 16], strides = [1, 1, 1]} : vector<18x2x16xf32> to vector<16x2x16xf32>
    %94 = vector.broadcast %92 : f32 to vector<16x2x16xf32>
    %95 = arith.mulf %94, %93 : vector<16x2x16xf32>
    %96 = arith.addf %91, %95 : vector<16x2x16xf32>
    %c17 = arith.constant 17 : index
    %97 = memref.load %arg1[%c17] : memref<36xf32, #tpu.memory_space<smem>>
    %98 = vector.extract_strided_slice %86 {offsets = [2, 0, 0], sizes = [16, 2, 16], strides = [1, 1, 1]} : vector<18x2x16xf32> to vector<16x2x16xf32>
    %99 = vector.broadcast %97 : f32 to vector<16x2x16xf32>
    %100 = arith.mulf %99, %98 : vector<16x2x16xf32>
    %101 = arith.addf %96, %100 : vector<16x2x16xf32>
    %102 = vector.extract_strided_slice %0 {offsets = [2, 0, 0, 0], sizes = [1, 18, 2, 18], strides = [1, 1, 1, 1]} : vector<4x18x2x18xf32> to vector<1x18x2x18xf32>
    %103 = vector.shape_cast %102 : vector<1x18x2x18xf32> to vector<18x2x18xf32>
    %104 = vector.extract_strided_slice %103 {offsets = [0, 0, 0], sizes = [18, 2, 16], strides = [1, 1, 1]} : vector<18x2x18xf32> to vector<18x2x16xf32>
    %c18 = arith.constant 18 : index
    %105 = memref.load %arg1[%c18] : memref<36xf32, #tpu.memory_space<smem>>
    %106 = vector.extract_strided_slice %104 {offsets = [0, 0, 0], sizes = [16, 2, 16], strides = [1, 1, 1]} : vector<18x2x16xf32> to vector<16x2x16xf32>
    %107 = vector.broadcast %105 : f32 to vector<16x2x16xf32>
    %108 = arith.mulf %107, %106 : vector<16x2x16xf32>
    %109 = arith.addf %101, %108 : vector<16x2x16xf32>
    %c21 = arith.constant 21 : index
    %110 = memref.load %arg1[%c21] : memref<36xf32, #tpu.memory_space<smem>>
    %111 = vector.extract_strided_slice %104 {offsets = [1, 0, 0], sizes = [16, 2, 16], strides = [1, 1, 1]} : vector<18x2x16xf32> to vector<16x2x16xf32>
    %112 = vector.broadcast %110 : f32 to vector<16x2x16xf32>
    %113 = arith.mulf %112, %111 : vector<16x2x16xf32>
    %114 = arith.addf %109, %113 : vector<16x2x16xf32>
    %c24 = arith.constant 24 : index
    %115 = memref.load %arg1[%c24] : memref<36xf32, #tpu.memory_space<smem>>
    %116 = vector.extract_strided_slice %104 {offsets = [2, 0, 0], sizes = [16, 2, 16], strides = [1, 1, 1]} : vector<18x2x16xf32> to vector<16x2x16xf32>
    %117 = vector.broadcast %115 : f32 to vector<16x2x16xf32>
    %118 = arith.mulf %117, %116 : vector<16x2x16xf32>
    %119 = arith.addf %114, %118 : vector<16x2x16xf32>
    %120 = vector.extract_strided_slice %103 {offsets = [0, 0, 1], sizes = [18, 2, 16], strides = [1, 1, 1]} : vector<18x2x18xf32> to vector<18x2x16xf32>
    %c19 = arith.constant 19 : index
    %121 = memref.load %arg1[%c19] : memref<36xf32, #tpu.memory_space<smem>>
    %122 = vector.extract_strided_slice %120 {offsets = [0, 0, 0], sizes = [16, 2, 16], strides = [1, 1, 1]} : vector<18x2x16xf32> to vector<16x2x16xf32>
    %123 = vector.broadcast %121 : f32 to vector<16x2x16xf32>
    %124 = arith.mulf %123, %122 : vector<16x2x16xf32>
    %125 = arith.addf %119, %124 : vector<16x2x16xf32>
    %c22 = arith.constant 22 : index
    %126 = memref.load %arg1[%c22] : memref<36xf32, #tpu.memory_space<smem>>
    %127 = vector.extract_strided_slice %120 {offsets = [1, 0, 0], sizes = [16, 2, 16], strides = [1, 1, 1]} : vector<18x2x16xf32> to vector<16x2x16xf32>
    %128 = vector.broadcast %126 : f32 to vector<16x2x16xf32>
    %129 = arith.mulf %128, %127 : vector<16x2x16xf32>
    %130 = arith.addf %125, %129 : vector<16x2x16xf32>
    %c25 = arith.constant 25 : index
    %131 = memref.load %arg1[%c25] : memref<36xf32, #tpu.memory_space<smem>>
    %132 = vector.extract_strided_slice %120 {offsets = [2, 0, 0], sizes = [16, 2, 16], strides = [1, 1, 1]} : vector<18x2x16xf32> to vector<16x2x16xf32>
    %133 = vector.broadcast %131 : f32 to vector<16x2x16xf32>
    %134 = arith.mulf %133, %132 : vector<16x2x16xf32>
    %135 = arith.addf %130, %134 : vector<16x2x16xf32>
    %136 = vector.extract_strided_slice %103 {offsets = [0, 0, 2], sizes = [18, 2, 16], strides = [1, 1, 1]} : vector<18x2x18xf32> to vector<18x2x16xf32>
    %c20 = arith.constant 20 : index
    %137 = memref.load %arg1[%c20] : memref<36xf32, #tpu.memory_space<smem>>
    %138 = vector.extract_strided_slice %136 {offsets = [0, 0, 0], sizes = [16, 2, 16], strides = [1, 1, 1]} : vector<18x2x16xf32> to vector<16x2x16xf32>
    %139 = vector.broadcast %137 : f32 to vector<16x2x16xf32>
    %140 = arith.mulf %139, %138 : vector<16x2x16xf32>
    %141 = arith.addf %135, %140 : vector<16x2x16xf32>
    %c23 = arith.constant 23 : index
    %142 = memref.load %arg1[%c23] : memref<36xf32, #tpu.memory_space<smem>>
    %143 = vector.extract_strided_slice %136 {offsets = [1, 0, 0], sizes = [16, 2, 16], strides = [1, 1, 1]} : vector<18x2x16xf32> to vector<16x2x16xf32>
    %144 = vector.broadcast %142 : f32 to vector<16x2x16xf32>
    %145 = arith.mulf %144, %143 : vector<16x2x16xf32>
    %146 = arith.addf %141, %145 : vector<16x2x16xf32>
    %c26 = arith.constant 26 : index
    %147 = memref.load %arg1[%c26] : memref<36xf32, #tpu.memory_space<smem>>
    %148 = vector.extract_strided_slice %136 {offsets = [2, 0, 0], sizes = [16, 2, 16], strides = [1, 1, 1]} : vector<18x2x16xf32> to vector<16x2x16xf32>
    %149 = vector.broadcast %147 : f32 to vector<16x2x16xf32>
    %150 = arith.mulf %149, %148 : vector<16x2x16xf32>
    %151 = arith.addf %146, %150 : vector<16x2x16xf32>
    %152 = vector.extract_strided_slice %0 {offsets = [3, 0, 0, 0], sizes = [1, 18, 2, 18], strides = [1, 1, 1, 1]} : vector<4x18x2x18xf32> to vector<1x18x2x18xf32>
    %153 = vector.shape_cast %152 : vector<1x18x2x18xf32> to vector<18x2x18xf32>
    %154 = vector.extract_strided_slice %153 {offsets = [0, 0, 0], sizes = [18, 2, 16], strides = [1, 1, 1]} : vector<18x2x18xf32> to vector<18x2x16xf32>
    %c27 = arith.constant 27 : index
    %155 = memref.load %arg1[%c27] : memref<36xf32, #tpu.memory_space<smem>>
    %156 = vector.extract_strided_slice %154 {offsets = [0, 0, 0], sizes = [16, 2, 16], strides = [1, 1, 1]} : vector<18x2x16xf32> to vector<16x2x16xf32>
    %157 = vector.broadcast %155 : f32 to vector<16x2x16xf32>
    %158 = arith.mulf %157, %156 : vector<16x2x16xf32>
    %159 = arith.addf %151, %158 : vector<16x2x16xf32>
    %c30 = arith.constant 30 : index
    %160 = memref.load %arg1[%c30] : memref<36xf32, #tpu.memory_space<smem>>
    %161 = vector.extract_strided_slice %154 {offsets = [1, 0, 0], sizes = [16, 2, 16], strides = [1, 1, 1]} : vector<18x2x16xf32> to vector<16x2x16xf32>
    %162 = vector.broadcast %160 : f32 to vector<16x2x16xf32>
    %163 = arith.mulf %162, %161 : vector<16x2x16xf32>
    %164 = arith.addf %159, %163 : vector<16x2x16xf32>
    %c33 = arith.constant 33 : index
    %165 = memref.load %arg1[%c33] : memref<36xf32, #tpu.memory_space<smem>>
    %166 = vector.extract_strided_slice %154 {offsets = [2, 0, 0], sizes = [16, 2, 16], strides = [1, 1, 1]} : vector<18x2x16xf32> to vector<16x2x16xf32>
    %167 = vector.broadcast %165 : f32 to vector<16x2x16xf32>
    %168 = arith.mulf %167, %166 : vector<16x2x16xf32>
    %169 = arith.addf %164, %168 : vector<16x2x16xf32>
    %170 = vector.extract_strided_slice %153 {offsets = [0, 0, 1], sizes = [18, 2, 16], strides = [1, 1, 1]} : vector<18x2x18xf32> to vector<18x2x16xf32>
    %c28 = arith.constant 28 : index
    %171 = memref.load %arg1[%c28] : memref<36xf32, #tpu.memory_space<smem>>
    %172 = vector.extract_strided_slice %170 {offsets = [0, 0, 0], sizes = [16, 2, 16], strides = [1, 1, 1]} : vector<18x2x16xf32> to vector<16x2x16xf32>
    %173 = vector.broadcast %171 : f32 to vector<16x2x16xf32>
    %174 = arith.mulf %173, %172 : vector<16x2x16xf32>
    %175 = arith.addf %169, %174 : vector<16x2x16xf32>
    %c31 = arith.constant 31 : index
    %176 = memref.load %arg1[%c31] : memref<36xf32, #tpu.memory_space<smem>>
    %177 = vector.extract_strided_slice %170 {offsets = [1, 0, 0], sizes = [16, 2, 16], strides = [1, 1, 1]} : vector<18x2x16xf32> to vector<16x2x16xf32>
    %178 = vector.broadcast %176 : f32 to vector<16x2x16xf32>
    %179 = arith.mulf %178, %177 : vector<16x2x16xf32>
    %180 = arith.addf %175, %179 : vector<16x2x16xf32>
    %c34 = arith.constant 34 : index
    %181 = memref.load %arg1[%c34] : memref<36xf32, #tpu.memory_space<smem>>
    %182 = vector.extract_strided_slice %170 {offsets = [2, 0, 0], sizes = [16, 2, 16], strides = [1, 1, 1]} : vector<18x2x16xf32> to vector<16x2x16xf32>
    %183 = vector.broadcast %181 : f32 to vector<16x2x16xf32>
    %184 = arith.mulf %183, %182 : vector<16x2x16xf32>
    %185 = arith.addf %180, %184 : vector<16x2x16xf32>
    %186 = vector.extract_strided_slice %153 {offsets = [0, 0, 2], sizes = [18, 2, 16], strides = [1, 1, 1]} : vector<18x2x18xf32> to vector<18x2x16xf32>
    %c29 = arith.constant 29 : index
    %187 = memref.load %arg1[%c29] : memref<36xf32, #tpu.memory_space<smem>>
    %188 = vector.extract_strided_slice %186 {offsets = [0, 0, 0], sizes = [16, 2, 16], strides = [1, 1, 1]} : vector<18x2x16xf32> to vector<16x2x16xf32>
    %189 = vector.broadcast %187 : f32 to vector<16x2x16xf32>
    %190 = arith.mulf %189, %188 : vector<16x2x16xf32>
    %191 = arith.addf %185, %190 : vector<16x2x16xf32>
    %c32 = arith.constant 32 : index
    %192 = memref.load %arg1[%c32] : memref<36xf32, #tpu.memory_space<smem>>
    %193 = vector.extract_strided_slice %186 {offsets = [1, 0, 0], sizes = [16, 2, 16], strides = [1, 1, 1]} : vector<18x2x16xf32> to vector<16x2x16xf32>
    %194 = vector.broadcast %192 : f32 to vector<16x2x16xf32>
    %195 = arith.mulf %194, %193 : vector<16x2x16xf32>
    %196 = arith.addf %191, %195 : vector<16x2x16xf32>
    %c35 = arith.constant 35 : index
    %197 = memref.load %arg1[%c35] : memref<36xf32, #tpu.memory_space<smem>>
    %198 = vector.extract_strided_slice %186 {offsets = [2, 0, 0], sizes = [16, 2, 16], strides = [1, 1, 1]} : vector<18x2x16xf32> to vector<16x2x16xf32>
    %199 = vector.broadcast %197 : f32 to vector<16x2x16xf32>
    %200 = arith.mulf %199, %198 : vector<16x2x16xf32>
    %201 = arith.addf %196, %200 : vector<16x2x16xf32>
    %c0_4 = arith.constant 0 : index
    %c0_5 = arith.constant 0 : index
    %c0_6 = arith.constant 0 : index
    %202 = vector.load %arg2[%c0_4, %c0_5, %c0_6] : memref<16x1x16xf32, #tpu.memory_space<vmem>>, vector<16x1x16xf32>
    %203 = vector.broadcast %202 : vector<16x1x16xf32> to vector<16x2x16xf32>
    %204 = arith.addf %201, %203 : vector<16x2x16xf32>
    %cst_7 = arith.constant 0.000000e+00 : f32
    %205 = vector.broadcast %cst_7 : f32 to vector<16x2x16xf32>
    %206 = arith.maximumf %204, %205 : vector<16x2x16xf32>
    %cst_8 = arith.constant 0.000000e+00 : f32
    %207 = vector.broadcast %cst_8 : f32 to vector<2x512xf32>
    %208 = vector.extract_strided_slice %206 {offsets = [0, 0, 0], sizes = [1, 2, 16], strides = [1, 1, 1]} : vector<16x2x16xf32> to vector<1x2x16xf32>
    %209 = vector.shape_cast %208 : vector<1x2x16xf32> to vector<2x16xf32>
    %c0_9 = arith.constant 0 : index
    %c0_10 = arith.constant 0 : index
    %c0_11 = arith.constant 0 : index
    %210 = vector.load %arg3[%c0_9, %c0_10, %c0_11] : memref<16x16x512xf32, #tpu.memory_space<vmem>>, vector<1x16x512xf32>
    %211 = vector.shape_cast %210 : vector<1x16x512xf32> to vector<16x512xf32>
    %cst_12 = arith.constant dense<0.000000e+00> : vector<2x512xf32>
    %212 = tpu.matmul %209, %211, %cst_12 {dimension_numbers = #tpu.dot_dimension_numbers<[1], [0], [0], [1], [0, 0, 1, 1], [], []>} : vector<2x16xf32>, vector<16x512xf32>, vector<2x512xf32> -> vector<2x512xf32>
    %213 = arith.addf %207, %212 : vector<2x512xf32>
    %214 = vector.extract_strided_slice %206 {offsets = [1, 0, 0], sizes = [1, 2, 16], strides = [1, 1, 1]} : vector<16x2x16xf32> to vector<1x2x16xf32>
    %215 = vector.shape_cast %214 : vector<1x2x16xf32> to vector<2x16xf32>
    %c1_13 = arith.constant 1 : index
    %c0_14 = arith.constant 0 : index
    %c0_15 = arith.constant 0 : index
    %216 = vector.load %arg3[%c1_13, %c0_14, %c0_15] : memref<16x16x512xf32, #tpu.memory_space<vmem>>, vector<1x16x512xf32>
    %217 = vector.shape_cast %216 : vector<1x16x512xf32> to vector<16x512xf32>
    %cst_16 = arith.constant dense<0.000000e+00> : vector<2x512xf32>
    %218 = tpu.matmul %215, %217, %cst_16 {dimension_numbers = #tpu.dot_dimension_numbers<[1], [0], [0], [1], [0, 0, 1, 1], [], []>} : vector<2x16xf32>, vector<16x512xf32>, vector<2x512xf32> -> vector<2x512xf32>
    %219 = arith.addf %213, %218 : vector<2x512xf32>
    %220 = vector.extract_strided_slice %206 {offsets = [2, 0, 0], sizes = [1, 2, 16], strides = [1, 1, 1]} : vector<16x2x16xf32> to vector<1x2x16xf32>
    %221 = vector.shape_cast %220 : vector<1x2x16xf32> to vector<2x16xf32>
    %c2_17 = arith.constant 2 : index
    %c0_18 = arith.constant 0 : index
    %c0_19 = arith.constant 0 : index
    %222 = vector.load %arg3[%c2_17, %c0_18, %c0_19] : memref<16x16x512xf32, #tpu.memory_space<vmem>>, vector<1x16x512xf32>
    %223 = vector.shape_cast %222 : vector<1x16x512xf32> to vector<16x512xf32>
    %cst_20 = arith.constant dense<0.000000e+00> : vector<2x512xf32>
    %224 = tpu.matmul %221, %223, %cst_20 {dimension_numbers = #tpu.dot_dimension_numbers<[1], [0], [0], [1], [0, 0, 1, 1], [], []>} : vector<2x16xf32>, vector<16x512xf32>, vector<2x512xf32> -> vector<2x512xf32>
    %225 = arith.addf %219, %224 : vector<2x512xf32>
    %226 = vector.extract_strided_slice %206 {offsets = [3, 0, 0], sizes = [1, 2, 16], strides = [1, 1, 1]} : vector<16x2x16xf32> to vector<1x2x16xf32>
    %227 = vector.shape_cast %226 : vector<1x2x16xf32> to vector<2x16xf32>
    %c3_21 = arith.constant 3 : index
    %c0_22 = arith.constant 0 : index
    %c0_23 = arith.constant 0 : index
    %228 = vector.load %arg3[%c3_21, %c0_22, %c0_23] : memref<16x16x512xf32, #tpu.memory_space<vmem>>, vector<1x16x512xf32>
    %229 = vector.shape_cast %228 : vector<1x16x512xf32> to vector<16x512xf32>
    %cst_24 = arith.constant dense<0.000000e+00> : vector<2x512xf32>
    %230 = tpu.matmul %227, %229, %cst_24 {dimension_numbers = #tpu.dot_dimension_numbers<[1], [0], [0], [1], [0, 0, 1, 1], [], []>} : vector<2x16xf32>, vector<16x512xf32>, vector<2x512xf32> -> vector<2x512xf32>
    %231 = arith.addf %225, %230 : vector<2x512xf32>
    %232 = vector.extract_strided_slice %206 {offsets = [4, 0, 0], sizes = [1, 2, 16], strides = [1, 1, 1]} : vector<16x2x16xf32> to vector<1x2x16xf32>
    %233 = vector.shape_cast %232 : vector<1x2x16xf32> to vector<2x16xf32>
    %c4_25 = arith.constant 4 : index
    %c0_26 = arith.constant 0 : index
    %c0_27 = arith.constant 0 : index
    %234 = vector.load %arg3[%c4_25, %c0_26, %c0_27] : memref<16x16x512xf32, #tpu.memory_space<vmem>>, vector<1x16x512xf32>
    %235 = vector.shape_cast %234 : vector<1x16x512xf32> to vector<16x512xf32>
    %cst_28 = arith.constant dense<0.000000e+00> : vector<2x512xf32>
    %236 = tpu.matmul %233, %235, %cst_28 {dimension_numbers = #tpu.dot_dimension_numbers<[1], [0], [0], [1], [0, 0, 1, 1], [], []>} : vector<2x16xf32>, vector<16x512xf32>, vector<2x512xf32> -> vector<2x512xf32>
    %237 = arith.addf %231, %236 : vector<2x512xf32>
    %238 = vector.extract_strided_slice %206 {offsets = [5, 0, 0], sizes = [1, 2, 16], strides = [1, 1, 1]} : vector<16x2x16xf32> to vector<1x2x16xf32>
    %239 = vector.shape_cast %238 : vector<1x2x16xf32> to vector<2x16xf32>
    %c5_29 = arith.constant 5 : index
    %c0_30 = arith.constant 0 : index
    %c0_31 = arith.constant 0 : index
    %240 = vector.load %arg3[%c5_29, %c0_30, %c0_31] : memref<16x16x512xf32, #tpu.memory_space<vmem>>, vector<1x16x512xf32>
    %241 = vector.shape_cast %240 : vector<1x16x512xf32> to vector<16x512xf32>
    %cst_32 = arith.constant dense<0.000000e+00> : vector<2x512xf32>
    %242 = tpu.matmul %239, %241, %cst_32 {dimension_numbers = #tpu.dot_dimension_numbers<[1], [0], [0], [1], [0, 0, 1, 1], [], []>} : vector<2x16xf32>, vector<16x512xf32>, vector<2x512xf32> -> vector<2x512xf32>
    %243 = arith.addf %237, %242 : vector<2x512xf32>
    %244 = vector.extract_strided_slice %206 {offsets = [6, 0, 0], sizes = [1, 2, 16], strides = [1, 1, 1]} : vector<16x2x16xf32> to vector<1x2x16xf32>
    %245 = vector.shape_cast %244 : vector<1x2x16xf32> to vector<2x16xf32>
    %c6_33 = arith.constant 6 : index
    %c0_34 = arith.constant 0 : index
    %c0_35 = arith.constant 0 : index
    %246 = vector.load %arg3[%c6_33, %c0_34, %c0_35] : memref<16x16x512xf32, #tpu.memory_space<vmem>>, vector<1x16x512xf32>
    %247 = vector.shape_cast %246 : vector<1x16x512xf32> to vector<16x512xf32>
    %cst_36 = arith.constant dense<0.000000e+00> : vector<2x512xf32>
    %248 = tpu.matmul %245, %247, %cst_36 {dimension_numbers = #tpu.dot_dimension_numbers<[1], [0], [0], [1], [0, 0, 1, 1], [], []>} : vector<2x16xf32>, vector<16x512xf32>, vector<2x512xf32> -> vector<2x512xf32>
    %249 = arith.addf %243, %248 : vector<2x512xf32>
    %250 = vector.extract_strided_slice %206 {offsets = [7, 0, 0], sizes = [1, 2, 16], strides = [1, 1, 1]} : vector<16x2x16xf32> to vector<1x2x16xf32>
    %251 = vector.shape_cast %250 : vector<1x2x16xf32> to vector<2x16xf32>
    %c7_37 = arith.constant 7 : index
    %c0_38 = arith.constant 0 : index
    %c0_39 = arith.constant 0 : index
    %252 = vector.load %arg3[%c7_37, %c0_38, %c0_39] : memref<16x16x512xf32, #tpu.memory_space<vmem>>, vector<1x16x512xf32>
    %253 = vector.shape_cast %252 : vector<1x16x512xf32> to vector<16x512xf32>
    %cst_40 = arith.constant dense<0.000000e+00> : vector<2x512xf32>
    %254 = tpu.matmul %251, %253, %cst_40 {dimension_numbers = #tpu.dot_dimension_numbers<[1], [0], [0], [1], [0, 0, 1, 1], [], []>} : vector<2x16xf32>, vector<16x512xf32>, vector<2x512xf32> -> vector<2x512xf32>
    %255 = arith.addf %249, %254 : vector<2x512xf32>
    %256 = vector.extract_strided_slice %206 {offsets = [8, 0, 0], sizes = [1, 2, 16], strides = [1, 1, 1]} : vector<16x2x16xf32> to vector<1x2x16xf32>
    %257 = vector.shape_cast %256 : vector<1x2x16xf32> to vector<2x16xf32>
    %c8_41 = arith.constant 8 : index
    %c0_42 = arith.constant 0 : index
    %c0_43 = arith.constant 0 : index
    %258 = vector.load %arg3[%c8_41, %c0_42, %c0_43] : memref<16x16x512xf32, #tpu.memory_space<vmem>>, vector<1x16x512xf32>
    %259 = vector.shape_cast %258 : vector<1x16x512xf32> to vector<16x512xf32>
    %cst_44 = arith.constant dense<0.000000e+00> : vector<2x512xf32>
    %260 = tpu.matmul %257, %259, %cst_44 {dimension_numbers = #tpu.dot_dimension_numbers<[1], [0], [0], [1], [0, 0, 1, 1], [], []>} : vector<2x16xf32>, vector<16x512xf32>, vector<2x512xf32> -> vector<2x512xf32>
    %261 = arith.addf %255, %260 : vector<2x512xf32>
    %262 = vector.extract_strided_slice %206 {offsets = [9, 0, 0], sizes = [1, 2, 16], strides = [1, 1, 1]} : vector<16x2x16xf32> to vector<1x2x16xf32>
    %263 = vector.shape_cast %262 : vector<1x2x16xf32> to vector<2x16xf32>
    %c9_45 = arith.constant 9 : index
    %c0_46 = arith.constant 0 : index
    %c0_47 = arith.constant 0 : index
    %264 = vector.load %arg3[%c9_45, %c0_46, %c0_47] : memref<16x16x512xf32, #tpu.memory_space<vmem>>, vector<1x16x512xf32>
    %265 = vector.shape_cast %264 : vector<1x16x512xf32> to vector<16x512xf32>
    %cst_48 = arith.constant dense<0.000000e+00> : vector<2x512xf32>
    %266 = tpu.matmul %263, %265, %cst_48 {dimension_numbers = #tpu.dot_dimension_numbers<[1], [0], [0], [1], [0, 0, 1, 1], [], []>} : vector<2x16xf32>, vector<16x512xf32>, vector<2x512xf32> -> vector<2x512xf32>
    %267 = arith.addf %261, %266 : vector<2x512xf32>
    %268 = vector.extract_strided_slice %206 {offsets = [10, 0, 0], sizes = [1, 2, 16], strides = [1, 1, 1]} : vector<16x2x16xf32> to vector<1x2x16xf32>
    %269 = vector.shape_cast %268 : vector<1x2x16xf32> to vector<2x16xf32>
    %c10_49 = arith.constant 10 : index
    %c0_50 = arith.constant 0 : index
    %c0_51 = arith.constant 0 : index
    %270 = vector.load %arg3[%c10_49, %c0_50, %c0_51] : memref<16x16x512xf32, #tpu.memory_space<vmem>>, vector<1x16x512xf32>
    %271 = vector.shape_cast %270 : vector<1x16x512xf32> to vector<16x512xf32>
    %cst_52 = arith.constant dense<0.000000e+00> : vector<2x512xf32>
    %272 = tpu.matmul %269, %271, %cst_52 {dimension_numbers = #tpu.dot_dimension_numbers<[1], [0], [0], [1], [0, 0, 1, 1], [], []>} : vector<2x16xf32>, vector<16x512xf32>, vector<2x512xf32> -> vector<2x512xf32>
    %273 = arith.addf %267, %272 : vector<2x512xf32>
    %274 = vector.extract_strided_slice %206 {offsets = [11, 0, 0], sizes = [1, 2, 16], strides = [1, 1, 1]} : vector<16x2x16xf32> to vector<1x2x16xf32>
    %275 = vector.shape_cast %274 : vector<1x2x16xf32> to vector<2x16xf32>
    %c11_53 = arith.constant 11 : index
    %c0_54 = arith.constant 0 : index
    %c0_55 = arith.constant 0 : index
    %276 = vector.load %arg3[%c11_53, %c0_54, %c0_55] : memref<16x16x512xf32, #tpu.memory_space<vmem>>, vector<1x16x512xf32>
    %277 = vector.shape_cast %276 : vector<1x16x512xf32> to vector<16x512xf32>
    %cst_56 = arith.constant dense<0.000000e+00> : vector<2x512xf32>
    %278 = tpu.matmul %275, %277, %cst_56 {dimension_numbers = #tpu.dot_dimension_numbers<[1], [0], [0], [1], [0, 0, 1, 1], [], []>} : vector<2x16xf32>, vector<16x512xf32>, vector<2x512xf32> -> vector<2x512xf32>
    %279 = arith.addf %273, %278 : vector<2x512xf32>
    %280 = vector.extract_strided_slice %206 {offsets = [12, 0, 0], sizes = [1, 2, 16], strides = [1, 1, 1]} : vector<16x2x16xf32> to vector<1x2x16xf32>
    %281 = vector.shape_cast %280 : vector<1x2x16xf32> to vector<2x16xf32>
    %c12_57 = arith.constant 12 : index
    %c0_58 = arith.constant 0 : index
    %c0_59 = arith.constant 0 : index
    %282 = vector.load %arg3[%c12_57, %c0_58, %c0_59] : memref<16x16x512xf32, #tpu.memory_space<vmem>>, vector<1x16x512xf32>
    %283 = vector.shape_cast %282 : vector<1x16x512xf32> to vector<16x512xf32>
    %cst_60 = arith.constant dense<0.000000e+00> : vector<2x512xf32>
    %284 = tpu.matmul %281, %283, %cst_60 {dimension_numbers = #tpu.dot_dimension_numbers<[1], [0], [0], [1], [0, 0, 1, 1], [], []>} : vector<2x16xf32>, vector<16x512xf32>, vector<2x512xf32> -> vector<2x512xf32>
    %285 = arith.addf %279, %284 : vector<2x512xf32>
    %286 = vector.extract_strided_slice %206 {offsets = [13, 0, 0], sizes = [1, 2, 16], strides = [1, 1, 1]} : vector<16x2x16xf32> to vector<1x2x16xf32>
    %287 = vector.shape_cast %286 : vector<1x2x16xf32> to vector<2x16xf32>
    %c13_61 = arith.constant 13 : index
    %c0_62 = arith.constant 0 : index
    %c0_63 = arith.constant 0 : index
    %288 = vector.load %arg3[%c13_61, %c0_62, %c0_63] : memref<16x16x512xf32, #tpu.memory_space<vmem>>, vector<1x16x512xf32>
    %289 = vector.shape_cast %288 : vector<1x16x512xf32> to vector<16x512xf32>
    %cst_64 = arith.constant dense<0.000000e+00> : vector<2x512xf32>
    %290 = tpu.matmul %287, %289, %cst_64 {dimension_numbers = #tpu.dot_dimension_numbers<[1], [0], [0], [1], [0, 0, 1, 1], [], []>} : vector<2x16xf32>, vector<16x512xf32>, vector<2x512xf32> -> vector<2x512xf32>
    %291 = arith.addf %285, %290 : vector<2x512xf32>
    %292 = vector.extract_strided_slice %206 {offsets = [14, 0, 0], sizes = [1, 2, 16], strides = [1, 1, 1]} : vector<16x2x16xf32> to vector<1x2x16xf32>
    %293 = vector.shape_cast %292 : vector<1x2x16xf32> to vector<2x16xf32>
    %c14_65 = arith.constant 14 : index
    %c0_66 = arith.constant 0 : index
    %c0_67 = arith.constant 0 : index
    %294 = vector.load %arg3[%c14_65, %c0_66, %c0_67] : memref<16x16x512xf32, #tpu.memory_space<vmem>>, vector<1x16x512xf32>
    %295 = vector.shape_cast %294 : vector<1x16x512xf32> to vector<16x512xf32>
    %cst_68 = arith.constant dense<0.000000e+00> : vector<2x512xf32>
    %296 = tpu.matmul %293, %295, %cst_68 {dimension_numbers = #tpu.dot_dimension_numbers<[1], [0], [0], [1], [0, 0, 1, 1], [], []>} : vector<2x16xf32>, vector<16x512xf32>, vector<2x512xf32> -> vector<2x512xf32>
    %297 = arith.addf %291, %296 : vector<2x512xf32>
    %298 = vector.extract_strided_slice %206 {offsets = [15, 0, 0], sizes = [1, 2, 16], strides = [1, 1, 1]} : vector<16x2x16xf32> to vector<1x2x16xf32>
    %299 = vector.shape_cast %298 : vector<1x2x16xf32> to vector<2x16xf32>
    %c15_69 = arith.constant 15 : index
    %c0_70 = arith.constant 0 : index
    %c0_71 = arith.constant 0 : index
    %300 = vector.load %arg3[%c15_69, %c0_70, %c0_71] : memref<16x16x512xf32, #tpu.memory_space<vmem>>, vector<1x16x512xf32>
    %301 = vector.shape_cast %300 : vector<1x16x512xf32> to vector<16x512xf32>
    %cst_72 = arith.constant dense<0.000000e+00> : vector<2x512xf32>
    %302 = tpu.matmul %299, %301, %cst_72 {dimension_numbers = #tpu.dot_dimension_numbers<[1], [0], [0], [1], [0, 0, 1, 1], [], []>} : vector<2x16xf32>, vector<16x512xf32>, vector<2x512xf32> -> vector<2x512xf32>
    %303 = arith.addf %297, %302 : vector<2x512xf32>
    %c0_73 = arith.constant 0 : index
    %c0_74 = arith.constant 0 : index
    %304 = vector.load %arg4[%c0_73, %c0_74] : memref<1x512xf32, #tpu.memory_space<vmem>>, vector<1x512xf32>
    %305 = vector.broadcast %304 : vector<1x512xf32> to vector<2x512xf32>
    %306 = arith.addf %303, %305 : vector<2x512xf32>
    %cst_75 = arith.constant 0.000000e+00 : f32
    %307 = vector.broadcast %cst_75 : f32 to vector<2x512xf32>
    %308 = arith.maximumf %306, %307 : vector<2x512xf32>
    %c0_76 = arith.constant 0 : index
    %c0_77 = arith.constant 0 : index
    %309 = vector.load %arg5[%c0_76, %c0_77] : memref<512x256xf32, #tpu.memory_space<vmem>>, vector<512x256xf32>
    %cst_78 = arith.constant dense<0.000000e+00> : vector<2x256xf32>
    %310 = tpu.matmul %308, %309, %cst_78 {dimension_numbers = #tpu.dot_dimension_numbers<[1], [0], [0], [1], [0, 0, 1, 1], [], []>} : vector<2x512xf32>, vector<512x256xf32>, vector<2x256xf32> -> vector<2x256xf32>
    %c0_79 = arith.constant 0 : index
    %c0_80 = arith.constant 0 : index
    %311 = vector.load %arg6[%c0_79, %c0_80] : memref<1x256xf32, #tpu.memory_space<vmem>>, vector<1x256xf32>
    %312 = vector.broadcast %311 : vector<1x256xf32> to vector<2x256xf32>
    %313 = arith.addf %310, %312 : vector<2x256xf32>
    %c0_81 = arith.constant 0 : index
    %c0_82 = arith.constant 0 : index
    %314 = vector.load %arg7[%c0_81, %c0_82] : memref<2x256xf32, #tpu.memory_space<vmem>>, vector<2x256xf32>
    tpu.vector_store %arg7[%c0_81, %c0_82], %313 {strides = array<i32>} : memref<2x256xf32, #tpu.memory_space<vmem>>, vector<2x256xf32>,
    return
  }
}

</mosaic_0001>

<bundles_post_ra>
// kernel: value_forward.1
= control target key start
LH: loop header
LB: loop body
LE: loop exit
PB: predicated region body
PF: predicated region fallthrough
CT: control target
= control target key end

     0   :  { %12 = vsyncpa [#allocation4], 0  ;;  %s10540_s0 = inlined_call_operand.vmem [shape: f32[4,18,2,18], index: 0, kind: input, shape index: {}]   ;;  %s10541_s1 = inlined_call_operand.vmem [shape: f32[36], index: 1, kind: input, shape index: {}]   ;;  %s10542_s2 = inlined_call_operand.vmem [shape: f32[16,1,16], index: 2, kind: input, shape index: {}]   ;;  %s10543_s3 = inlined_call_operand.vmem [shape: f32[16,16,512], index: 3, kind: input, shape index: {}]   ;;  %s10544_s4 = inlined_call_operand.vmem [shape: f32[1,512], index: 4, kind: input, shape index: {}]   ;;  %s10545_s5 = inlined_call_operand.vmem [shape: f32[512,256], index: 5, kind: input, shape index: {}]   ;;  %s10546_s6 = inlined_call_operand.vmem [shape: f32[1,256], index: 6, kind: input, shape index: {}]   ;;  %s10547_s7 = inlined_call_operand.hbm [shape: f32[2,256], index: 7, kind: output, shape index: {}]  }
   0x1   :  { %13 = vsyncpa [#allocation3], 0  ;;  %s22_s26 = sshll.u32 %s10541_s1, 4  ;;  %s23_s26 = int_to_ptr.vmem [resolvable:$true] %s22_s26 }
   0x2   :  { %s6453_s27 = scalar_lea.vmem %s23_s26, 16  ;;  %p6458_p1 = scmp.lt.s32.totalorder %s23_s26, %s23_s26 }
   0x3   :  { %p6454_p0 = scmp.ne.s32.totalorder %s23_s26, %s6453_s27  ;;  %p6459_p2 = scmp.lt.s32.totalorder %s6453_s27, %s6453_s27 }
   0x5   :  { %p6460_p3 = por %p6459_p2, %p6458_p1 }
   0x7   :  { %p6461_p4 = pnand %p6460_p3, %p6454_p0 }
   0x9   :  { %6464 = shalt.err (!%p6461_p4)
}
   0xa   :  { %s6491_s28 = smov [#allocation2]  }
   0xb   :  { %25 = dma.vmem_to_smem %s23_s26, 16, %s6491_s28, [#allocation4]  }
   0xc   :  { %6487 = dma.done.wait [#allocation4], 16  }
   0xd   :  { %6488 = vsyncadd [#allocation4], 4294967280 }
   0xe   :  { %39 = sfence }
   0xf   :  { %s5877_s29 = sld [smem:[#allocation2 + $0x1]]  ;;  %s112_s30 = sld [smem:[#allocation2]]  ;;  %v6542_v0 = vld [vmem:[%s10540_s0 + $0x4] sm:$0x3]  ;;  %v6547_v1 = vld [vmem:[%s10540_s0] sm:$0x3] }
  0x10   :  { %v6554_v3 = vld [vmem:[%s10540_s0 + $0x6] sm:$0x3]  ;;  %v6559_v4 = vld [vmem:[%s10540_s0 + $0x2] sm:$0x3]  ;;  %s6492_s15 = smov 127   ;;  %s5875_s24 = sld [smem:[#allocation2 + $0x3]] }
  0x11   :  { %v6576_v10 = vld [vmem:[%s10540_s0 + $0xa] sm:$0x3]  ;;  %v6581_v11 = vld [vmem:[%s10540_s0 + $0x8] sm:$0x3]  ;;  %v6600_v17 = vld [vmem:[%s10540_s0 + $0xe] sm:$0x3] }
  0x12   :  { %v6605_v18 = vld [vmem:[%s10540_s0 + $0xc] sm:$0x3]  ;;  %s5876_s25 = sld [smem:[#allocation2 + $0x6]]  ;;  %v6616_v21 = vld [vmem:[%s10540_s0 + $0x12] sm:$0x3]  ;;  %s6648_s12 = sld [smem:[#allocation2 + $0x4]] }
  0x13   :  { %v6621_v22 = vld [vmem:[%s10540_s0 + $0x10] sm:$0x3]  ;;  %v6632_v25 = vld [vmem:[%s10540_s0 + $0x16] sm:$0x3]  ;;  %v6637_v26 = vld [vmem:[%s10540_s0 + $0x14] sm:$0x3] }
  0x14   :  { %v6646_v29 = vld [vmem:[%s10540_s0 + $0x1a] sm:$0x3]  ;;  %v6663_v34 = vld [vmem:[%s10540_s0 + $0x18] sm:$0x3]  ;;  %v6676_v39 = vld [vmem:[%s10540_s0 + $0x1e] sm:$0x3] }
  0x15   :  { %v6549_v2 = vstv %s5877_s29  ;;  %v6571_v9 = vstv %s112_s30  ;;  %v6697_v50 = vld [vmem:[%s10540_s0 + $0x1c] sm:$0x3]  ;;  %s5880_s26 = sld [smem:[#allocation2 + $0x2]]  ;;  %s5882_s27 = sld [smem:[#allocation2 + $0x8]]  ;;  %vm3033_vm0 = vcmask 130048  }
  0x16   :  { %v218_v5 = vmul.f32 %v6549_v2, %v6542_v0  ;;  %v216_v6 = vmul.f32 %v6549_v2, %v6547_v1  ;;  %v219_v7 = vmul.f32 %v6549_v2, %v6554_v3  ;;  %v217_v8 = vmul.f32 %v6549_v2, %v6559_v4  ;;  %s5886_s28 = sld [smem:[#allocation2 + $0xa]]  ;;  %s6493_s29 = smov 126  }
  0x17   :  { %v116_v12 = vmul.f32 %v6571_v9, %v6542_v0  ;;  %v117_v13 = vmul.f32 %v6571_v9, %v6554_v3  ;;  %v6589_v14 = vmul.f32 %v6571_v9, %v6576_v10  ;;  %v221_v15 = vmul.f32 %v6549_v2, %v6576_v10  ;;  %s5887_s30 = sld [smem:[#allocation2 + $0xd]]  ;;  %s5888_s1 = sld [smem:[#allocation2 + $0x10]] }
  0x18   :  { %252 = vrot.lane.b32.xlu1 %v218_v5, %s6492_s15  ;;  %248 = vrot.lane.b32.xlu0 %v216_v6, %s6492_s15  ;;  %v220_v16 = vmul.f32 %v6549_v2, %v6581_v11  ;;  %v223_v19 = vmul.f32 %v6549_v2, %v6600_v17  ;;  %v222_v20 = vmul.f32 %v6549_v2, %v6605_v18  ;;  %v6654_v31 = vstv %s5875_s24  ;;  %s5879_s24 = sld [smem:[#allocation2 + $0x7]]  ;;  %s5890_s16 = sld [smem:[#allocation2 + $0xe]] }
  0x19   :  { %v225_v23 = vmul.f32 %v6549_v2, %v6616_v21  ;;  %v224_v24 = vmul.f32 %v6549_v2, %v6621_v22  ;;  %v114_v27 = vmul.f32 %v6571_v9, %v6547_v1  ;;  %v227_v28 = vmul.f32 %v6549_v2, %v6632_v25  ;;  %s5891_s17 = sld [smem:[#allocation2 + $0x11]]  ;;  %s5895_s20 = sld [smem:[#allocation2 + $0x13]] }
  0x1a   :  { %v226_v30 = vmul.f32 %v6549_v2, %v6637_v26  ;;  %v6656_v32 = vstv %s5876_s25  ;;  %v115_v33 = vmul.f32 %v6571_v9, %v6559_v4  ;;  %v150_v35 = vmul.f32 %v6654_v31, %v6554_v3  ;;  %s5881_s25 = sld [smem:[#allocation2 + $0x5]]  ;;  %s5896_s23 = sld [smem:[#allocation2 + $0x16]] }
  0x1b   :  { %v184_v36 = vmul.f32 %v6656_v32, %v6581_v11  ;;  %v148_v37 = vmul.f32 %v6654_v31, %v6559_v4  ;;  %v182_v38 = vmul.f32 %v6656_v32, %v6542_v0  ;;  %v151_v40 = vmul.f32 %v6654_v31, %v6581_v11  ;;  %s5898_s9 = sld [smem:[#allocation2 + $0x14]]  ;;  %s5905_s21 = sld [smem:[#allocation2 + $0x1f]] }
  0x1c   :  { %254 = vrot.lane.b32.xlu1 %v219_v7, %s6492_s15  ;;  %250 = vrot.lane.b32.xlu0 %v217_v8, %s6492_s15  ;;  %v185_v41 = vmul.f32 %v6656_v32, %v6576_v10  ;;  %v229_v42 = vmul.f32 %v6549_v2, %v6646_v29  ;;  %v166_v43 = vadd.f32 %v150_v35, %v116_v12  ;;  %v6712_v58 = vstv %s6648_s12  ;;  %s5889_s12 = sld [smem:[#allocation2 + $0xb]]  ;;  %s5892_s10 = sld [smem:[#allocation2 + $0x12]] }
  0x1d   :  { %v164_v44 = vadd.f32 %v148_v37, %v114_v27  ;;  %v149_v45 = vmul.f32 %v6654_v31, %v6542_v0  ;;  %v228_v46 = vmul.f32 %v6549_v2, %v6663_v34  ;;  %v167_v47 = vadd.f32 %v151_v40, %v117_v13  ;;  %s5893_s13 = sld [smem:[#allocation2 + $0x15]]  ;;  %s5894_s14 = sld [smem:[#allocation2 + $0x18]] }
  0x1e   :  { %v183_v48 = vmul.f32 %v6656_v32, %v6554_v3  ;;  %v231_v49 = vmul.f32 %v6549_v2, %v6676_v39  ;;  %v6699_v51 = vadd.f32 %v184_v36, %v166_v43  ;;  %v153_v55 = vmul.f32 %v6654_v31, %v6605_v18  ;;  %s5901_s18 = sld [smem:[#allocation2 + $0x1b]]  ;;  %s6495_s22 = smov [#allocation5]  }
  0x1f   :  { %v6701_v52 = vadd.f32 %v182_v38, %v164_v44  ;;  %v165_v53 = vadd.f32 %v149_v45, %v115_v33  ;;  %v6703_v54 = vadd.f32 %v185_v41, %v167_v47  ;;  %v187_v56 = vmul.f32 %v6656_v32, %v6600_v17 }
  0x20   :  { %258 = vrot.lane.b32.xlu1 %v221_v15, %s6492_s15  ;;  %256 = vrot.lane.b32.xlu0 %v220_v16, %s6492_s15  ;;  %10611 = vst [vmem:[#allocation8_spill] sm:$0xff] %v6699_v51  ;;  %v118_v57 = vmul.f32 %v6571_v9, %v6581_v11  ;;  %v152_v60 = vmul.f32 %v6654_v31, %v6576_v10 }
  0x21   :  { %10612 = vst [vmem:[#allocation9_spill] sm:$0xff] %v6703_v54  ;;  %v6714_v59 = vadd.f32 %v183_v48, %v165_v53  ;;  %v186_v61 = vmul.f32 %v6656_v32, %v6605_v18  ;;  %v230_v62 = vmul.f32 %v6549_v2, %v6697_v50  ;;  %v169_v63 = vadd.f32 %v153_v55, %v6589_v14 }
  0x22   :  { %v121_v5 = vmul.f32 %v6571_v9, %v6600_v17  ;;  %v168_v6 = vadd.f32 %v152_v60, %v118_v57  ;;  %v155_v7 = vmul.f32 %v6654_v31, %v6621_v22  ;;  %v189_v8 = vmul.f32 %v6656_v32, %v6616_v21 }
  0x23   :  { %v120_v12 = vmul.f32 %v6571_v9, %v6605_v18  ;;  %v315_v13 = vmul.f32 %v6712_v58, %v6542_v0  ;;  %v6735_v15 = vadd.f32 %v187_v56, %v169_v63  ;;  %v154_v2 = vmul.f32 %v6654_v31, %v6600_v17 }
  0x24   :  { %262 = vrot.lane.b32.xlu1 %v223_v19, %s6492_s15  ;;  %260 = vrot.lane.b32.xlu0 %v222_v20, %s6492_s15  ;;  %v188_v14 = vmul.f32 %v6656_v32, %v6621_v22  ;;  %v314_v16 = vmul.f32 %v6712_v58, %v6559_v4  ;;  %v6743_v19 = vadd.f32 %v186_v61, %v168_v6 }
  0x25   :  { %10613 = vst [vmem:[#allocation10_spill] sm:$0xff] %v6735_v15  ;;  %v171_v20 = vadd.f32 %v155_v7, %v121_v5  ;;  %v157_v27 = vmul.f32 %v6654_v31, %v6637_v26  ;;  %v122_v33 = vmul.f32 %v6571_v9, %v6621_v22  ;;  %v156_v35 = vmul.f32 %v6654_v31, %v6616_v21 }
  0x26   :  { %10614 = vst [vmem:[#allocation11_spill] sm:$0xff] %v6743_v19  ;;  %v190_v36 = vmul.f32 %v6656_v32, %v6637_v26  ;;  %v317_v37 = vmul.f32 %v6712_v58, %v6581_v11  ;;  %v316_v38 = vmul.f32 %v6712_v58, %v6554_v3  ;;  %v125_v43 = vmul.f32 %v6571_v9, %v6632_v25 }
  0x27   :  { %v159_v44 = vmul.f32 %v6654_v31, %v6663_v34  ;;  %v193_v45 = vmul.f32 %v6656_v32, %v6646_v29  ;;  %v124_v47 = vmul.f32 %v6571_v9, %v6637_v26  ;;  %v158_v48 = vmul.f32 %v6654_v31, %v6632_v25 }
  0x28   :  { %266 = vrot.lane.b32.xlu1 %v225_v23, %s6492_s15  ;;  %264 = vrot.lane.b32.xlu0 %v224_v24, %s6492_s15  ;;  %v123_v23 = vmul.f32 %v6571_v9, %v6616_v21  ;;  %v170_v24 = vadd.f32 %v154_v2, %v120_v12  ;;  %v192_v56 = vmul.f32 %v6656_v32, %v6663_v34 }
  0x29   :  { %v175_v55 = vadd.f32 %v159_v44, %v125_v43  ;;  %v318_v57 = vmul.f32 %v6712_v58, %v6576_v10  ;;  %v174_v60 = vadd.f32 %v158_v48, %v124_v47  ;;  %v127_v61 = vmul.f32 %v6571_v9, %v6646_v29 }
  0x2a   :  { %v6765_v40 = vadd.f32 %v188_v14, %v170_v24  ;;  %v173_v41 = vadd.f32 %v157_v27, %v123_v23  ;;  %v195_v5 = vmul.f32 %v6656_v32, %v6676_v39  ;;  %v126_v6 = vmul.f32 %v6571_v9, %v6663_v34  ;;  %v56_v14 = vld [vmem:[%s10540_s0 + $0x20] sm:$0x3] }
  0x2b   :  { %v6793_v63 = vadd.f32 %v193_v45, %v175_v55  ;;  %v160_v7 = vmul.f32 %v6654_v31, %v6646_v29  ;;  %v6806_v12 = vadd.f32 %v192_v56, %v174_v60  ;;  %v194_v2 = vmul.f32 %v6656_v32, %v6697_v50 }
  0x2c   :  { %270 = vrot.lane.b32.xlu1 %v227_v28, %s6492_s15  ;;  %268 = vrot.lane.b32.xlu0 %v226_v30, %s6492_s15  ;;  %v191_v28 = vmul.f32 %v6656_v32, %v6632_v25  ;;  %v6753_v30 = vadd.f32 %v189_v8, %v171_v20  ;;  %10616 = vst [vmem:[#allocation13_spill] sm:$0xff] %v6765_v40  ;;  %v57_v8 = vld [vmem:[%s10540_s0 + $0x22] sm:$0x3]  ;;  %v6859_v56 = vstv %s5879_s24  ;;  %s5903_s24 = sld [smem:[#allocation2 + $0x21]] }
  0x2d   :  { %10619 = vst [vmem:[#allocation16_spill] sm:$0xff] %v6793_v63  ;;  %10620 = vst [vmem:[#allocation17_spill] sm:$0xff] %v6806_v12  ;;  %v129_v20 = vmul.f32 %v6571_v9, %v6676_v39  ;;  %v163_v24 = vmul.f32 %v6654_v31, %v56_v14  ;;  %v197_v27 = vmul.f32 %v6656_v32, %v57_v8  ;;  %v7151_v63 = vld [vmem:[%s10540_s0 + $0x2e] sm:$0x3] }
  0x2e   :  { %10615 = vst [vmem:[#allocation12_spill] sm:$0xff] %v6753_v30  ;;  %v325_v44 = vmul.f32 %v6712_v58, %v6663_v34  ;;  %v324_v45 = vmul.f32 %v6712_v58, %v6632_v25  ;;  %v327_v47 = vmul.f32 %v6712_v58, %v6697_v50  ;;  %v326_v48 = vmul.f32 %v6712_v58, %v6646_v29 }
  0x2f   :  { %v328_v55 = vmul.f32 %v6712_v58, %v6676_v39  ;;  %10625 = vst [vmem:[#allocation22_spill] sm:$0xff] %v6859_v56  ;;  %v412_v60 = vmul.f32 %v6859_v56, %v6542_v0  ;;  %v420_v8 = vmul.f32 %v6859_v56, %v6637_v26 }
  0x30   :  { %274 = vrot.lane.b32.xlu1 %v229_v42, %s6492_s15  ;;  %272 = vrot.lane.b32.xlu0 %v228_v46, %s6492_s15  ;;  %v172_v42 = vadd.f32 %v156_v35, %v122_v33  ;;  %v6775_v46 = vadd.f32 %v191_v28, %v173_v41  ;;  %v128_v28 = vmul.f32 %v6571_v9, %v6697_v50 }
  0x31   :  { %v162_v35 = vmul.f32 %v6654_v31, %v6676_v39  ;;  %v179_v41 = vadd.f32 %v163_v24, %v129_v20  ;;  %v414_v39 = vmul.f32 %v6859_v56, %v6581_v11  ;;  %v6907_v20 = vstv %s5882_s27  ;;  %s5884_s27 = sld [smem:[#allocation2 + $0xc]] }
  0x32   :  { %10617 = vst [vmem:[#allocation14_spill] sm:$0xff] %v6775_v46  ;;  %v6783_v53 = vadd.f32 %v190_v36, %v172_v42  ;;  %v196_v36 = vmul.f32 %v6656_v32, %v56_v14  ;;  %v322_v32 = vmul.f32 %v6712_v58, %v6616_v21 }
  0x33   :  { %v178_v42 = vadd.f32 %v162_v35, %v128_v28  ;;  %v6832_v9 = vadd.f32 %v197_v27, %v179_v41  ;;  %v6924_v28 = vld [vmem:[%s10540_s0 + $0x26] sm:$0x3]  ;;  %v6950_v41 = vld [vmem:[%s10540_s0 + $0x2a] sm:$0x3] }
  0x34   :  { %278 = vrot.lane.b32.xlu1 %v231_v49, %s6492_s15  ;;  %276 = vrot.lane.b32.xlu0 %v230_v62, %s6492_s15  ;;  %v319_v49 = vmul.f32 %v6712_v58, %v6605_v18  ;;  %10618 = vst [vmem:[#allocation15_spill] sm:$0xff] %v6783_v53  ;;  %v161_v62 = vmul.f32 %v6654_v31, %v6697_v50 }
  0x35   :  { %10623 = vst [vmem:[#allocation20_spill] sm:$0xff] %v6832_v9  ;;  %v6834_v43 = vadd.f32 %v196_v36, %v178_v42  ;;  %v323_v31 = vmul.f32 %v6712_v58, %v6637_v26  ;;  %v6939_v36 = vstv %s5887_s30  ;;  %v6952_v42 = vstv %s5888_s1  ;;  %s5899_s1 = sld [smem:[#allocation2 + $0x17]]  ;;  %s5907_s30 = sld [smem:[#allocation2 + $0x1d]] }
  0x36   :  { %10627 = vst [vmem:[#allocation24_spill] sm:$0xff] %v6939_v36 }
  0x37   :  { %10624 = vst [vmem:[#allocation21_spill] sm:$0xff] %v6834_v43 }
  0x38   :  { %348 = vrot.lane.b32.xlu1 %v315_v13, %s6492_s15  ;;  %346 = vrot.lane.b32.xlu0 %v314_v16, %s6492_s15  ;;  %v177_v13 = vadd.f32 %v161_v62, %v127_v61  ;;  %v176_v16 = vadd.f32 %v160_v7, %v126_v6  ;;  %v415_v61 = vmul.f32 %v6859_v56, %v6576_v10 }
  0x39   :  { %v416_v62 = vmul.f32 %v6859_v56, %v6605_v18  ;;  %v418_v6 = vmul.f32 %v6859_v56, %v6621_v22  ;;  %v421_v7 = vmul.f32 %v6859_v56, %v6632_v25 }
  0x3a   :  { %v6815_v23 = vadd.f32 %v195_v5, %v177_v13  ;;  %v6821_v33 = vadd.f32 %v194_v2, %v176_v16  ;;  %v419_v5 = vmul.f32 %v6859_v56, %v6616_v21  ;;  %v423_v13 = vmul.f32 %v6859_v56, %v6646_v29 }
  0x3b   :  { %v422_v2 = vmul.f32 %v6859_v56, %v6663_v34  ;;  %v6899_v16 = vstv %s5880_s26  ;;  %v424_v29 = vmul.f32 %v6859_v56, %v6697_v50  ;;  %v707_v34 = vmul.f32 %v6907_v20, %v6554_v3  ;;  %s5897_s26 = sld [smem:[#allocation2 + $0x19]] }
  0x3c   :  { %352 = vrot.lane.b32.xlu1 %v317_v37, %s6492_s15  ;;  %350 = vrot.lane.b32.xlu0 %v316_v38, %s6492_s15  ;;  %10621 = vst [vmem:[#allocation18_spill] sm:$0xff] %v6815_v23  ;;  %10622 = vst [vmem:[#allocation19_spill] sm:$0xff] %v6821_v33  ;;  %v321_v37 = vmul.f32 %v6712_v58, %v6621_v22  ;;  %v320_v38 = vmul.f32 %v6712_v58, %v6600_v17  ;;  %v6926_v50 = vstv %s5886_s28  ;;  %s5885_s28 = sld [smem:[#allocation2 + $0xf]] }
  0x3d   :  { %v511_v26 = vmul.f32 %v6899_v16, %v6559_v4  ;;  %v510_v27 = vmul.f32 %v6899_v16, %v6547_v1  ;;  %v907_v35 = vmul.f32 %v6926_v50, %v6924_v28  ;;  %v6937_v1 = vld [vmem:[%s10540_s0 + $0x28] sm:$0x3] }
  0x40   :  { %356 = vrot.lane.b32.xlu1 %v319_v49, %s6492_s15  ;;  %354 = vrot.lane.b32.xlu0 %v318_v57, %s6492_s15  ;;  %v329_v49 = vmul.f32 %v6712_v58, %v56_v14  ;;  %v413_v57 = vmul.f32 %v6859_v56, %v6554_v3  ;;  %v417_v58 = vmul.f32 %v6859_v56, %v6600_v17  ;;  %v6897_v14 = vstv %s5881_s25 }
  0x41   :  { %10626 = vst [vmem:[#allocation23_spill] sm:$0xff] %v6897_v14  ;;  %v609_v25 = vmul.f32 %v6897_v14, %v6542_v0  ;;  %v608_v24 = vmul.f32 %v6897_v14, %v6559_v4  ;;  %v706_v4 = vmul.f32 %v6907_v20, %v6542_v0 }
  0x44   :  { %360 = vrot.lane.b32.xlu1 %v321_v37, %s6492_s15  ;;  %358 = vrot.lane.b32.xlu0 %v320_v38, %s6492_s15  ;;  %v512_v37 = vmul.f32 %v6899_v16, %v6542_v0  ;;  %v1005_v38 = vmul.f32 %v6939_v36, %v6937_v1  ;;  %v1103_v0 = vmul.f32 %v6952_v42, %v6950_v41 }
  0x48   :  { %364 = vrot.lane.b32.xlu1 %v323_v31, %s6492_s15  ;;  %362 = vrot.lane.b32.xlu0 %v322_v32, %s6492_s15  ;;  %v610_v31 = vmul.f32 %v6897_v14, %v6554_v3  ;;  %v6960_v32 = vstv %s5889_s12  ;;  %s5900_s12 = sld [smem:[#allocation2 + $0x1a]] }
  0x49   :  { %10628 = vst [vmem:[#allocation25_spill] sm:$0xff] %v6960_v32 }
  0x4c   :  { %368 = vrot.lane.b32.xlu1 %v325_v44, %s6492_s15  ;;  %366 = vrot.lane.b32.xlu0 %v324_v45, %s6492_s15  ;;  %v708_v44 = vmul.f32 %v6907_v20, %v6581_v11  ;;  %v1201_v45 = vmul.f32 %v6960_v32, %v6924_v28 }
  0x4e   :  { %v7163_v12 = vstv %s5900_s12  ;;  %s5909_s12 = sld [smem:[#allocation2 + $0x23]] }
  0x4f   :  { %10659 = vst [vmem:[#allocation56_spill] sm:$0xff] %v7163_v12 }
  0x50   :  { %372 = vrot.lane.b32.xlu1 %v327_v47, %s6492_s15  ;;  %370 = vrot.lane.b32.xlu0 %v326_v48, %s6492_s15  ;;  %v6968_v47 = vstv %s5890_s16  ;;  %v6973_v48 = vld [vmem:[%s10540_s0 + $0x24] sm:$0x3]  ;;  %s5904_s16 = sld [smem:[#allocation2 + $0x1c]] }
  0x51   :  { %10629 = vst [vmem:[#allocation26_spill] sm:$0xff] %v6973_v48 }
  0x54   :  { %376 = vrot.lane.b32.xlu1 %v329_v49, %s6492_s15  ;;  %374 = vrot.lane.b32.xlu0 %v328_v55, %s6492_s15  ;;  %v1299_v49 = vmul.f32 %v6968_v47, %v6937_v1  ;;  %v906_v55 = vmul.f32 %v6926_v50, %v6973_v48 }
  0x58   :  { %446 = vrot.lane.b32.xlu1 %v413_v57, %s6492_s15  ;;  %444 = vrot.lane.b32.xlu0 %v412_v60, %s6492_s15  ;;  %v6981_v57 = vstv %s5891_s17 }
  0x5c   :  { %450 = vrot.lane.b32.xlu1 %v415_v61, %s6492_s15  ;;  %448 = vrot.lane.b32.xlu0 %v414_v39, %s6492_s15  ;;  %v1397_v39 = vmul.f32 %v6981_v57, %v6950_v41 }
  0x60   :  { %454 = vrot.lane.b32.xlu1 %v417_v58, %s6492_s15  ;;  %452 = vrot.lane.b32.xlu0 %v416_v62, %s6492_s15  ;;  %v1004_v58 = vmul.f32 %v6939_v36, %v6924_v28 }
  0x64   :  { %458 = vrot.lane.b32.xlu1 %v419_v5, %s6492_s15  ;;  %456 = vrot.lane.b32.xlu0 %v418_v6, %s6492_s15  ;;  %v1102_v6 = vmul.f32 %v6952_v42, %v6937_v1 }
  0x68   :  { %462 = vrot.lane.b32.xlu1 %v421_v7, %s6492_s15  ;;  %460 = vrot.lane.b32.xlu0 %v420_v8, %s6492_s15  ;;  %v513_v7 = vmul.f32 %v6899_v16, %v6554_v3  ;;  %v908_v3 = vmul.f32 %v6926_v50, %v6937_v1 }
  0x6c   :  { %466 = vrot.lane.b32.xlu1 %v423_v13, %s6492_s15  ;;  %464 = vrot.lane.b32.xlu0 %v422_v2, %s6492_s15  ;;  %v1200_v2 = vmul.f32 %v6960_v32, %v6973_v48 }
  0x70   :  { %642 = vrot.lane.b32.xlu1 %v609_v25, %s6493_s29  ;;  %544 = vrot.lane.b32.xlu0 %v511_v26, %s6493_s29  ;;  %v611_v25 = vmul.f32 %v6897_v14, %v6581_v11 }
  0x74   :  { %468 = vrot.lane.b32.xlu1 %v424_v29, %s6492_s15  ;;  %740 = vrot.lane.b32.xlu0 %v707_v34, %s6493_s29  ;;  %v709_v34 = vmul.f32 %v6907_v20, %v6576_v10 }
  0x78   :  { %640 = vrot.lane.b32.xlu1 %v608_v24, %s6493_s29  ;;  %542 = vrot.lane.b32.xlu0 %v510_v27, %s6493_s29 }
  0x7c   :  { %940 = vrot.lane.b32.xlu1 %v907_v35, %s6492_s15  ;;  %738 = vrot.lane.b32.xlu0 %v706_v4, %s6493_s29  ;;  %v1006_v35 = vmul.f32 %v6939_v36, %v6950_v41  ;;  %v1298_v4 = vmul.f32 %v6968_v47, %v6924_v28 }
  0x80   :  { %546 = vrot.lane.b32.xlu1 %v512_v37, %s6493_s29  ;;  %1038 = vrot.lane.b32.xlu0 %v1005_v38, %s6492_s15  ;;  %v7036_v37 = vld [vmem:[%s10540_s0 + $0x4a] sm:$0x3]  ;;  %v7038_v38 = vstv %s5895_s20 }
  0x84   :  { %644 = vrot.lane.b32.xlu1 %v610_v31, %s6493_s29  ;;  %1136 = vrot.lane.b32.xlu0 %v1103_v0, %s6492_s15 }
  0x88   :  { %742 = vrot.lane.b32.xlu1 %v708_v44, %s6493_s29  ;;  %1234 = vrot.lane.b32.xlu0 %v1201_v45, %s6493_s29  ;;  %v1597_v44 = vmul.f32 %v7038_v38, %v7036_v37  ;;  %v1396_v45 = vmul.f32 %v6981_v57, %v6937_v1 }
  0x8a   :  { %v6983_v60 = vpop.permute.xlu1 %252  ;;  %v6985_v61 = vpop.permute.xlu0 %248 }
  0x8b   :  { %10630 = vst [vmem:[#allocation27_spill] sm:$0xff] %v6983_v60 }
  0x8c   :  { %1332 = vrot.lane.b32.xlu1 %v1299_v49, %s6493_s29  ;;  %938 = vrot.lane.b32.xlu0 %v906_v55, %s6492_s15  ;;  %v7053_v49 = vld [vmem:[%s10540_s0 + $0x2c] sm:$0x3] }
  0x8d   :  { %v1398_v33 = vmul.f32 %v6981_v57, %v7053_v49 }
  0x8e   :  { %v6993_v62 = vpop.permute.xlu1 %254  ;;  %v6995_v5 = vpop.permute.xlu0 %250 }
  0x8f   :  { %10631 = vst [vmem:[#allocation28_spill] sm:$0xff] %v6993_v62 }
  0x90   :  { %1430 = vrot.lane.b32.xlu1 %v1397_v39, %s6493_s29  ;;  %1036 = vrot.lane.b32.xlu0 %v1004_v58, %s6492_s15  ;;  %v1104_v58 = vmul.f32 %v6952_v42, %v7053_v49 }
  0x92   :  { %v7003_v8 = vpop.permute.xlu1 %258  ;;  %v7005_v13 = vpop.permute.xlu0 %256 }
  0x93   :  { %10632 = vst [vmem:[#allocation29_spill] sm:$0xff] %v7003_v8  ;;  %10633 = vst [vmem:[#allocation30_spill] sm:$0xff] %v7005_v13 }
  0x94   :  { %1134 = vrot.lane.b32.xlu1 %v1102_v6, %s6492_s15  ;;  %548 = vrot.lane.b32.xlu0 %v513_v7, %s6493_s29  ;;  %v514_v6 = vmul.f32 %v6899_v16, %v6581_v11  ;;  %v7068_v7 = vld [vmem:[%s10540_s0 + $0x4c] sm:$0x3] }
  0x95   :  { %10642 = vst [vmem:[#allocation39_spill] sm:$0xff] %v7068_v7  ;;  %v1598_v30 = vmul.f32 %v7038_v38, %v7068_v7 }
  0x96   :  { %v7013_v26 = vpop.permute.xlu1 %262  ;;  %v7015_v29 = vpop.permute.xlu0 %260 }
  0x97   :  { %10634 = vst [vmem:[#allocation31_spill] sm:$0xff] %v7013_v26  ;;  %10635 = vst [vmem:[#allocation32_spill] sm:$0xff] %v7015_v29 }
  0x98   :  { %1232 = vrot.lane.b32.xlu1 %v1200_v2, %s6493_s29  ;;  %646 = vrot.lane.b32.xlu0 %v611_v25, %s6493_s29  ;;  %v7070_v2 = vstv %s5896_s23 }
  0x99   :  { %10643 = vst [vmem:[#allocation40_spill] sm:$0xff] %v7070_v2  ;;  %v1695_v11 = vmul.f32 %v7070_v2, %v7068_v7 }
  0x9a   :  { %v7023_v24 = vpop.permute.xlu1 %266  ;;  %v7025_v27 = vpop.permute.xlu0 %264 }
  0x9b   :  { %10636 = vst [vmem:[#allocation33_spill] sm:$0xff] %v7023_v24  ;;  %10637 = vst [vmem:[#allocation34_spill] sm:$0xff] %v7025_v27  ;;  %v7136_v24 = vld [vmem:[%s10540_s0 + $0x48] sm:$0x3] }
  0x9c   :  { %942 = vrot.lane.b32.xlu1 %v908_v3, %s6492_s15  ;;  %744 = vrot.lane.b32.xlu0 %v709_v34, %s6493_s29  ;;  %v612_v34 = vmul.f32 %v6897_v14, %v6576_v10  ;;  %10654 = vst [vmem:[#allocation51_spill] sm:$0xff] %v7136_v24 }
  0x9e   :  { %v7040_v31 = vpop.permute.xlu1 %270  ;;  %v7042_v0 = vpop.permute.xlu0 %268 }
  0x9f   :  { %10638 = vst [vmem:[#allocation35_spill] sm:$0xff] %v7040_v31  ;;  %10639 = vst [vmem:[#allocation36_spill] sm:$0xff] %v7042_v0 }
  0xa0   :  { %1040 = vrot.lane.b32.xlu1 %v1006_v35, %s6492_s15  ;;  %1330 = vrot.lane.b32.xlu0 %v1298_v4, %s6493_s29  ;;  %v7085_v35 = vld [vmem:[%s10540_s0 + $0x4e] sm:$0x3]  ;;  %v7087_v4 = vstv %s5897_s26  ;;  %s5906_s26 = sld [smem:[#allocation2 + $0x22]] }
  0xa1   :  { %10646 = vst [vmem:[#allocation43_spill] sm:$0xff] %v7087_v4 }
  0xa2   :  { %v7055_v55 = vpop.permute.xlu1 %274  ;;  %v7057_v39 = vpop.permute.xlu0 %272 }
  0xa3   :  { %10640 = vst [vmem:[#allocation37_spill] sm:$0xff] %v7055_v55  ;;  %10641 = vst [vmem:[#allocation38_spill] sm:$0xff] %v7057_v39 }
  0xa4   :  { %1630 = vrot.lane.b32.xlu1 %v1597_v44, %s6492_s15  ;;  %1428 = vrot.lane.b32.xlu0 %v1396_v45, %s6493_s29 }
  0xa6   :  { %v7072_v25 = vpop.permute.xlu1 %278  ;;  %v7074_v3 = vpop.permute.xlu0 %276  ;;  %v7324_v19 = vstv %s5906_s26  ;;  %s5883_s26 = sld [smem:[#allocation2 + $0x9]] }
  0xa7   :  { %10644 = vst [vmem:[#allocation41_spill] sm:$0xff] %v7072_v25  ;;  %10645 = vst [vmem:[#allocation42_spill] sm:$0xff] %v7074_v3  ;;  %v909_v25 = vmul.f32 %v6926_v50, %v6950_v41 }
  0xa8   :  { %1138 = vrot.lane.b32.xlu1 %v1104_v58, %s6492_s15  ;;  %550 = vrot.lane.b32.xlu0 %v514_v6, %s6493_s29  ;;  %v1793_v58 = vmul.f32 %v7087_v4, %v7085_v35  ;;  %v1202_v6 = vmul.f32 %v6960_v32, %v6937_v1 }
  0xaa   :  { %v7089_v44 = vpop.permute.xlu1 %348  ;;  %v7091_v45 = vpop.permute.xlu0 %346 }
  0xac   :  { %648 = vrot.lane.b32.xlu1 %v612_v34, %s6493_s29  ;;  %1728 = vrot.lane.b32.xlu0 %v1695_v11, %s6492_s15  ;;  %v710_v34 = vmul.f32 %v6907_v20, %v6605_v18  ;;  %v7109_v11 = vstv %s5898_s9 }
  0xad   :  { %v1892_v13 = vmul.f32 %v7109_v11, %v7068_v7 }
  0xae   :  { %v7099_v3 = vpop.permute.xlu1 %352  ;;  %v7101_v43 = vpop.permute.xlu0 %350 }
  0xaf   :  { %10647 = vst [vmem:[#allocation44_spill] sm:$0xff] %v7099_v3  ;;  %10648 = vst [vmem:[#allocation45_spill] sm:$0xff] %v7101_v43 }
  0xb0   :  { %1826 = vrot.lane.b32.xlu1 %v1793_v58, %s6492_s15  ;;  %1236 = vrot.lane.b32.xlu0 %v1202_v6, %s6493_s29  ;;  %v1891_v58 = vmul.f32 %v7109_v11, %v7036_v37  ;;  %v1300_v6 = vmul.f32 %v6968_v47, %v6950_v41 }
  0xb2   :  { %v7111_v9 = vpop.permute.xlu1 %356  ;;  %v7113_v55 = vpop.permute.xlu0 %354 }
  0xb3   :  { %10649 = vst [vmem:[#allocation46_spill] sm:$0xff] %v7111_v9  ;;  %10650 = vst [vmem:[#allocation47_spill] sm:$0xff] %v7113_v55  ;;  %v7282_v9 = vstv %s5905_s21  ;;  %s5902_s21 = sld [smem:[#allocation2 + $0x1e]] }
  0xb4   :  { %944 = vrot.lane.b32.xlu1 %v909_v25, %s6492_s15  ;;  %746 = vrot.lane.b32.xlu0 %v710_v34, %s6493_s29  ;;  %v1007_v25 = vmul.f32 %v6939_v36, %v7053_v49  ;;  %v7131_v34 = vstv %s5899_s1  ;;  %10677 = vst [vmem:[#allocation74_spill] sm:$0xff] %v7282_v9  ;;  %s5908_s1 = sld [smem:[#allocation2 + $0x20]] }
  0xb5   :  { %10653 = vst [vmem:[#allocation50_spill] sm:$0xff] %v7131_v34 }
  0xb6   :  { %v7121_v23 = vpop.permute.xlu1 %360  ;;  %v7123_v39 = vpop.permute.xlu0 %358 }
  0xb7   :  { %10651 = vst [vmem:[#allocation48_spill] sm:$0xff] %v7121_v23  ;;  %10652 = vst [vmem:[#allocation49_spill] sm:$0xff] %v7123_v39  ;;  %v1008_v23 = vmul.f32 %v6939_v36, %v7151_v63 }
  0xb8   :  { %1924 = vrot.lane.b32.xlu1 %v1891_v58, %s6493_s29  ;;  %1334 = vrot.lane.b32.xlu0 %v1300_v6, %s6493_s29  ;;  %v1989_v58 = vmul.f32 %v7131_v34, %v7068_v7  ;;  %v1596_v6 = vmul.f32 %v7038_v38, %v7136_v24 }
  0xba   :  { %v7138_v46 = vpop.permute.xlu1 %364  ;;  %v7140_v31 = vpop.permute.xlu0 %362 }
  0xbb   :  { %10655 = vst [vmem:[#allocation52_spill] sm:$0xff] %v7138_v46  ;;  %10656 = vst [vmem:[#allocation53_spill] sm:$0xff] %v7140_v31 }
  0xbc   :  { %1432 = vrot.lane.b32.xlu1 %v1398_v33, %s6493_s29  ;;  %1042 = vrot.lane.b32.xlu0 %v1007_v25, %s6492_s15  ;;  %v1105_v33 = vmul.f32 %v6952_v42, %v7151_v63  ;;  %v515_v25 = vmul.f32 %v6899_v16, %v6576_v10  ;;  %v1203_v10 = vmul.f32 %v6960_v32, %v6950_v41 }
  0xbe   :  { %v7153_v0 = vpop.permute.xlu1 %368  ;;  %v7155_v46 = vpop.permute.xlu0 %366 }
  0xbf   :  { %10657 = vst [vmem:[#allocation54_spill] sm:$0xff] %v7153_v0  ;;  %10658 = vst [vmem:[#allocation55_spill] sm:$0xff] %v7155_v46 }
  0xc0   :  { %2022 = vrot.lane.b32.xlu1 %v1989_v58, %s6493_s29  ;;  %1628 = vrot.lane.b32.xlu0 %v1596_v6, %s6492_s15  ;;  %v2087_v58 = vmul.f32 %v7163_v12, %v7085_v35  ;;  %v1694_v6 = vmul.f32 %v7070_v2, %v7036_v37 }
  0xc2   :  { %v7165_v31 = vpop.permute.xlu1 %372  ;;  %v7167_v27 = vpop.permute.xlu0 %370 }
  0xc3   :  { %10660 = vst [vmem:[#allocation57_spill] sm:$0xff] %v7165_v31  ;;  %10661 = vst [vmem:[#allocation58_spill] sm:$0xff] %v7167_v27  ;;  %v1301_v27 = vmul.f32 %v6968_v47, %v7053_v49 }
  0xc4   :  { %1140 = vrot.lane.b32.xlu1 %v1105_v33, %s6492_s15  ;;  %552 = vrot.lane.b32.xlu0 %v515_v25, %s6493_s29  ;;  %v613_v33 = vmul.f32 %v6897_v14, %v6605_v18 }
  0xc6   :  { %v7175_v0 = vpop.permute.xlu1 %376  ;;  %v7177_v46 = vpop.permute.xlu0 %374 }
  0xc7   :  { %10662 = vst [vmem:[#allocation59_spill] sm:$0xff] %v7175_v0  ;;  %10663 = vst [vmem:[#allocation60_spill] sm:$0xff] %v7177_v46  ;;  %v711_v46 = vmul.f32 %v6907_v20, %v6600_v17 }
  0xc8   :  { %2120 = vrot.lane.b32.xlu1 %v2087_v58, %s6493_s29  ;;  %1726 = vrot.lane.b32.xlu0 %v1694_v6, %s6492_s15  ;;  %v1792_v58 = vmul.f32 %v7087_v4, %v7068_v7 }
  0xca   :  { %v7185_v25 = vpop.permute.xlu1 %446  ;;  %v7187_v31 = vpop.permute.xlu0 %444 }
  0xcb   :  { %10664 = vst [vmem:[#allocation61_spill] sm:$0xff] %v7187_v31  ;;  %v7434_v31 = vld [vmem:[%s10540_s0 + $0x52] sm:$0x3] }
  0xcc   :  { %1238 = vrot.lane.b32.xlu1 %v1203_v10, %s6493_s29  ;;  %650 = vrot.lane.b32.xlu0 %v613_v33, %s6493_s29  ;;  %v910_v10 = vmul.f32 %v6926_v50, %v7053_v49 }
  0xce   :  { %v7195_v6 = vpop.permute.xlu1 %450  ;;  %v7197_v0 = vpop.permute.xlu0 %448 }
  0xcf   :  { %10665 = vst [vmem:[#allocation62_spill] sm:$0xff] %v7195_v6  ;;  %10666 = vst [vmem:[#allocation63_spill] sm:$0xff] %v7197_v0 }
  0xd0   :  { %748 = vrot.lane.b32.xlu1 %v711_v46, %s6493_s29  ;;  %1824 = vrot.lane.b32.xlu0 %v1792_v58, %s6492_s15  ;;  %v1890_v46 = vmul.f32 %v7109_v11, %v7136_v24 }
  0xd2   :  { %v7205_v33 = vpop.permute.xlu1 %454  ;;  %v7207_v53 = vpop.permute.xlu0 %452 }
  0xd3   :  { %10667 = vst [vmem:[#allocation64_spill] sm:$0xff] %v7205_v33  ;;  %10668 = vst [vmem:[#allocation65_spill] sm:$0xff] %v7207_v53  ;;  %v1204_v33 = vmul.f32 %v6960_v32, %v7053_v49 }
  0xd4   :  { %1336 = vrot.lane.b32.xlu1 %v1301_v27, %s6493_s29  ;;  %946 = vrot.lane.b32.xlu0 %v910_v10, %s6492_s15  ;;  %v1399_v27 = vmul.f32 %v6981_v57, %v7151_v63 }
  0xd6   :  { %v7215_v58 = vpop.permute.xlu1 %458  ;;  %v7217_v26 = vpop.permute.xlu0 %456 }
  0xd7   :  { %10669 = vst [vmem:[#allocation66_spill] sm:$0xff] %v7215_v58  ;;  %10670 = vst [vmem:[#allocation67_spill] sm:$0xff] %v7217_v26  ;;  %v7238_v58 = vld [vmem:[%s10540_s0 + $0x30] sm:$0x3] }
  0xd8   :  { %1044 = vrot.lane.b32.xlu1 %v1008_v23, %s6492_s15  ;;  %1922 = vrot.lane.b32.xlu0 %v1890_v46, %s6493_s29  ;;  %v516_v23 = vmul.f32 %v6899_v16, %v6605_v18  ;;  %v1988_v46 = vmul.f32 %v7131_v34, %v7036_v37  ;;  %v1106_v18 = vmul.f32 %v6952_v42, %v7238_v58 }
  0xda   :  { %v7225_v10 = vpop.permute.xlu1 %462  ;;  %v7227_v39 = vpop.permute.xlu0 %460 }
  0xdb   :  { %10671 = vst [vmem:[#allocation68_spill] sm:$0xff] %v7225_v10  ;;  %10672 = vst [vmem:[#allocation69_spill] sm:$0xff] %v7227_v39  ;;  %v7255_v39 = vstv %s5904_s16 }
  0xdc   :  { %1632 = vrot.lane.b32.xlu1 %v1598_v30, %s6492_s15  ;;  %1434 = vrot.lane.b32.xlu0 %v1399_v27, %s6493_s29  ;;  %v1696_v30 = vmul.f32 %v7070_v2, %v7085_v35  ;;  %v7253_v27 = vld [vmem:[%s10540_s0 + $0x6e] sm:$0x3]  ;;  %10675 = vst [vmem:[#allocation72_spill] sm:$0xff] %v7255_v39 }
  0xde   :  { %v7240_v26 = vpop.permute.xlu1 %466  ;;  %v7242_v10 = vpop.permute.xlu0 %464 }
  0xdf   :  { %10673 = vst [vmem:[#allocation70_spill] sm:$0xff] %v7240_v26  ;;  %10674 = vst [vmem:[#allocation71_spill] sm:$0xff] %v7242_v10 }
  0xe0   :  { %554 = vrot.lane.b32.xlu1 %v516_v23, %s6493_s29  ;;  %2020 = vrot.lane.b32.xlu0 %v1988_v46, %s6493_s29  ;;  %v2287_v23 = vmul.f32 %v7255_v39, %v7253_v27  ;;  %v2086_v46 = vmul.f32 %v7163_v12, %v7068_v7 }
  0xe2   :  { %v7257_v26 = vpop.permute.xlu1 %642  ;;  %v7259_v10 = vpop.permute.xlu0 %544 }
  0xe4   :  { %1730 = vrot.lane.b32.xlu1 %v1696_v30, %s6492_s15  ;;  %1142 = vrot.lane.b32.xlu0 %v1106_v18, %s6492_s15  ;;  %v614_v30 = vmul.f32 %v6897_v14, %v6600_v17  ;;  %v7280_v18 = vld [vmem:[%s10540_s0 + $0x70] sm:$0x3] }
  0xe5   :  { %v2385_v49 = vmul.f32 %v7282_v9, %v7280_v18 }
  0xe6   :  { %v7267_v29 = vpop.permute.xlu1 %468  ;;  %v7269_v40 = vpop.permute.xlu0 %740 }
  0xe7   :  { %10676 = vst [vmem:[#allocation73_spill] sm:$0xff] %v7267_v29  ;;  %v7287_v29 = vld [vmem:[%s10540_s0 + $0x50] sm:$0x3] }
  0xe8   :  { %2320 = vrot.lane.b32.xlu1 %v2287_v23, %s6492_s15  ;;  %2118 = vrot.lane.b32.xlu0 %v2086_v46, %s6493_s29  ;;  %v1794_v8 = vmul.f32 %v7087_v4, %v7287_v29 }
  0xea   :  { %v7289_v23 = vpop.permute.xlu1 %640  ;;  %v7291_v46 = vpop.permute.xlu0 %542 }
  0xeb   :  { %10678 = vst [vmem:[#allocation75_spill] sm:$0xff] %v7289_v23  ;;  %10679 = vst [vmem:[#allocation76_spill] sm:$0xff] %v7291_v46  ;;  %v5930_v23 = vld [vmem:[%s10543_s3 + $0x60] sm:$0xff]  ;;  %v5928_v46 = vld [vmem:[%s10543_s3 + $0x50] sm:$0xff] }
  0xec   :  { %1240 = vrot.lane.b32.xlu1 %v1204_v33, %s6493_s29  ;;  %652 = vrot.lane.b32.xlu0 %v614_v30, %s6493_s29  ;;  %v911_v33 = vmul.f32 %v6926_v50, %v7151_v63  ;;  %v712_v30 = vmul.f32 %v6907_v20, %v6621_v22 }
  0xee   :  { %v7299_v15 = vpop.permute.xlu1 %940  ;;  %v7301_v56 = vpop.permute.xlu0 %738 }
  0xef   :  { %10680 = vst [vmem:[#allocation77_spill] sm:$0xff] %v7301_v56 }
  0xf0   :  { %2418 = vrot.lane.b32.xlu1 %v2385_v49, %s6492_s15  ;;  %1828 = vrot.lane.b32.xlu0 %v1794_v8, %s6492_s15  ;;  %v1302_v8 = vmul.f32 %v6968_v47, %v7151_v63  ;;  %v7322_v49 = vld [vmem:[%s10540_s0 + $0x72] sm:$0x3] }
  0xf2   :  { %v7309_v53 = vpop.permute.xlu1 %546  ;;  %v7311_v55 = vpop.permute.xlu0 %1038 }
  0xf3   :  { %10681 = vst [vmem:[#allocation78_spill] sm:$0xff] %v7309_v53 }
  0xf4   :  { %948 = vrot.lane.b32.xlu1 %v911_v33, %s6492_s15  ;;  %750 = vrot.lane.b32.xlu0 %v712_v30, %s6493_s29  ;;  %v1009_v33 = vmul.f32 %v6939_v36, %v7238_v58  ;;  %v2483_v30 = vmul.f32 %v7324_v19, %v7322_v49 }
  0xf6   :  { %v7326_v6 = vpop.permute.xlu1 %644  ;;  %v7328_v3 = vpop.permute.xlu0 %1136 }
  0xf7   :  { %10682 = vst [vmem:[#allocation79_spill] sm:$0xff] %v7326_v6  ;;  %v1599_v6 = vmul.f32 %v7038_v38, %v7085_v35 }
  0xf8   :  { %1926 = vrot.lane.b32.xlu1 %v1892_v13, %s6493_s29  ;;  %1338 = vrot.lane.b32.xlu0 %v1302_v8, %s6493_s29  ;;  %v1400_v13 = vmul.f32 %v6981_v57, %v7238_v58  ;;  %v7346_v8 = vstv %s5907_s30 }
  0xf9   :  { %10684 = vst [vmem:[#allocation81_spill] sm:$0xff] %v7346_v8 }
  0xfa   :  { %v7336_v62 = vpop.permute.xlu1 %742  ;;  %v7338_v54 = vpop.permute.xlu0 %1234 }
  0xfb   :  { %10683 = vst [vmem:[#allocation80_spill] sm:$0xff] %v7336_v62  ;;  %v7361_v62 = vld [vmem:[%s10540_s0 + $0x32] sm:$0x3] }
  0xfc   :  { %1046 = vrot.lane.b32.xlu1 %v1009_v33, %s6492_s15  ;;  %2516 = vrot.lane.b32.xlu0 %v2483_v30, %s6492_s15  ;;  %v2581_v33 = vmul.f32 %v7346_v8, %v7253_v27  ;;  %v1990_v30 = vmul.f32 %v7131_v34, %v7085_v35 }
  0xfe   :  { %v7348_v53 = vpop.permute.xlu1 %1332  ;;  %v7350_v0 = vpop.permute.xlu0 %938 }
  0xff   :  { %10685 = vst [vmem:[#allocation82_spill] sm:$0xff] %v7350_v0 }
 0x100   :  { %1634 = vrot.lane.b32.xlu1 %v1599_v6, %s6492_s15  ;;  %1436 = vrot.lane.b32.xlu0 %v1400_v13, %s6493_s29  ;;  %v1107_v6 = vmul.f32 %v6952_v42, %v7361_v62  ;;  %v517_v13 = vmul.f32 %v6899_v16, %v6600_v17  ;;  %v7388_v17 = vld [vmem:[%s10540_s0 + $0x6c] sm:$0x3] }
 0x101   :  { %10690 = vst [vmem:[#allocation87_spill] sm:$0xff] %v7388_v17 }
 0x102   :  { %v7363_v43 = vpop.permute.xlu1 %1430  ;;  %v7365_v60 = vpop.permute.xlu0 %1036 }
 0x103   :  { %10686 = vst [vmem:[#allocation83_spill] sm:$0xff] %v7365_v60  ;;  %v2088_v60 = vmul.f32 %v7163_v12, %v7287_v29 }
 0x104   :  { %2614 = vrot.lane.b32.xlu1 %v2581_v33, %s6493_s29  ;;  %2024 = vrot.lane.b32.xlu0 %v1990_v30, %s6493_s29  ;;  %v1697_v33 = vmul.f32 %v7070_v2, %v7287_v29  ;;  %v7383_v30 = vstv %s5908_s1 }
 0x105   :  { %10689 = vst [vmem:[#allocation86_spill] sm:$0xff] %v7383_v30 }
 0x106   :  { %v7373_v51 = vpop.permute.xlu1 %1134  ;;  %v7375_v24 = vpop.permute.xlu0 %548 }
 0x107   :  { %10687 = vst [vmem:[#allocation84_spill] sm:$0xff] %v7373_v51  ;;  %10688 = vst [vmem:[#allocation85_spill] sm:$0xff] %v7375_v24 }
 0x108   :  { %1144 = vrot.lane.b32.xlu1 %v1107_v6, %s6492_s15  ;;  %556 = vrot.lane.b32.xlu0 %v517_v13, %s6493_s29  ;;  %v2679_v6 = vmul.f32 %v7383_v30, %v7280_v18  ;;  %v2286_v13 = vmul.f32 %v7255_v39, %v7388_v17 }
 0x10a   :  { %v7390_v51 = vpop.permute.xlu1 %1232  ;;  %v7392_v24 = vpop.permute.xlu0 %646 }
 0x10b   :  { %10691 = vst [vmem:[#allocation88_spill] sm:$0xff] %v7390_v51  ;;  %10692 = vst [vmem:[#allocation89_spill] sm:$0xff] %v7392_v24  ;;  %v5927_v51 = vld [vmem:[%s10543_s3 + $0x48] sm:$0xff]  ;;  %v1205_v24 = vmul.f32 %v6960_v32, %v7151_v63  ;;  %v615_v63 = vmul.f32 %v6897_v14, %v6621_v22 }
 0x10c   :  { %2122 = vrot.lane.b32.xlu1 %v2088_v60, %s6493_s29  ;;  %1732 = vrot.lane.b32.xlu0 %v1697_v33, %s6492_s15  ;;  %v5931_v60 = vld [vmem:[%s10543_s3 + $0x68] sm:$0xff]  ;;  %v5929_v33 = vld [vmem:[%s10543_s3 + $0x58] sm:$0xff] }
 0x10d   :  { %v6079_v48 = vpack.c.bf16 %v5931_v60, %v5927_v51 }
 0x10e   :  { %v7400_v0 = vpop.permute.xlu1 %942  ;;  %v7402_v56 = vpop.permute.xlu0 %744 }
 0x10f   :  { %10693 = vst [vmem:[#allocation90_spill] sm:$0xff] %v7400_v0  ;;  %10694 = vst [vmem:[#allocation91_spill] sm:$0xff] %v7402_v56  ;;  %v5933_v56 = vld [vmem:[%s10543_s3 + $0x78] sm:$0xff]  ;;  %v5926_v0 = vld [vmem:[%s10543_s3 + $0x40] sm:$0xff]  ;;  %6080 = vmatprep.subr.bf16.mxu0 %v6079_v48  ;;  %v1795_v48 = vmul.f32 %v7087_v4, %v7434_v31 }
 0x110   :  { %2712 = vrot.lane.b32.xlu1 %v2679_v6, %s6493_s29  ;;  %2318 = vrot.lane.b32.xlu0 %v2286_v13, %s6492_s15  ;;  %v6083_v51 = vpack.c.bf16 %v5933_v56, %v5929_v33  ;;  %v6081_v60 = vpack.c.bf16 %v5930_v23, %v5926_v0  ;;  %v5932_v6 = vld [vmem:[%s10543_s3 + $0x70] sm:$0xff]  ;;  %v2384_v56 = vmul.f32 %v7282_v9, %v7253_v27  ;;  %v7449_v0 = vstv %s5909_s12 }
 0x111   :  { %v6085_v22 = vpack.c.bf16 %v5932_v6, %v5928_v46  ;;  %10697 = vst [vmem:[#allocation94_spill] sm:$0xff] %v7449_v0  ;;  %v10554_v23 = vmov 0.0   ;;  %v2777_v46 = vmul.f32 %v7449_v0, %v7322_v49  ;;  %v1303_v6 = vmul.f32 %v6968_v47, %v7238_v58 }
 0x112   :  { %v7439_v13 = vpop.permute.xlu1 %1040  ;;  %v7441_v7 = vpop.permute.xlu0 %1330  ;;  %6084 = vmatprep.subr.bf16.mxu1 %v6083_v51  ;;  %6082 = vmatpush1.bf16.msra.mxu0 %v6081_v60 }
 0x113   :  { %10695 = vst [vmem:[#allocation92_spill] sm:$0xff] %v7439_v13  ;;  %10696 = vst [vmem:[#allocation93_spill] sm:$0xff] %v7441_v7  ;;  %6086 = vmatpush1.bf16.msra.mxu1 %v6085_v22  ;;  %3101 = vmatprep.mubr.f32.mxu0 %v10554_v23  ;;  %v912_v22 = vmul.f32 %v6926_v50, %v7238_v58 }
 0x114   :  { %1242 = vrot.lane.b32.xlu1 %v1205_v24, %s6493_s29  ;;  %654 = vrot.lane.b32.xlu0 %v615_v63, %s6493_s29  ;;  %v713_v24 = vmul.f32 %v6907_v20, %v6616_v21 }
 0x115   :  { %3172 = vmatprep.mubr.f32.mxu1 %v10554_v23 }
 0x116   :  { %v7452_v33 = vpop.permute.xlu1 %1630  ;;  %v7454_v51 = vpop.permute.xlu0 %1428 }
 0x117   :  { %10698 = vst [vmem:[#allocation95_spill] sm:$0xff] %v7454_v51  ;;  %v3017_v51 = vld [vmem:[%s10543_s3 + $0x8] sm:$0xff] }
 0x118   :  { %2416 = vrot.lane.b32.xlu1 %v2384_v56, %s6492_s15  ;;  %1830 = vrot.lane.b32.xlu0 %v1795_v48, %s6492_s15  ;;  %v2482_v48 = vmul.f32 %v7324_v19, %v7280_v18 }
 0x11a   :  { %v7463_v63 = vpop.permute.xlu1 %1138  ;;  %v7465_v60 = vpop.permute.xlu0 %550 }
 0x11b   :  { %10699 = vst [vmem:[#allocation96_spill] sm:$0xff] %v7463_v63  ;;  %10700 = vst [vmem:[#allocation97_spill] sm:$0xff] %v7465_v60 }
 0x11c   :  { %752 = vrot.lane.b32.xlu1 %v713_v24, %s6493_s29  ;;  %2810 = vrot.lane.b32.xlu0 %v2777_v46, %s6493_s29  ;;  %v1893_v24 = vmul.f32 %v7109_v11, %v7085_v35 }
 0x11e   :  { %v7473_v56 = vpop.permute.xlu1 %648  ;;  %v7475_v21 = vpop.permute.xlu0 %1728 }
 0x11f   :  { %10701 = vst [vmem:[#allocation98_spill] sm:$0xff] %v7473_v56  ;;  %v1401_v56 = vmul.f32 %v6981_v57, %v7361_v62 }
 0x120   :  { %1340 = vrot.lane.b32.xlu1 %v1303_v6, %s6493_s29  ;;  %950 = vrot.lane.b32.xlu0 %v912_v22, %s6492_s15  ;;  %v1010_v6 = vmul.f32 %v6939_v36, %v7361_v62 }
 0x122   :  { %v7483_v46 = vpop.permute.xlu1 %1826  ;;  %v7485_v23 = vpop.permute.xlu0 %1236 }
 0x123   :  { %10702 = vst [vmem:[#allocation99_spill] sm:$0xff] %v7485_v23  ;;  %v1991_v23 = vmul.f32 %v7131_v34, %v7287_v29 }
 0x124   :  { %2514 = vrot.lane.b32.xlu1 %v2482_v48, %s6492_s15  ;;  %1928 = vrot.lane.b32.xlu0 %v1893_v24, %s6493_s29  ;;  %v1600_v48 = vmul.f32 %v7038_v38, %v7287_v29 }
 0x126   :  { %v7493_v22 = vpop.permute.xlu1 %944  ;;  %v7495_v60 = vpop.permute.xlu0 %746 }
 0x127   :  { %10703 = vst [vmem:[#allocation100_spill] sm:$0xff] %v7493_v22  ;;  %10704 = vst [vmem:[#allocation101_spill] sm:$0xff] %v7495_v60  ;;  %v2580_v60 = vmul.f32 %v7346_v8, %v7388_v17  ;;  %v7518_v22 = vld [vmem:[%s10540_s0 + $0x34] sm:$0x3] }
 0x128   :  { %1438 = vrot.lane.b32.xlu1 %v1401_v56, %s6493_s29  ;;  %1048 = vrot.lane.b32.xlu0 %v1010_v6, %s6492_s15  ;;  %v6404_v56 = vld [vmem:[%s10540_s0 + $0x10] sm:$0x3] }
 0x129   :  { %v518_v6 = vmul.f32 %v6404_v56, %v6899_v16 }
 0x12a   :  { %v7503_v24 = vpop.permute.xlu1 %1924  ;;  %v7505_v63 = vpop.permute.xlu0 %1334 }
 0x12b   :  { %10705 = vst [vmem:[#allocation102_spill] sm:$0xff] %v7503_v24  ;;  %10706 = vst [vmem:[#allocation103_spill] sm:$0xff] %v7505_v63 }
 0x12c   :  { %2026 = vrot.lane.b32.xlu1 %v1991_v23, %s6493_s29  ;;  %1636 = vrot.lane.b32.xlu0 %v1600_v48, %s6492_s15  ;;  %v1698_v23 = vmul.f32 %v7070_v2, %v7434_v31  ;;  %v1108_v48 = vmul.f32 %v6952_v42, %v7518_v22 }
 0x12e   :  { %v7520_v13 = vpop.permute.xlu1 %1432  ;;  %v7522_v63 = vpop.permute.xlu0 %1042 }
 0x12f   :  { %10707 = vst [vmem:[#allocation104_spill] sm:$0xff] %v7520_v13  ;;  %10708 = vst [vmem:[#allocation105_spill] sm:$0xff] %v7522_v63  ;;  %v2288_v63 = vmul.f32 %v7255_v39, %v7280_v18 }
 0x130   :  { %558 = vrot.lane.b32.xlu1 %v518_v6, %s6493_s29  ;;  %2612 = vrot.lane.b32.xlu0 %v2580_v60, %s6493_s29  ;;  %v2089_v60 = vmul.f32 %v7163_v12, %v7434_v31 }
 0x132   :  { %v7530_v56 = vpop.permute.xlu1 %2022  ;;  %v7532_v17 = vpop.permute.xlu0 %1628 }
 0x133   :  { %10709 = vst [vmem:[#allocation106_spill] sm:$0xff] %v7530_v56  ;;  %10710 = vst [vmem:[#allocation107_spill] sm:$0xff] %v7532_v17  ;;  %v297_v17 = vadd.f32 %v6995_v5, %v6714_v59  ;;  %v2678_v59 = vmul.f32 %v7383_v30, %v7253_v27 }
 0x134   :  { %1734 = vrot.lane.b32.xlu1 %v1698_v23, %s6492_s15  ;;  %1146 = vrot.lane.b32.xlu0 %v1108_v48, %s6492_s15  ;;  %v3021_v23 = vld [vmem:[%s10543_s3 + $0x28] sm:$0xff]  ;;  %v3019_v48 = vld [vmem:[%s10543_s3 + $0x18] sm:$0xff] }
 0x135   :  { %v6087_v7 = vpack.c.bf16 %v3021_v23, %v3017_v51  ;;  %v395_v51 = vadd.f32 %v7089_v44, %v297_v17  ;;  %v1206_v17 = vmul.f32 %v6960_v32, %v7238_v58  ;;  %v7598_v58 = vstv %s5883_s26 }
 0x136   :  { %v7540_v6 = vpop.permute.xlu1 %1140  ;;  %v7542_v13 = vpop.permute.xlu0 %552 }
 0x137   :  { %10711 = vst [vmem:[#allocation108_spill] sm:$0xff] %v7540_v6  ;;  %10712 = vst [vmem:[#allocation109_spill] sm:$0xff] %v7542_v13  ;;  %v3023_v13 = vld [vmem:[%s10543_s3 + $0x38] sm:$0xff]  ;;  %v7563_v6 = vld [vmem:[%s10540_s0 + $0x12] sm:$0x3]  ;;  %6088 = vmatprep.subr.bf16.mxu0 %v6087_v7  ;;  %v493_v24 = vadd.f32 %v7185_v25, %v395_v51  ;;  %v2776_v25 = vmul.f32 %v7449_v0, %v7280_v18 }
 0x138   :  { %2322 = vrot.lane.b32.xlu1 %v2288_v63, %s6492_s15  ;;  %2124 = vrot.lane.b32.xlu0 %v2089_v60, %s6493_s29  ;;  %v616_v56 = vmul.f32 %v7563_v6, %v6897_v14  ;;  %v6091_v5 = vpack.c.bf16 %v3023_v13, %v3019_v48  ;;  %v7573_v63 = vld [vmem:[%s10540_s0 + $0x54] sm:$0x3] }
 0x139   :  { %v1796_v44 = vmul.f32 %v7087_v4, %v7573_v63  ;;  %v591_v7 = vadd.f32 %v7259_v10, %v493_v24  ;;  %v7611_v51 = vld [vmem:[%s10540_s0 + $0x14] sm:$0x3] }
 0x13a   :  { %v7575_v60 = vpop.permute.xlu1 %2120  ;;  %v7577_v23 = vpop.permute.xlu0 %1726  ;;  %6092 = vmatprep.subr.bf16.mxu1 %v6091_v5  ;;  %v913_v5 = vmul.f32 %v6926_v50, %v7361_v62 }
 0x13b   :  { %10713 = vst [vmem:[#allocation110_spill] sm:$0xff] %v7577_v23 }
 0x13c   :  { %656 = vrot.lane.b32.xlu1 %v616_v56, %s6493_s29  ;;  %2710 = vrot.lane.b32.xlu0 %v2678_v59, %s6493_s29  ;;  %v2386_v56 = vmul.f32 %v7282_v9, %v7322_v49  ;;  %v689_v59 = vadd.f32 %v7257_v26, %v591_v7  ;;  %v714_v26 = vmul.f32 %v7611_v51, %v6907_v20  ;;  %v7618_v7 = vstv %s5884_s27 }
 0x13e   :  { %v7587_v13 = vpop.permute.xlu1 %1238  ;;  %v7589_v48 = vpop.permute.xlu0 %650 }
 0x13f   :  { %10714 = vst [vmem:[#allocation111_spill] sm:$0xff] %v7587_v13  ;;  %10715 = vst [vmem:[#allocation112_spill] sm:$0xff] %v7589_v48  ;;  %v1304_v48 = vmul.f32 %v6968_v47, %v7361_v62 }
 0x140   :  { %1832 = vrot.lane.b32.xlu1 %v1796_v44, %s6492_s15  ;;  %1244 = vrot.lane.b32.xlu0 %v1206_v17, %s6493_s29  ;;  %v805_v44 = vmul.f32 %v7598_v58, %v6924_v28  ;;  %v787_v17 = vadd.f32 %v7269_v40, %v689_v59  ;;  %v839_v40 = vmul.f32 %v7618_v7, %v6937_v1  ;;  %v7635_v59 = vld [vmem:[%s10540_s0 + $0x74] sm:$0x3] }
 0x142   :  { %v7600_v10 = vpop.permute.xlu1 %748  ;;  %v7602_v24 = vpop.permute.xlu0 %1824  ;;  %v821_v13 = vadd.f32 %v805_v44, %v787_v17  ;;  %v2484_v44 = vmul.f32 %v7324_v19, %v7635_v59 }
 0x143   :  { %10716 = vst [vmem:[#allocation113_spill] sm:$0xff] %v7600_v10  ;;  %10717 = vst [vmem:[#allocation114_spill] sm:$0xff] %v7602_v24  ;;  %v1894_v10 = vmul.f32 %v7109_v11, %v7287_v29  ;;  %v1011_v29 = vmul.f32 %v6939_v36, %v7518_v22 }
 0x144   :  { %2808 = vrot.lane.b32.xlu1 %v2776_v25, %s6493_s29  ;;  %2420 = vrot.lane.b32.xlu0 %v2386_v56, %s6492_s15 }
 0x146   :  { %v7620_v25 = vpop.permute.xlu1 %1336  ;;  %v7622_v56 = vpop.permute.xlu0 %946 }
 0x147   :  { %10718 = vst [vmem:[#allocation115_spill] sm:$0xff] %v7620_v25  ;;  %10719 = vst [vmem:[#allocation116_spill] sm:$0xff] %v7622_v56  ;;  %v7637_v56 = vstv %s5885_s28  ;;  %v855_v25 = vadd.f32 %v839_v40, %v821_v13  ;;  %v1992_v13 = vmul.f32 %v7131_v34, %v7434_v31 }
 0x148   :  { %952 = vrot.lane.b32.xlu1 %v913_v5, %s6492_s15  ;;  %754 = vrot.lane.b32.xlu0 %v714_v26, %s6493_s29  ;;  %v873_v17 = vmul.f32 %v7637_v56, %v6950_v41  ;;  %v2582_v41 = vmul.f32 %v7346_v8, %v7280_v18 }
 0x14a   :  { %v7639_v5 = vpop.permute.xlu1 %1044  ;;  %v7641_v26 = vpop.permute.xlu0 %1922 }
 0x14b   :  { %10720 = vst [vmem:[#allocation117_spill] sm:$0xff] %v7639_v5  ;;  %10721 = vst [vmem:[#allocation118_spill] sm:$0xff] %v7641_v26  ;;  %v889_v5 = vadd.f32 %v873_v17, %v855_v25  ;;  %v7675_v25 = vld [vmem:[%s10540_s0 + $0x36] sm:$0x3] }
 0x14c   :  { %1930 = vrot.lane.b32.xlu1 %v1894_v10, %s6493_s29  ;;  %1342 = vrot.lane.b32.xlu0 %v1304_v48, %s6493_s29  ;;  %v1601_v48 = vmul.f32 %v7038_v38, %v7434_v31  ;;  %v1402_v10 = vmul.f32 %v6981_v57, %v7518_v22 }
 0x14d   :  { %v987_v40 = vadd.f32 %v7299_v15, %v889_v5  ;;  %v519_v15 = vmul.f32 %v7563_v6, %v6899_v16  ;;  %v1699_v6 = vmul.f32 %v7070_v2, %v7573_v63 }
 0x14e   :  { %v7651_v24 = vpop.permute.xlu1 %1632  ;;  %v7653_v23 = vpop.permute.xlu0 %1434 }
 0x14f   :  { %10722 = vst [vmem:[#allocation119_spill] sm:$0xff] %v7651_v24  ;;  %10723 = vst [vmem:[#allocation120_spill] sm:$0xff] %v7653_v23  ;;  %v1085_v17 = vadd.f32 %v7311_v55, %v987_v40  ;;  %v7694_v55 = vstv %s5892_s10  ;;  %v1207_v23 = vmul.f32 %v6960_v32, %v7361_v62 }
 0x150   :  { %1050 = vrot.lane.b32.xlu1 %v1011_v29, %s6492_s15  ;;  %2518 = vrot.lane.b32.xlu0 %v2484_v44, %s6492_s15  ;;  %10727 = vst [vmem:[#allocation124_spill] sm:$0xff] %v7694_v55 }
 0x151   :  { %v1183_v5 = vadd.f32 %v7328_v3, %v1085_v17 }
 0x152   :  { %v7661_v26 = vpop.permute.xlu1 %554  ;;  %v7663_v36 = vpop.permute.xlu0 %2020 }
 0x153   :  { %10724 = vst [vmem:[#allocation121_spill] sm:$0xff] %v7661_v26 }
 0x154   :  { %1638 = vrot.lane.b32.xlu1 %v1601_v48, %s6492_s15  ;;  %1440 = vrot.lane.b32.xlu0 %v1402_v10, %s6493_s29  ;;  %v1109_v48 = vmul.f32 %v6952_v42, %v7675_v25 }
 0x156   :  { %v7677_v29 = vpop.permute.xlu1 %1730  ;;  %v7679_v44 = vpop.permute.xlu0 %1142 }
 0x157   :  { %10725 = vst [vmem:[#allocation122_spill] sm:$0xff] %v7677_v29  ;;  %10726 = vst [vmem:[#allocation123_spill] sm:$0xff] %v7679_v44  ;;  %v1281_v44 = vadd.f32 %v7338_v54, %v1183_v5  ;;  %v1495_v54 = vmul.f32 %v7694_v55, %v7036_v37 }
 0x158   :  { %2616 = vrot.lane.b32.xlu1 %v2582_v41, %s6493_s29  ;;  %2028 = vrot.lane.b32.xlu0 %v1992_v13, %s6493_s29  ;;  %v2090_v41 = vmul.f32 %v7163_v12, %v7573_v63 }
 0x159   :  { %v1379_v3 = vadd.f32 %v7348_v53, %v1281_v44  ;;  %v2289_v53 = vmul.f32 %v7255_v39, %v7322_v49  ;;  %v296_v44 = vadd.f32 %v6985_v61, %v6701_v52  ;;  %v617_v52 = vmul.f32 %v7611_v51, %v6897_v14  ;;  %v10734_v61 = vld [vmem:[#allocation61_spill] sm:$0xff] }
 0x15a   :  { %v7689_v10 = vpop.permute.xlu1 %2320  ;;  %v7691_v26 = vpop.permute.xlu0 %2118 }
 0x15b   :  { %v1477_v17 = vadd.f32 %v7363_v43, %v1379_v3  ;;  %v394_v43 = vadd.f32 %v7091_v45, %v296_v44  ;;  %v7739_v45 = vld [vmem:[%s10540_s0 + $0x56] sm:$0x3] }
 0x15c   :  { %1148 = vrot.lane.b32.xlu1 %v1109_v48, %s6492_s15  ;;  %560 = vrot.lane.b32.xlu0 %v519_v15, %s6493_s29  ;;  %v7710_v48 = vstv %s5893_s13  ;;  %v2680_v15 = vmul.f32 %v7383_v30, %v7322_v49 }
 0x15d   :  { %10730 = vst [vmem:[#allocation127_spill] sm:$0xff] %v7710_v48  ;;  %v1511_v3 = vadd.f32 %v1495_v54, %v1477_v17 }
 0x15e   :  { %v7703_v13 = vpop.permute.xlu1 %1240  ;;  %v7705_v40 = vpop.permute.xlu0 %652 }
 0x15f   :  { %10728 = vst [vmem:[#allocation125_spill] sm:$0xff] %v7703_v13  ;;  %10729 = vst [vmem:[#allocation126_spill] sm:$0xff] %v7705_v40  ;;  %v10732_v13 = vld [vmem:[#allocation39_spill] sm:$0xff] }
 0x160   :  { %2126 = vrot.lane.b32.xlu1 %v2090_v41, %s6493_s29  ;;  %1736 = vrot.lane.b32.xlu0 %v1699_v6, %s6492_s15  ;;  %v1529_v41 = vmul.f32 %v7710_v48, %v10732_v13  ;;  %v7727_v6 = vstv %s5894_s14 }
 0x161   :  { %10733 = vst [vmem:[#allocation39_spill] sm:$0xff] %v7727_v6 }
 0x162   :  { %v7720_v5 = vpop.permute.xlu1 %2418  ;;  %v7722_v40 = vpop.permute.xlu0 %1828  ;;  %v1545_v62 = vadd.f32 %v1529_v41, %v1511_v3  ;;  %v2778_v3 = vmul.f32 %v7449_v0, %v7635_v59 }
 0x163   :  { %10731 = vst [vmem:[#allocation128_spill] sm:$0xff] %v7722_v40  ;;  %v492_v40 = vadd.f32 %v10734_v61, %v394_v43  ;;  %v2387_v43 = vmul.f32 %v7282_v9, %v7635_v59  ;;  %v1797_v61 = vmul.f32 %v7087_v4, %v7739_v45 }
 0x164   :  { %2714 = vrot.lane.b32.xlu1 %v2680_v15, %s6493_s29  ;;  %2324 = vrot.lane.b32.xlu0 %v2289_v53, %s6492_s15  ;;  %v10737_v15 = vld [vmem:[#allocation76_spill] sm:$0xff]  ;;  %v1563_v53 = vmul.f32 %v7727_v6, %v7085_v35  ;;  %v7764_v35 = vld [vmem:[%s10540_s0 + $0x16] sm:$0x3] }
 0x165   :  { %v590_v44 = vadd.f32 %v10737_v15, %v492_v40 }
 0x166   :  { %v7741_v54 = vpop.permute.xlu1 %948  ;;  %v7743_v17 = vpop.permute.xlu0 %750  ;;  %v1579_v15 = vadd.f32 %v1563_v53, %v1545_v62  ;;  %v10743_v62 = vld [vmem:[#allocation77_spill] sm:$0xff] }
 0x167   :  { %10735 = vst [vmem:[#allocation61_spill] sm:$0xff] %v7741_v54  ;;  %10736 = vst [vmem:[#allocation129_spill] sm:$0xff] %v7743_v17  ;;  %v10740_v17 = vld [vmem:[#allocation75_spill] sm:$0xff] }
 0x168   :  { %1246 = vrot.lane.b32.xlu1 %v1207_v23, %s6493_s29  ;;  %658 = vrot.lane.b32.xlu0 %v617_v52, %s6493_s29  ;;  %v688_v40 = vadd.f32 %v10740_v17, %v590_v44  ;;  %v715_v23 = vmul.f32 %v7764_v35, %v6907_v20  ;;  %v1677_v41 = vadd.f32 %v7452_v33, %v1579_v15  ;;  %v10742_v44 = vld [vmem:[#allocation26_spill] sm:$0xff] }
 0x169   :  { %v804_v53 = vmul.f32 %v7598_v58, %v10742_v44  ;;  %v914_v33 = vmul.f32 %v6926_v50, %v7518_v22  ;;  %v7789_v44 = vld [vmem:[%s10540_s0 + $0x76] sm:$0x3] }
 0x16a   :  { %v7754_v29 = vpop.permute.xlu1 %1926  ;;  %v7756_v54 = vpop.permute.xlu0 %1338 }
 0x16b   :  { %10738 = vst [vmem:[#allocation76_spill] sm:$0xff] %v7754_v29  ;;  %10739 = vst [vmem:[#allocation130_spill] sm:$0xff] %v7756_v54  ;;  %v1305_v54 = vmul.f32 %v6968_v47, %v7518_v22 }
 0x16c   :  { %2422 = vrot.lane.b32.xlu1 %v2387_v43, %s6492_s15  ;;  %1834 = vrot.lane.b32.xlu0 %v1797_v61, %s6492_s15  ;;  %v786_v43 = vadd.f32 %v10743_v62, %v688_v40  ;;  %v1775_v61 = vadd.f32 %v7475_v21, %v1677_v41  ;;  %v10746_v41 = vld [vmem:[#allocation102_spill] sm:$0xff] }
 0x16e   :  { %v7771_v52 = vpop.permute.xlu1 %1046  ;;  %v7773_v17 = vpop.permute.xlu0 %2516  ;;  %v1873_v15 = vadd.f32 %v7483_v46, %v1775_v61  ;;  %v2485_v46 = vmul.f32 %v7324_v19, %v7789_v44  ;;  %v1895_v61 = vmul.f32 %v7109_v11, %v7434_v31  ;;  %v1403_v31 = vmul.f32 %v6981_v57, %v7675_v25 }
 0x16f   :  { %10741 = vst [vmem:[#allocation75_spill] sm:$0xff] %v7771_v52  ;;  %v7798_v52 = vstv %s5901_s18 }
 0x170   :  { %756 = vrot.lane.b32.xlu1 %v715_v23, %s6493_s29  ;;  %2812 = vrot.lane.b32.xlu0 %v2778_v3, %s6493_s29  ;;  %v820_v23 = vadd.f32 %v804_v53, %v786_v43  ;;  %v838_v3 = vmul.f32 %v7618_v7, %v6924_v28  ;;  %v1971_v62 = vadd.f32 %v10746_v41, %v1873_v15  ;;  %v7814_v41 = vstv %s5902_s21 }
 0x171   :  { %10747 = vst [vmem:[#allocation102_spill] sm:$0xff] %v7798_v52  ;;  %v872_v28 = vmul.f32 %v7637_v56, %v6937_v1  ;;  %10750 = vst [vmem:[#allocation131_spill] sm:$0xff] %v7814_v41 }
 0x172   :  { %v7791_v40 = vpop.permute.xlu1 %1634  ;;  %v7793_v21 = vpop.permute.xlu0 %1436  ;;  %v854_v15 = vadd.f32 %v838_v3, %v820_v23 }
 0x173   :  { %10744 = vst [vmem:[#allocation26_spill] sm:$0xff] %v7791_v40  ;;  %10745 = vst [vmem:[#allocation77_spill] sm:$0xff] %v7793_v21  ;;  %v10748_v21 = vld [vmem:[#allocation106_spill] sm:$0xff] }
 0x174   :  { %1344 = vrot.lane.b32.xlu1 %v1305_v54, %s6493_s29  ;;  %954 = vrot.lane.b32.xlu0 %v914_v33, %s6492_s15  ;;  %v2069_v53 = vadd.f32 %v10748_v21, %v1971_v62  ;;  %v2185_v54 = vmul.f32 %v7798_v52, %v7253_v27  ;;  %v10751_v21 = vld [vmem:[#allocation24_spill] sm:$0xff]  ;;  %v888_v23 = vadd.f32 %v872_v28, %v854_v15  ;;  %v10758_v15 = vld [vmem:[#allocation83_spill] sm:$0xff] }
 0x175   :  { %v1012_v62 = vmul.f32 %v10751_v21, %v7675_v25 }
 0x176   :  { %v2615_v43 = vpop.permute.xlu1 %2614  ;;  %v7807_v40 = vpop.permute.xlu0 %2024  ;;  %v2167_v33 = vadd.f32 %v7575_v60, %v2069_v53  ;;  %v2219_v60 = vmul.f32 %v7814_v41, %v7280_v18  ;;  %v7828_v53 = vstv %s5903_s24 }
 0x177   :  { %10749 = vst [vmem:[#allocation106_spill] sm:$0xff] %v7807_v40  ;;  %10754 = vst [vmem:[#allocation133_spill] sm:$0xff] %v7828_v53 }
 0x178   :  { %2520 = vrot.lane.b32.xlu1 %v2485_v46, %s6492_s15  ;;  %1932 = vrot.lane.b32.xlu0 %v1895_v61, %s6493_s29  ;;  %v2201_v3 = vadd.f32 %v2185_v54, %v2167_v33  ;;  %v1993_v46 = vmul.f32 %v7131_v34, %v7573_v63  ;;  %v1602_v61 = vmul.f32 %v7038_v38, %v7573_v63 }
 0x179   :  { %v2253_v33 = vmul.f32 %v7828_v53, %v7322_v49 }
 0x17a   :  { %v7822_v40 = vpop.permute.xlu1 %1144  ;;  %v7824_v1 = vpop.permute.xlu0 %556 }
 0x17b   :  { %10752 = vst [vmem:[#allocation24_spill] sm:$0xff] %v7822_v40  ;;  %10753 = vst [vmem:[#allocation132_spill] sm:$0xff] %v7824_v1  ;;  %v10755_v40 = vld [vmem:[#allocation82_spill] sm:$0xff] }
 0x17c   :  { %1442 = vrot.lane.b32.xlu1 %v1403_v31, %s6493_s29  ;;  %1052 = vrot.lane.b32.xlu0 %v1012_v62, %s6492_s15  ;;  %v986_v29 = vadd.f32 %v10755_v40, %v888_v23  ;;  %v2235_v31 = vadd.f32 %v2219_v60, %v2201_v3  ;;  %v520_v62 = vmul.f32 %v7611_v51, %v6899_v16  ;;  %v10759_v23 = vld [vmem:[#allocation84_spill] sm:$0xff] }
 0x17d   :  { %v2583_v40 = vmul.f32 %v7346_v8, %v7322_v49  ;;  %v10761_v3 = vld [vmem:[#allocation88_spill] sm:$0xff]  ;;  %v1700_v49 = vmul.f32 %v7070_v2, %v7739_v45 }
 0x17e   :  { %v7837_v1 = vpop.permute.xlu1 %2122  ;;  %v7839_v28 = vpop.permute.xlu0 %1732  ;;  %v1084_v54 = vadd.f32 %v10758_v15, %v986_v29  ;;  %v7854_v29 = vld [vmem:[%s10540_s0 + $0x38] sm:$0x3] }
 0x17f   :  { %10756 = vst [vmem:[#allocation82_spill] sm:$0xff] %v7837_v1  ;;  %10757 = vst [vmem:[#allocation134_spill] sm:$0xff] %v7839_v28  ;;  %v1110_v51 = vmul.f32 %v6952_v42, %v7854_v29 }
 0x180   :  { %2030 = vrot.lane.b32.xlu1 %v1993_v46, %s6493_s29  ;;  %1640 = vrot.lane.b32.xlu0 %v1602_v61, %s6492_s15  ;;  %v1182_v1 = vadd.f32 %v10759_v23, %v1084_v54  ;;  %v2269_v46 = vadd.f32 %v2253_v33, %v2235_v31  ;;  %v10762_v61 = vld [vmem:[#allocation93_spill] sm:$0xff]  ;;  %v10766_v31 = vld [vmem:[#allocation95_spill] sm:$0xff] }
 0x182   :  { %v2713_v15 = vpop.permute.xlu1 %2712  ;;  %v7856_v28 = vpop.permute.xlu0 %2318  ;;  %v1280_v60 = vadd.f32 %v10761_v3, %v1182_v1  ;;  %v2367_v23 = vadd.f32 %v7689_v10, %v2269_v46  ;;  %v10765_v1 = vld [vmem:[#allocation51_spill] sm:$0xff]  ;;  %v2290_v3 = vmul.f32 %v7255_v39, %v7635_v59  ;;  %v2091_v10 = vmul.f32 %v7163_v12, %v7739_v45 }
 0x183   :  { %10760 = vst [vmem:[#allocation83_spill] sm:$0xff] %v7856_v28  ;;  %v1494_v33 = vmul.f32 %v7694_v55, %v10765_v1 }
 0x184   :  { %562 = vrot.lane.b32.xlu1 %v520_v62, %s6493_s29  ;;  %2618 = vrot.lane.b32.xlu0 %v2583_v40, %s6493_s29  ;;  %v1378_v54 = vadd.f32 %v10762_v61, %v1280_v60  ;;  %v2465_v40 = vadd.f32 %v7720_v5, %v2367_v23  ;;  %v1528_v5 = vmul.f32 %v7710_v48, %v7036_v37  ;;  %v7897_v23 = vld [vmem:[%s10540_s0 + $0x58] sm:$0x3]  ;;  %v5911_v37 = vld [vmem:[%s10542_s2 + $0x1] ss:$0 sm:$0xff] }
 0x186   :  { %v7867_v24 = vpop.permute.xlu1 %1242  ;;  %v7869_v28 = vpop.permute.xlu0 %654  ;;  %v1476_v62 = vadd.f32 %v10766_v31, %v1378_v54  ;;  %v2563_v60 = vadd.f32 %v7773_v17, %v2465_v40  ;;  %v3016_v31 = vld [vmem:[%s10543_s3] sm:$0xff] }
 0x187   :  { %10763 = vst [vmem:[#allocation84_spill] sm:$0xff] %v7867_v24  ;;  %10764 = vst [vmem:[#allocation88_spill] sm:$0xff] %v7869_v28 }
 0x188   :  { %1738 = vrot.lane.b32.xlu1 %v1700_v49, %s6492_s15  ;;  %1150 = vrot.lane.b32.xlu0 %v1110_v51, %s6492_s15  ;;  %v1510_v1 = vadd.f32 %v1494_v33, %v1476_v62  ;;  %v2661_v54 = vadd.f32 %v2615_v43, %v2563_v60  ;;  %v618_v49 = vmul.f32 %v7764_v35, %v6897_v14  ;;  %v3022_v60 = vld [vmem:[%s10543_s3 + $0x30] sm:$0xff] }
 0x189   :  { %v2681_v51 = vmul.f32 %v7383_v30, %v7635_v59  ;;  %v1562_v62 = vmul.f32 %v7727_v6, %v10732_v13  ;;  %v1798_v13 = vmul.f32 %v7087_v4, %v7897_v23 }
 0x18a   :  { %v7882_v46 = vpop.permute.xlu1 %2416  ;;  %v7884_v61 = vpop.permute.xlu0 %1830  ;;  %v2759_v17 = vadd.f32 %v2713_v15, %v2661_v54  ;;  %v1544_v15 = vadd.f32 %v1528_v5, %v1510_v1  ;;  %v10769_v54 = vld [vmem:[#allocation8_spill] sm:$0xff]  ;;  %v1208_v1 = vmul.f32 %v6960_v32, %v7518_v22  ;;  %v5941_v22 = vld [vmem:[%s10543_s3 + $0x98] sm:$0xff] }
 0x18b   :  { %10767 = vst [vmem:[#allocation93_spill] sm:$0xff] %v7884_v61 }
 0x18c   :  { %2326 = vrot.lane.b32.xlu1 %v2290_v3, %s6492_s15  ;;  %2128 = vrot.lane.b32.xlu0 %v2091_v10, %s6493_s29  ;;  %v3020_v3 = vld [vmem:[%s10543_s3 + $0x20] sm:$0xff]  ;;  %v3018_v10 = vld [vmem:[%s10543_s3 + $0x10] sm:$0xff] }
 0x18e   :  { %v7899_v33 = vpop.permute.xlu1 %752  ;;  %v2811_v43 = vpop.permute.xlu0 %2810 }
 0x18f   :  { %10768 = vst [vmem:[#allocation51_spill] sm:$0xff] %v7899_v33  ;;  %v2857_v40 = vadd.f32 %v2811_v43, %v2759_v17  ;;  %v10770_v33 = vld [vmem:[#allocation27_spill] sm:$0xff]  ;;  %v5939_v17 = vld [vmem:[%s10543_s3 + $0x88] sm:$0xff] }
 0x190   :  { %v298_v28 = vadd.f32 %v10770_v33, %v10769_v54  ;;  %660 = vrot.lane.b32.xlu1 %v618_v49, %s6493_s29  ;;  %2716 = vrot.lane.b32.xlu0 %v2681_v51, %s6493_s29  ;;  %v10771_v43 = vld [vmem:[#allocation45_spill] sm:$0xff]  ;;  %v6089_v49 = vpack.c.bf16 %v3020_v3, %v3016_v31  ;;  %v6093_v51 = vpack.c.bf16 %v3022_v60, %v3018_v10  ;;  %v10775_v10 = vld [vmem:[#allocation107_spill] sm:$0xff] }
 0x191   :  { %v2985_v5 = vadd.f32 %v5911_v37, %v2857_v40  ;;  %v5943_v54 = vld [vmem:[%s10543_s3 + $0xa8] sm:$0xff]  ;;  %v5945_v37 = vld [vmem:[%s10543_s3 + $0xb8] sm:$0xff]  ;;  %v2779_v31 = vmul.f32 %v7449_v0, %v7789_v44  ;;  %v2388_v3 = vmul.f32 %v7282_v9, %v7789_v44  ;;  %v10779_v0 = vmov 0.0  }
 0x192   :  { %v396_v24 = vadd.f32 %v10771_v43, %v298_v28  ;;  %v7930_v61 = vpop.permute.xlu1 %1340  ;;  %v7932_v33 = vpop.permute.xlu0 %950  ;;  %v1578_v28 = vadd.f32 %v1562_v62, %v1544_v15  ;;  %v10774_v43 = vld [vmem:[#allocation63_spill] sm:$0xff]  ;;  %v6095_v62 = vpack.c.bf16 %v5943_v54, %v5939_v17  ;;  %v6099_v15 = vpack.c.bf16 %v5945_v37, %v5941_v22  ;;  %v10781_v22 = vld [vmem:[#allocation114_spill] sm:$0xff] }
 0x193   :  { %10772 = vst [vmem:[#allocation95_spill] sm:$0xff] %v7930_v61  ;;  %10773 = vst [vmem:[#allocation8_spill] sm:$0xff] %v7932_v33  ;;  %v3001_v40 = vmax.f32 %v2985_v5, 0.0  ;;  %v915_v17 = vmul.f32 %v6926_v50, %v7675_v25 }
 0x194   :  { %v494_v61 = vadd.f32 %v10774_v43, %v396_v24  ;;  %1836 = vrot.lane.b32.xlu1 %v1798_v13, %s6492_s15  ;;  %1248 = vrot.lane.b32.xlu0 %v1208_v1, %s6493_s29  ;;  %v1676_v60 = vadd.f32 %v10775_v10, %v1578_v28  ;;  %v10777_v13 = vld [vmem:[#allocation78_spill] sm:$0xff]  ;;  %v10784_v10 = vld [vmem:[#allocation80_spill] sm:$0xff] }
 0x195   :  { %5934 = vmatmul.mubr.msk.f32.vlgmr.msra.gmra.mrb[0].mxu0 %vm3033_vm0, %v3001_v40  ;;  %5935 = vmatmul.mubr.msk.f32.vlgmr.msra.gmra.mrb[0].mxu1 %vm3033_vm0, %v3001_v40  ;;  %v10778_v43 = vld [vmem:[#allocation110_spill] sm:$0xff] }
 0x196   :  { %v7953_v5 = vpop.permute.xlu1 %2514  ;;  %v7955_v24 = vpop.permute.xlu0 %1928  ;;  %6090 = vmatpush1.bf16.msra.mxu0 %v6089_v49  ;;  %6094 = vmatpush1.bf16.msra.mxu1 %v6093_v51  ;;  %v592_v1 = vadd.f32 %v10777_v13, %v494_v61  ;;  %v1774_v33 = vadd.f32 %v10778_v43, %v1676_v60  ;;  %v7968_v49 = vld [vmem:[%s10540_s0 + $0x18] sm:$0x3]  ;;  %v10780_v51 = vld [vmem:[#allocation79_spill] sm:$0xff] }
 0x197   :  { %10776 = vst [vmem:[#allocation27_spill] sm:$0xff] %v7955_v24  ;;  %3246 = vmatprep.mubr.f32.mxu0 %v10779_v0  ;;  %3317 = vmatprep.mubr.f32.mxu1 %v10779_v0  ;;  %v716_v61 = vmul.f32 %v7968_v49, %v6907_v20  ;;  %v10785_v13 = vld [vmem:[#allocation118_spill] sm:$0xff] }
 0x198   :  { %2814 = vrot.lane.b32.xlu1 %v2779_v31, %s6493_s29  ;;  %2424 = vrot.lane.b32.xlu0 %v2388_v3, %s6492_s15  ;;  %v690_v54 = vadd.f32 %v10780_v51, %v592_v1  ;;  %v1872_v37 = vadd.f32 %v10781_v22, %v1774_v33  ;;  %v6409_v31 = vld [vmem:[%s10540_s0 + $0x28] sm:$0x3]  ;;  %v1896_v33 = vmul.f32 %v7109_v11, %v7573_v63  ;;  %v7994_v1 = vld [vmem:[%s10540_s0 + $0x78] sm:$0x3]  ;;  %v10788_v22 = vld [vmem:[#allocation87_spill] sm:$0xff] }
 0x199   :  { %6096 = vmatprep.subr.bf16.mxu0 %v6095_v62  ;;  %6100 = vmatprep.subr.bf16.mxu1 %v6099_v15  ;;  %v806_v3 = vmul.f32 %v6409_v31, %v7598_v58  ;;  %v1306_v62 = vmul.f32 %v6968_v47, %v7675_v25  ;;  %v1013_v31 = vmul.f32 %v10751_v21, %v7854_v29 }
 0x19a   :  { %v7974_v28 = vpop.permute.xlu1 %1438  ;;  %v7976_v40 = vpop.permute.xlu0 %1048  ;;  %v788_v60 = vadd.f32 %v10784_v10, %v690_v54  ;;  %v1970_v43 = vadd.f32 %v10785_v13, %v1872_v37  ;;  %v8021_v13 = vld [vmem:[%s10540_s0 + $0x2c] sm:$0x3] }
 0x19b   :  { %10782 = vst [vmem:[#allocation45_spill] sm:$0xff] %v7974_v28  ;;  %10783 = vst [vmem:[#allocation63_spill] sm:$0xff] %v7976_v40 }
 0x19c   :  { %956 = vrot.lane.b32.xlu1 %v915_v17, %s6492_s15  ;;  %758 = vrot.lane.b32.xlu0 %v716_v61, %s6493_s29  ;;  %v2068_v15 = vadd.f32 %v7663_v36, %v1970_v43  ;;  %v822_v17 = vadd.f32 %v806_v3, %v788_v60  ;;  %v8003_v61 = vld [vmem:[%s10540_s0 + $0x2a] sm:$0x3]  ;;  %v2184_v36 = vmul.f32 %v7798_v52, %v10788_v22 }
 0x19d   :  { %v840_v63 = vmul.f32 %v8003_v61, %v7618_v7  ;;  %v2486_v3 = vmul.f32 %v7324_v19, %v7994_v1  ;;  %v1404_v22 = vmul.f32 %v6981_v57, %v7854_v29 }
 0x19e   :  { %v7996_v51 = vpop.permute.xlu1 %2026  ;;  %v7998_v54 = vpop.permute.xlu0 %1636  ;;  %v2166_v37 = vadd.f32 %v7691_v26, %v2068_v15  ;;  %v874_v26 = vmul.f32 %v8021_v13, %v7637_v56  ;;  %v1603_v15 = vmul.f32 %v7038_v38, %v7739_v45 }
 0x19f   :  { %10786 = vst [vmem:[#allocation107_spill] sm:$0xff] %v7996_v51  ;;  %10787 = vst [vmem:[#allocation78_spill] sm:$0xff] %v7998_v54  ;;  %v856_v43 = vadd.f32 %v840_v63, %v822_v17  ;;  %v2252_v17 = vmul.f32 %v7828_v53, %v7280_v18  ;;  %v10798_v51 = vld [vmem:[#allocation99_spill] sm:$0xff] }
 0x1a0   :  { %1934 = vrot.lane.b32.xlu1 %v1896_v33, %s6493_s29  ;;  %1346 = vrot.lane.b32.xlu0 %v1306_v62, %s6493_s29  ;;  %v2200_v33 = vadd.f32 %v2184_v36, %v2166_v37  ;;  %v2218_v62 = vmul.f32 %v7814_v41, %v7253_v27  ;;  %v2584_v27 = vmul.f32 %v7346_v8, %v7635_v59  ;;  %v10792_v37 = vld [vmem:[#allocation90_spill] sm:$0xff] }
 0x1a1   :  { %v890_v28 = vadd.f32 %v874_v26, %v856_v43  ;;  %v1994_v36 = vmul.f32 %v7131_v34, %v7739_v45  ;;  %v10794_v43 = vld [vmem:[#allocation92_spill] sm:$0xff] }
 0x1a2   :  { %v8016_v10 = vpop.permute.xlu1 %558  ;;  %v2613_v60 = vpop.permute.xlu0 %2612  ;;  %v2234_v63 = vadd.f32 %v2218_v62, %v2200_v33 }
 0x1a3   :  { %10789 = vst [vmem:[#allocation110_spill] sm:$0xff] %v8016_v10 }
 0x1a4   :  { %1054 = vrot.lane.b32.xlu1 %v1013_v31, %s6492_s15  ;;  %2522 = vrot.lane.b32.xlu0 %v2486_v3, %s6492_s15  ;;  %v988_v31 = vadd.f32 %v10792_v37, %v890_v28  ;;  %v8049_v3 = vld [vmem:[%s10540_s0 + $0x3a] sm:$0x3]  ;;  %v2268_v62 = vadd.f32 %v2252_v17, %v2234_v63  ;;  %v521_v28 = vmul.f32 %v7764_v35, %v6899_v16 }
 0x1a5   :  { %v2092_v63 = vmul.f32 %v7163_v12, %v7897_v23  ;;  %v1701_v35 = vmul.f32 %v7070_v2, %v7897_v23 }
 0x1a6   :  { %v8033_v10 = vpop.permute.xlu1 %1734  ;;  %v8035_v40 = vpop.permute.xlu0 %1146  ;;  %v1086_v33 = vadd.f32 %v10794_v43, %v988_v31 }
 0x1a7   :  { %10790 = vst [vmem:[#allocation79_spill] sm:$0xff] %v8033_v10  ;;  %10791 = vst [vmem:[#allocation114_spill] sm:$0xff] %v8035_v40  ;;  %v10796_v40 = vld [vmem:[#allocation83_spill] sm:$0xff] }
 0x1a8   :  { %1642 = vrot.lane.b32.xlu1 %v1603_v15, %s6492_s15  ;;  %1444 = vrot.lane.b32.xlu0 %v1404_v22, %s6493_s29  ;;  %v1111_v15 = vmul.f32 %v6952_v42, %v8049_v3  ;;  %v10795_v22 = vld [vmem:[#allocation96_spill] sm:$0xff]  ;;  %v2366_v10 = vadd.f32 %v10796_v40, %v2268_v62 }
 0x1a9   :  { %v1184_v37 = vadd.f32 %v10795_v22, %v1086_v33 }
 0x1aa   :  { %v8051_v26 = vpop.permute.xlu1 %2322  ;;  %v8053_v18 = vpop.permute.xlu0 %2124  ;;  %v2464_v17 = vadd.f32 %v7882_v46, %v2366_v10  ;;  %v6412_v46 = vld [vmem:[%s10540_s0 + $0x4c] sm:$0x3]  ;;  %v10802_v10 = vld [vmem:[#allocation104_spill] sm:$0xff] }
 0x1ab   :  { %10793 = vst [vmem:[#allocation80_spill] sm:$0xff] %v8053_v18  ;;  %v1282_v31 = vadd.f32 %v10798_v51, %v1184_v37  ;;  %v1496_v51 = vmul.f32 %v6412_v46, %v7694_v55  ;;  %v5910_v37 = vld [vmem:[%s10542_s2] ss:$0 sm:$0xff]  ;;  %v5944_v46 = vld [vmem:[%s10543_s3 + $0xb0] sm:$0xff] }
 0x1ac   :  { %2620 = vrot.lane.b32.xlu1 %v2584_v27, %s6493_s29  ;;  %2032 = vrot.lane.b32.xlu0 %v1994_v36, %s6493_s29  ;;  %v10799_v27 = vld [vmem:[#allocation103_spill] sm:$0xff]  ;;  %v2562_v40 = vadd.f32 %v7953_v5, %v2464_v17  ;;  %v2682_v5 = vmul.f32 %v7383_v30, %v7789_v44 }
 0x1ad   :  { %v1380_v36 = vadd.f32 %v10799_v27, %v1282_v31 }
 0x1ae   :  { %v8064_v54 = vpop.permute.xlu1 %656  ;;  %v2711_v18 = vpop.permute.xlu0 %2710 }
 0x1af   :  { %10797 = vst [vmem:[#allocation118_spill] sm:$0xff] %v8064_v54  ;;  %v1478_v62 = vadd.f32 %v10802_v10, %v1380_v36  ;;  %v5942_v36 = vld [vmem:[%s10543_s3 + $0xa0] sm:$0xff]  ;;  %v619_v10 = vmul.f32 %v7968_v49, %v6897_v14  ;;  %v8126_v54 = vld [vmem:[%s10540_s0 + $0x5a] sm:$0x3] }
 0x1b0   :  { %1152 = vrot.lane.b32.xlu1 %v1111_v15, %s6492_s15  ;;  %564 = vrot.lane.b32.xlu0 %v521_v28, %s6493_s29  ;;  %v2660_v15 = vadd.f32 %v2613_v60, %v2562_v40  ;;  %v2291_v28 = vmul.f32 %v7255_v39, %v7789_v44  ;;  %v5938_v60 = vld [vmem:[%s10543_s3 + $0x80] sm:$0xff]  ;;  %v5940_v40 = vld [vmem:[%s10543_s3 + $0x90] sm:$0xff] }
 0x1b2   :  { %v8076_v43 = vpop.permute.xlu1 %1832  ;;  %v8078_v33 = vpop.permute.xlu0 %1244  ;;  %v2758_v22 = vadd.f32 %v2711_v18, %v2660_v15  ;;  %v10804_v15 = vld [vmem:[#allocation28_spill] sm:$0xff] }
 0x1b3   :  { %10800 = vst [vmem:[#allocation87_spill] sm:$0xff] %v8076_v43  ;;  %10801 = vst [vmem:[#allocation90_spill] sm:$0xff] %v8078_v33  ;;  %v6101_v43 = vpack.c.bf16 %v5944_v46, %v5940_v40  ;;  %v2389_v46 = vmul.f32 %v7282_v9, %v7994_v1 }
 0x1b4   :  { %2130 = vrot.lane.b32.xlu1 %v2092_v63, %s6493_s29  ;;  %1740 = vrot.lane.b32.xlu0 %v1701_v35, %s6492_s15  ;;  %v1512_v63 = vadd.f32 %v1496_v51, %v1478_v62  ;;  %v8102_v35 = vld [vmem:[%s10540_s0 + $0x4e] sm:$0x3]  ;;  %v1209_v51 = vmul.f32 %v6960_v32, %v7675_v25  ;;  %v6097_v25 = vpack.c.bf16 %v5942_v36, %v5938_v60 }
 0x1b5   :  { %v1530_v18 = vmul.f32 %v8102_v35, %v7710_v48  ;;  %v10803_v62 = vld [vmem:[#allocation9_spill] sm:$0xff] }
 0x1b6   :  { %v2809_v31 = vpop.permute.xlu1 %2808  ;;  %v8094_v17 = vpop.permute.xlu0 %2420 }
 0x1b7   :  { %v2856_v27 = vadd.f32 %v2809_v31, %v2758_v22  ;;  %v299_v22 = vadd.f32 %v10804_v15, %v10803_v62  ;;  %v5953_v62 = vld [vmem:[%s10543_s3 + $0xe8] sm:$0xff]  ;;  %v1546_v36 = vadd.f32 %v1530_v18, %v1512_v63 }
 0x1b8   :  { %2718 = vrot.lane.b32.xlu1 %v2682_v5, %s6493_s29  ;;  %2328 = vrot.lane.b32.xlu0 %v2291_v28, %s6492_s15  ;;  %v5949_v5 = vld [vmem:[%s10543_s3 + $0xc8] sm:$0xff] }
 0x1b9   :  { %v2984_v31 = vadd.f32 %v5910_v37, %v2856_v27  ;;  %v5951_v37 = vld [vmem:[%s10543_s3 + $0xd8] sm:$0xff]  ;;  %v10807_v15 = vld [vmem:[#allocation44_spill] sm:$0xff]  ;;  %v6103_v32 = vpack.c.bf16 %v5953_v62, %v5949_v5 }
 0x1ba   :  { %v8131_v28 = vpop.permute.xlu1 %952  ;;  %v8133_v33 = vpop.permute.xlu0 %754  ;;  %v5955_v27 = vld [vmem:[%s10543_s3 + $0xf8] sm:$0xff]  ;;  %v397_v24 = vadd.f32 %v10807_v15, %v299_v22  ;;  %v1799_v22 = vmul.f32 %v7087_v4, %v8126_v54 }
 0x1bb   :  { %10805 = vst [vmem:[#allocation92_spill] sm:$0xff] %v8131_v28  ;;  %10806 = vst [vmem:[#allocation96_spill] sm:$0xff] %v8133_v33  ;;  %v8148_v33 = vld [vmem:[%s10540_s0 + $0x50] sm:$0x3]  ;;  %v3000_v40 = vmax.f32 %v2984_v31, 0.0  ;;  %v10808_v15 = vld [vmem:[#allocation62_spill] sm:$0xff] }
 0x1bc   :  { %v1564_v60 = vmul.f32 %v8148_v33, %v7727_v6  ;;  %1250 = vrot.lane.b32.xlu1 %v1209_v51, %s6493_s29  ;;  %662 = vrot.lane.b32.xlu0 %v619_v10, %s6493_s29  ;;  %v495_v28 = vadd.f32 %v10808_v15, %v397_v24  ;;  %v6107_v6 = vpack.c.bf16 %v5955_v27, %v5951_v37  ;;  %v10811_v51 = vld [vmem:[#allocation85_spill] sm:$0xff]  ;;  %v8173_v24 = vld [vmem:[%s10540_s0 + $0x1a] sm:$0x3]  ;;  %v10814_v37 = vld [vmem:[#allocation119_spill] sm:$0xff] }
 0x1bd   :  { %5936 = vmatmul.mubr.msk.f32.vlgmr.msra.gmra.mrb[0].mxu0 %vm3033_vm0, %v3000_v40  ;;  %5937 = vmatmul.mubr.msk.f32.vlgmr.msra.gmra.mrb[0].mxu1 %vm3033_vm0, %v3000_v40  ;;  %v717_v5 = vmul.f32 %v8173_v24, %v6907_v20  ;;  %v807_v40 = vmul.f32 %v8003_v61, %v7598_v58  ;;  %v10817_v15 = vld [vmem:[#allocation122_spill] sm:$0xff] }
 0x1be   :  { %v8161_v63 = vpop.permute.xlu1 %1930  ;;  %v8163_v18 = vpop.permute.xlu0 %1342  ;;  %6098 = vmatpush1.bf16.msra.mxu0 %v6097_v25  ;;  %6102 = vmatpush1.bf16.msra.mxu1 %v6101_v43  ;;  %v593_v10 = vadd.f32 %v10811_v51, %v495_v28  ;;  %v1580_v31 = vadd.f32 %v1564_v60, %v1546_v36  ;;  %v10812_v43 = vld [vmem:[#allocation94_spill] sm:$0xff]  ;;  %v10813_v25 = vld [vmem:[#allocation89_spill] sm:$0xff] }
 0x1bf   :  { %10809 = vst [vmem:[#allocation83_spill] sm:$0xff] %v8161_v63  ;;  %10810 = vst [vmem:[#allocation99_spill] sm:$0xff] %v8163_v18  ;;  %3400 = vmatprep.mubr.f32.mxu0 %v10779_v0  ;;  %3471 = vmatprep.mubr.f32.mxu1 %v10779_v0  ;;  %v2780_v28 = vmul.f32 %v10812_v43, %v7994_v1  ;;  %v8199_v61 = vld [vmem:[%s10540_s0 + $0x7a] sm:$0x3] }
 0x1c0   :  { %2426 = vrot.lane.b32.xlu1 %v2389_v46, %s6492_s15  ;;  %1838 = vrot.lane.b32.xlu0 %v1799_v22, %s6492_s15  ;;  %v691_v62 = vadd.f32 %v10813_v25, %v593_v10  ;;  %v1678_v27 = vadd.f32 %v10814_v37, %v1580_v31  ;;  %v10816_v46 = vld [vmem:[#allocation91_spill] sm:$0xff]  ;;  %v1307_v10 = vmul.f32 %v6968_v47, %v7854_v29  ;;  %v10821_v37 = vld [vmem:[#allocation76_spill] sm:$0xff] }
 0x1c1   :  { %6104 = vmatprep.subr.bf16.mxu0 %v6103_v32  ;;  %6108 = vmatprep.subr.bf16.mxu1 %v6107_v6  ;;  %v916_v32 = vmul.f32 %v6926_v50, %v7854_v29  ;;  %v10818_v6 = vld [vmem:[#allocation128_spill] sm:$0xff] }
 0x1c2   :  { %v8181_v60 = vpop.permute.xlu1 %1050  ;;  %v8183_v36 = vpop.permute.xlu0 %2518  ;;  %v789_v22 = vadd.f32 %v10816_v46, %v691_v62  ;;  %v1776_v51 = vadd.f32 %v10817_v15, %v1678_v27  ;;  %v2487_v46 = vmul.f32 %v7324_v19, %v8199_v61  ;;  %v1897_v15 = vmul.f32 %v7109_v11, %v7739_v45 }
 0x1c3   :  { %10815 = vst [vmem:[#allocation103_spill] sm:$0xff] %v8181_v60 }
 0x1c4   :  { %760 = vrot.lane.b32.xlu1 %v717_v5, %s6493_s29  ;;  %2816 = vrot.lane.b32.xlu0 %v2780_v28, %s6493_s29  ;;  %v1874_v31 = vadd.f32 %v10818_v6, %v1776_v51  ;;  %v823_v5 = vadd.f32 %v807_v40, %v789_v22  ;;  %v841_v28 = vmul.f32 %v8021_v13, %v7618_v7  ;;  %v10822_v51 = vld [vmem:[#allocation106_spill] sm:$0xff]  ;;  %v8220_v40 = vld [vmem:[%s10540_s0 + $0x2e] sm:$0x3] }
 0x1c5   :  { %v875_v22 = vmul.f32 %v8220_v40, %v7637_v56 }
 0x1c6   :  { %v8201_v25 = vpop.permute.xlu1 %1638  ;;  %v8203_v62 = vpop.permute.xlu0 %1440  ;;  %v1972_v27 = vadd.f32 %v10821_v37, %v1874_v31  ;;  %v10824_v31 = vld [vmem:[#allocation82_spill] sm:$0xff] }
 0x1c7   :  { %10819 = vst [vmem:[#allocation104_spill] sm:$0xff] %v8201_v25  ;;  %10820 = vst [vmem:[#allocation9_spill] sm:$0xff] %v8203_v62 }
 0x1c8   :  { %1348 = vrot.lane.b32.xlu1 %v1307_v10, %s6493_s29  ;;  %958 = vrot.lane.b32.xlu0 %v916_v32, %s6492_s15  ;;  %v2070_v6 = vadd.f32 %v10822_v51, %v1972_v27  ;;  %v857_v10 = vadd.f32 %v841_v28, %v823_v5  ;;  %v6417_v32 = vld [vmem:[%s10540_s0 + $0x70] sm:$0x3]  ;;  %v1405_v27 = vmul.f32 %v6981_v57, %v8049_v3 }
 0x1c9   :  { %v2186_v45 = vmul.f32 %v6417_v32, %v7798_v52  ;;  %v1014_v51 = vmul.f32 %v10751_v21, %v8049_v3  ;;  %v1604_v32 = vmul.f32 %v7038_v38, %v7897_v23 }
 0x1ca   :  { %v2617_v60 = vpop.permute.xlu1 %2616  ;;  %v8215_v62 = vpop.permute.xlu0 %2028  ;;  %v2168_v37 = vadd.f32 %v10824_v31, %v2070_v6  ;;  %v891_v28 = vadd.f32 %v875_v22, %v857_v10  ;;  %v8242_v6 = vld [vmem:[%s10540_s0 + $0x72] sm:$0x3]  ;;  %v10827_v22 = vld [vmem:[#allocation100_spill] sm:$0xff] }
 0x1cb   :  { %10823 = vst [vmem:[#allocation28_spill] sm:$0xff] %v8215_v62 }
 0x1cc   :  { %2524 = vrot.lane.b32.xlu1 %v2487_v46, %s6492_s15  ;;  %1936 = vrot.lane.b32.xlu0 %v1897_v15, %s6493_s29  ;;  %v2202_v25 = vadd.f32 %v2186_v45, %v2168_v37  ;;  %v2220_v46 = vmul.f32 %v8242_v6, %v7814_v41  ;;  %v1995_v15 = vmul.f32 %v7131_v34, %v7897_v23  ;;  %v10830_v37 = vld [vmem:[#allocation105_spill] sm:$0xff] }
 0x1cd   :  { %v989_v10 = vadd.f32 %v10827_v22, %v891_v28  ;;  %v2585_v28 = vmul.f32 %v7346_v8, %v7789_v44  ;;  %v10831_v22 = vld [vmem:[#allocation108_spill] sm:$0xff] }
 0x1ce   :  { %v8235_v18 = vpop.permute.xlu1 %1148  ;;  %v8237_v5 = vpop.permute.xlu0 %560 }
 0x1cf   :  { %10825 = vst [vmem:[#allocation44_spill] sm:$0xff] %v8235_v18  ;;  %10826 = vst [vmem:[#allocation62_spill] sm:$0xff] %v8237_v5  ;;  %v1087_v5 = vadd.f32 %v10830_v37, %v989_v10  ;;  %v2254_v18 = vmul.f32 %v7828_v53, %v7635_v59  ;;  %v8270_v10 = vld [vmem:[%s10540_s0 + $0x3c] sm:$0x3] }
 0x1d0   :  { %1446 = vrot.lane.b32.xlu1 %v1405_v27, %s6493_s29  ;;  %1056 = vrot.lane.b32.xlu0 %v1014_v51, %s6492_s15  ;;  %v2236_v27 = vadd.f32 %v2220_v46, %v2202_v25  ;;  %v522_v51 = vmul.f32 %v7968_v49, %v6899_v16  ;;  %v10832_v25 = vld [vmem:[#allocation111_spill] sm:$0xff]  ;;  %v1702_v49 = vmul.f32 %v7070_v2, %v8126_v54 }
 0x1d2   :  { %v8253_v45 = vpop.permute.xlu1 %2126  ;;  %v8255_v31 = vpop.permute.xlu0 %1736 }
 0x1d3   :  { %10828 = vst [vmem:[#allocation85_spill] sm:$0xff] %v8253_v45  ;;  %10829 = vst [vmem:[#allocation94_spill] sm:$0xff] %v8255_v31  ;;  %v1185_v45 = vadd.f32 %v10831_v22, %v1087_v5  ;;  %v1112_v5 = vmul.f32 %v6952_v42, %v8270_v10 }
 0x1d4   :  { %2034 = vrot.lane.b32.xlu1 %v1995_v15, %s6493_s29  ;;  %1644 = vrot.lane.b32.xlu0 %v1604_v32, %s6492_s15  ;;  %v2270_v15 = vadd.f32 %v2254_v18, %v2236_v27  ;;  %v10833_v32 = vld [vmem:[#allocation115_spill] sm:$0xff]  ;;  %v1497_v18 = vmul.f32 %v8102_v35, %v7694_v55 }
 0x1d5   :  { %v1283_v46 = vadd.f32 %v10832_v25, %v1185_v45  ;;  %v10836_v45 = vld [vmem:[#allocation120_spill] sm:$0xff] }
 0x1d6   :  { %v2715_v37 = vpop.permute.xlu1 %2714  ;;  %v8272_v59 = vpop.permute.xlu0 %2324  ;;  %v2368_v31 = vadd.f32 %v8051_v26, %v2270_v15  ;;  %v2093_v26 = vmul.f32 %v7163_v12, %v8126_v54 }
 0x1d7   :  { %v1381_v22 = vadd.f32 %v10833_v32, %v1283_v46  ;;  %v8313_v32 = vld [vmem:[%s10540_s0 + $0x5c] sm:$0x3] }
 0x1d8   :  { %566 = vrot.lane.b32.xlu1 %v522_v51, %s6493_s29  ;;  %2622 = vrot.lane.b32.xlu0 %v2585_v28, %s6493_s29  ;;  %v2466_v51 = vadd.f32 %v8094_v17, %v2368_v31  ;;  %v2292_v28 = vmul.f32 %v7255_v39, %v7994_v1  ;;  %v1531_v17 = vmul.f32 %v8148_v33, %v7710_v48 }
 0x1d9   :  { %v1479_v27 = vadd.f32 %v10836_v45, %v1381_v22  ;;  %v5948_v45 = vld [vmem:[%s10543_s3 + $0xc0] sm:$0xff] }
 0x1da   :  { %v8283_v62 = vpop.permute.xlu1 %1246  ;;  %v8285_v63 = vpop.permute.xlu0 %658  ;;  %v2564_v25 = vadd.f32 %v8183_v36, %v2466_v51 }
 0x1db   :  { %10834 = vst [vmem:[#allocation89_spill] sm:$0xff] %v8283_v62  ;;  %10835 = vst [vmem:[#allocation119_spill] sm:$0xff] %v8285_v63  ;;  %v1513_v35 = vadd.f32 %v1497_v18, %v1479_v27  ;;  %v10840_v27 = vld [vmem:[#allocation39_spill] sm:$0xff]  ;;  %v10842_v62 = vld [vmem:[#allocation30_spill] sm:$0xff] }
 0x1dc   :  { %1742 = vrot.lane.b32.xlu1 %v1702_v49, %s6492_s15  ;;  %1154 = vrot.lane.b32.xlu0 %v1112_v5, %s6492_s15  ;;  %v2662_v31 = vadd.f32 %v2617_v60, %v2564_v25  ;;  %v620_v49 = vmul.f32 %v8173_v24, %v6897_v14  ;;  %v2683_v5 = vmul.f32 %v7383_v30, %v7994_v1  ;;  %v5912_v60 = vld [vmem:[%s10542_s2 + $0x2] ss:$0 sm:$0xff] }
 0x1dd   :  { %v5952_v25 = vld [vmem:[%s10543_s3 + $0xe0] sm:$0xff] }
 0x1de   :  { %v8298_v46 = vpop.permute.xlu1 %2422  ;;  %v8300_v15 = vpop.permute.xlu0 %1834  ;;  %v2760_v36 = vadd.f32 %v2715_v37, %v2662_v31  ;;  %v8326_v37 = vld [vmem:[%s10540_s0 + $0x52] sm:$0x3]  ;;  %v10841_v63 = vld [vmem:[#allocation11_spill] sm:$0xff] }
 0x1df   :  { %10837 = vst [vmem:[#allocation91_spill] sm:$0xff] %v8300_v15  ;;  %10839 = vst [vmem:[#allocation128_spill] sm:$0xff] %v8326_v37  ;;  %v1565_v51 = vmul.f32 %v8326_v37, %v10840_v27  ;;  %v5950_v31 = vld [vmem:[%s10543_s3 + $0xd0] sm:$0xff]  ;;  %v300_v15 = vadd.f32 %v10842_v62, %v10841_v63  ;;  %v5959_v27 = vld [vmem:[%s10543_s3 + $0x108] sm:$0xff]  ;;  %v6105_v62 = vpack.c.bf16 %v5952_v25, %v5948_v45 }
 0x1e0   :  { %2330 = vrot.lane.b32.xlu1 %v2292_v28, %s6492_s15  ;;  %2132 = vrot.lane.b32.xlu0 %v2093_v26, %s6493_s29  ;;  %v1547_v28 = vadd.f32 %v1531_v17, %v1513_v35  ;;  %v1800_v35 = vmul.f32 %v7087_v4, %v8313_v32  ;;  %v10843_v17 = vld [vmem:[#allocation25_spill] sm:$0xff]  ;;  %v10844_v30 = vld [vmem:[#allocation47_spill] sm:$0xff]  ;;  %v2390_v45 = vmul.f32 %v7282_v9, %v8199_v61  ;;  %v10848_v25 = vld [vmem:[#allocation26_spill] sm:$0xff] }
 0x1e1   :  { %v398_v14 = vadd.f32 %v10844_v30, %v300_v15  ;;  %v10847_v15 = vld [vmem:[#allocation65_spill] sm:$0xff] }
 0x1e2   :  { %v8315_v22 = vpop.permute.xlu1 %756  ;;  %v2813_v18 = vpop.permute.xlu0 %2812 }
 0x1e3   :  { %10838 = vst [vmem:[#allocation122_spill] sm:$0xff] %v8315_v22  ;;  %v2858_v26 = vadd.f32 %v2813_v18, %v2760_v36  ;;  %v5954_v22 = vld [vmem:[%s10543_s3 + $0xf0] sm:$0xff]  ;;  %v1210_v36 = vmul.f32 %v10843_v17, %v7854_v29  ;;  %v5961_v29 = vld [vmem:[%s10543_s3 + $0x118] sm:$0xff] }
 0x1e4   :  { %664 = vrot.lane.b32.xlu1 %v620_v49, %s6493_s29  ;;  %2720 = vrot.lane.b32.xlu0 %v2683_v5, %s6493_s29  ;;  %v6109_v49 = vpack.c.bf16 %v5954_v22, %v5950_v31  ;;  %v5963_v5 = vld [vmem:[%s10543_s3 + $0x128] sm:$0xff]  ;;  %v2781_v22 = vmul.f32 %v10812_v43, %v8199_v61 }
 0x1e5   :  { %v2986_v18 = vadd.f32 %v5912_v60, %v2858_v26  ;;  %v5965_v60 = vld [vmem:[%s10543_s3 + $0x138] sm:$0xff]  ;;  %v1581_v26 = vadd.f32 %v1565_v51, %v1547_v28  ;;  %v6111_v51 = vpack.c.bf16 %v5963_v5, %v5959_v27  ;;  %v917_v27 = vmul.f32 %v6926_v50, %v8049_v3 }
 0x1e6   :  { %v8351_v37 = vpop.permute.xlu1 %1344  ;;  %v8353_v63 = vpop.permute.xlu0 %954  ;;  %v6115_v28 = vpack.c.bf16 %v5965_v60, %v5961_v29  ;;  %v10853_v29 = vld [vmem:[#allocation93_spill] sm:$0xff] }
 0x1e7   :  { %10845 = vst [vmem:[#allocation76_spill] sm:$0xff] %v8351_v37  ;;  %10846 = vst [vmem:[#allocation106_spill] sm:$0xff] %v8353_v63  ;;  %v3002_v30 = vmax.f32 %v2986_v18, 0.0  ;;  %v496_v37 = vadd.f32 %v10847_v15, %v398_v14  ;;  %v1679_v31 = vadd.f32 %v10848_v25, %v1581_v26  ;;  %v10851_v15 = vld [vmem:[#allocation134_spill] sm:$0xff] }
 0x1e8   :  { %1840 = vrot.lane.b32.xlu1 %v1800_v35, %s6492_s15  ;;  %1252 = vrot.lane.b32.xlu0 %v1210_v36, %s6493_s29  ;;  %v10850_v35 = vld [vmem:[#allocation97_spill] sm:$0xff] }
 0x1e9   :  { %5946 = vmatmul.mubr.msk.f32.vlgmr.msra.gmra.mrb[0].mxu0 %vm3033_vm0, %v3002_v30  ;;  %5947 = vmatmul.mubr.msk.f32.vlgmr.msra.gmra.mrb[0].mxu1 %vm3033_vm0, %v3002_v30  ;;  %v594_v36 = vadd.f32 %v10850_v35, %v496_v37  ;;  %v1777_v63 = vadd.f32 %v10851_v15, %v1679_v31  ;;  %v10857_v31 = vld [vmem:[#allocation27_spill] sm:$0xff] }
 0x1ea   :  { %v8374_v18 = vpop.permute.xlu1 %2520  ;;  %v8376_v14 = vpop.permute.xlu0 %1932  ;;  %6106 = vmatpush1.bf16.msra.mxu0 %v6105_v62  ;;  %6110 = vmatpush1.bf16.msra.mxu1 %v6109_v49  ;;  %v8389_v62 = vld [vmem:[%s10540_s0 + $0x1c] sm:$0x3]  ;;  %v10852_v49 = vld [vmem:[#allocation98_spill] sm:$0xff] }
 0x1eb   :  { %10849 = vst [vmem:[#allocation82_spill] sm:$0xff] %v8376_v14  ;;  %3558 = vmatprep.mubr.f32.mxu0 %v10779_v0  ;;  %3629 = vmatprep.mubr.f32.mxu1 %v10779_v0  ;;  %v718_v37 = vmul.f32 %v8389_v62, %v6907_v20  ;;  %v692_v5 = vadd.f32 %v10852_v49, %v594_v36  ;;  %v8543_v14 = vld [vmem:[%s10540_s0 + $0x5e] sm:$0x3] }
 0x1ec   :  { %2818 = vrot.lane.b32.xlu1 %v2781_v22, %s6493_s29  ;;  %2428 = vrot.lane.b32.xlu0 %v2390_v45, %s6492_s15  ;;  %v1875_v60 = vadd.f32 %v10853_v29, %v1777_v63  ;;  %v808_v22 = vmul.f32 %v8021_v13, %v7598_v58  ;;  %v10856_v45 = vld [vmem:[#allocation101_spill] sm:$0xff]  ;;  %v1898_v63 = vmul.f32 %v7109_v11, %v7897_v23  ;;  %v8413_v13 = vld [vmem:[%s10540_s0 + $0x7c] sm:$0x3] }
 0x1ed   :  { %6112 = vmatprep.subr.bf16.mxu0 %v6111_v51  ;;  %6116 = vmatprep.subr.bf16.mxu1 %v6115_v28  ;;  %v790_v25 = vadd.f32 %v10856_v45, %v692_v5  ;;  %v1308_v51 = vmul.f32 %v6968_v47, %v8049_v3  ;;  %v10858_v28 = vld [vmem:[#allocation107_spill] sm:$0xff]  ;;  %v2187_v23 = vmul.f32 %v8242_v6, %v7798_v52  ;;  %v10861_v5 = vld [vmem:[#allocation80_spill] sm:$0xff]  ;;  %v10862_v45 = vld [vmem:[#allocation22_spill] sm:$0xff] }
 0x1ee   :  { %v8395_v26 = vpop.permute.xlu1 %1442  ;;  %v8397_v30 = vpop.permute.xlu0 %1052  ;;  %v1973_v35 = vadd.f32 %v10857_v31, %v1875_v60  ;;  %v8429_v60 = vld [vmem:[%s10540_s0 + $0x1e] sm:$0x3] }
 0x1ef   :  { %10854 = vst [vmem:[#allocation100_spill] sm:$0xff] %v8395_v26  ;;  %10855 = vst [vmem:[#allocation105_spill] sm:$0xff] %v8397_v30  ;;  %v2255_v26 = vmul.f32 %v7828_v53, %v7789_v44  ;;  %v523_v44 = vmul.f32 %v8173_v24, %v6899_v16  ;;  %v1703_v24 = vmul.f32 %v7070_v2, %v8313_v32 }
 0x1f0   :  { %960 = vrot.lane.b32.xlu1 %v917_v27, %s6492_s15  ;;  %762 = vrot.lane.b32.xlu0 %v718_v37, %s6493_s29  ;;  %v2071_v36 = vadd.f32 %v10858_v28, %v1973_v35  ;;  %v824_v27 = vadd.f32 %v808_v22, %v790_v25  ;;  %v842_v37 = vmul.f32 %v8220_v40, %v7618_v7 }
 0x1f1   :  { %v425_v22 = vmul.f32 %v8429_v60, %v10862_v45  ;;  %v2488_v25 = vmul.f32 %v7324_v19, %v8413_v13 }
 0x1f2   :  { %v8415_v15 = vpop.permute.xlu1 %2030  ;;  %v8417_v49 = vpop.permute.xlu0 %1640  ;;  %v2169_v29 = vadd.f32 %v10861_v5, %v2071_v36  ;;  %v858_v35 = vadd.f32 %v842_v37, %v824_v27  ;;  %v8447_v36 = vld [vmem:[%s10540_s0 + $0x74] sm:$0x3]  ;;  %v1406_v27 = vmul.f32 %v6981_v57, %v8270_v10  ;;  %v1015_v37 = vmul.f32 %v10751_v21, %v8270_v10 }
 0x1f3   :  { %10859 = vst [vmem:[#allocation108_spill] sm:$0xff] %v8415_v15  ;;  %10860 = vst [vmem:[#allocation111_spill] sm:$0xff] %v8417_v49  ;;  %v2221_v5 = vmul.f32 %v8447_v36, %v7814_v41  ;;  %v10866_v49 = vld [vmem:[#allocation116_spill] sm:$0xff] }
 0x1f4   :  { %1938 = vrot.lane.b32.xlu1 %v1898_v63, %s6493_s29  ;;  %1350 = vrot.lane.b32.xlu0 %v1308_v51, %s6493_s29  ;;  %v8440_v63 = vld [vmem:[%s10540_s0 + $0x30] sm:$0x3]  ;;  %v2203_v28 = vadd.f32 %v2187_v23, %v2169_v29 }
 0x1f5   :  { %v876_v51 = vmul.f32 %v8440_v63, %v7637_v56 }
 0x1f6   :  { %v8435_v31 = vpop.permute.xlu1 %562  ;;  %v2619_v6 = vpop.permute.xlu0 %2618 }
 0x1f7   :  { %10863 = vst [vmem:[#allocation115_spill] sm:$0xff] %v8435_v31  ;;  %v892_v29 = vadd.f32 %v876_v51, %v858_v35  ;;  %v2237_v31 = vadd.f32 %v2221_v5, %v2203_v28  ;;  %v10868_v35 = vld [vmem:[#allocation117_spill] sm:$0xff]  ;;  %v2586_v5 = vmul.f32 %v7346_v8, %v7994_v1 }
 0x1f8   :  { %470 = vrot.lane.b32.xlu1 %v425_v22, %s6492_s15  ;;  %2526 = vrot.lane.b32.xlu0 %v2488_v25, %s6492_s15  ;;  %v1996_v22 = vmul.f32 %v7131_v34, %v8126_v54  ;;  %v1605_v25 = vmul.f32 %v7038_v38, %v8126_v54 }
 0x1f9   :  { %v990_v15 = vadd.f32 %v10866_v49, %v892_v29  ;;  %v2271_v28 = vadd.f32 %v2255_v26, %v2237_v31  ;;  %v8486_v29 = vld [vmem:[%s10540_s0 + $0x3e] sm:$0x3]  ;;  %v10871_v31 = vld [vmem:[#allocation125_spill] sm:$0xff] }
 0x1fa   :  { %v8457_v30 = vpop.permute.xlu1 %1738  ;;  %v8459_v23 = vpop.permute.xlu0 %1150 }
 0x1fb   :  { %10864 = vst [vmem:[#allocation120_spill] sm:$0xff] %v8457_v30  ;;  %10865 = vst [vmem:[#allocation11_spill] sm:$0xff] %v8459_v23  ;;  %v1088_v51 = vadd.f32 %v10868_v35, %v990_v15  ;;  %v2369_v49 = vadd.f32 %v8272_v59, %v2271_v28  ;;  %v1113_v59 = vmul.f32 %v6952_v42, %v8486_v29  ;;  %v10872_v35 = vld [vmem:[#allocation130_spill] sm:$0xff] }
 0x1fc   :  { %1448 = vrot.lane.b32.xlu1 %v1406_v27, %s6493_s29  ;;  %1058 = vrot.lane.b32.xlu0 %v1015_v37, %s6492_s15  ;;  %v10869_v27 = vld [vmem:[#allocation123_spill] sm:$0xff] }
 0x1fd   :  { %v1186_v37 = vadd.f32 %v10869_v27, %v1088_v51 }
 0x1fe   :  { %v8470_v30 = vpop.permute.xlu1 %2326  ;;  %v8472_v23 = vpop.permute.xlu0 %2128 }
 0x1ff   :  { %10867 = vst [vmem:[#allocation30_spill] sm:$0xff] %v8472_v23 }
 0x200   :  { %2036 = vrot.lane.b32.xlu1 %v1996_v22, %s6493_s29  ;;  %1646 = vrot.lane.b32.xlu0 %v1605_v25, %s6492_s15  ;;  %v1284_v22 = vadd.f32 %v10871_v31, %v1186_v37  ;;  %v2467_v25 = vadd.f32 %v8298_v46, %v2369_v49  ;;  %v1498_v46 = vmul.f32 %v8148_v33, %v7694_v55 }
 0x201   :  { %v2293_v49 = vmul.f32 %v7255_v39, %v8199_v61 }
 0x202   :  { %v8488_v26 = vpop.permute.xlu1 %660  ;;  %v2717_v15 = vpop.permute.xlu0 %2716  ;;  %v1382_v51 = vadd.f32 %v10872_v35, %v1284_v22  ;;  %v2565_v28 = vadd.f32 %v8374_v18, %v2467_v25  ;;  %v2094_v18 = vmul.f32 %v7163_v12, %v8313_v32  ;;  %v5913_v22 = vld [vmem:[%s10542_s2 + $0x3] ss:$0 sm:$0xff] }
 0x203   :  { %10870 = vst [vmem:[#allocation25_spill] sm:$0xff] %v8488_v26 }
 0x204   :  { %568 = vrot.lane.b32.xlu1 %v523_v44, %s6493_s29  ;;  %2624 = vrot.lane.b32.xlu0 %v2586_v5, %s6493_s29  ;;  %v10875_v44 = vld [vmem:[#allocation77_spill] sm:$0xff]  ;;  %v2663_v5 = vadd.f32 %v2619_v6, %v2565_v28  ;;  %v5958_v6 = vld [vmem:[%s10543_s3 + $0x100] sm:$0xff] }
 0x205   :  { %v1480_v37 = vadd.f32 %v10875_v44, %v1382_v51  ;;  %v5960_v28 = vld [vmem:[%s10543_s3 + $0x110] sm:$0xff] }
 0x206   :  { %v8500_v27 = vpop.permute.xlu1 %1836  ;;  %v8502_v26 = vpop.permute.xlu0 %1248  ;;  %v2761_v31 = vadd.f32 %v2717_v15, %v2663_v5  ;;  %v5962_v15 = vld [vmem:[%s10543_s3 + $0x120] sm:$0xff]  ;;  %v5964_v44 = vld [vmem:[%s10543_s3 + $0x130] sm:$0xff] }
 0x207   :  { %10873 = vst [vmem:[#allocation47_spill] sm:$0xff] %v8500_v27  ;;  %10874 = vst [vmem:[#allocation65_spill] sm:$0xff] %v8502_v26  ;;  %v10878_v5 = vld [vmem:[#allocation86_spill] sm:$0xff]  ;;  %v10880_v26 = vld [vmem:[#allocation29_spill] sm:$0xff]  ;;  %v6117_v39 = vpack.c.bf16 %v5964_v44, %v5960_v28 }
 0x208   :  { %1744 = vrot.lane.b32.xlu1 %v1703_v24, %s6492_s15  ;;  %1156 = vrot.lane.b32.xlu0 %v1113_v59, %s6492_s15  ;;  %v1514_v24 = vadd.f32 %v1498_v46, %v1480_v37  ;;  %v10876_v59 = vld [vmem:[#allocation128_spill] sm:$0xff]  ;;  %v10877_v46 = vld [vmem:[#allocation23_spill] sm:$0xff] }
 0x209   :  { %v1532_v35 = vmul.f32 %v10876_v59, %v7710_v48  ;;  %v621_v37 = vmul.f32 %v8389_v62, %v10877_v46  ;;  %v6113_v46 = vpack.c.bf16 %v5962_v15, %v5958_v6  ;;  %v8565_v6 = vld [vmem:[%s10540_s0 + $0x54] sm:$0x3]  ;;  %v10884_v15 = vld [vmem:[#allocation39_spill] sm:$0xff] }
 0x20a   :  { %v2815_v25 = vpop.permute.xlu1 %2814  ;;  %v8516_v33 = vpop.permute.xlu0 %2424  ;;  %v1566_v28 = vmul.f32 %v8565_v6, %v10884_v15 }
 0x20b   :  { %v2859_v51 = vadd.f32 %v2815_v25, %v2761_v31  ;;  %v2684_v31 = vmul.f32 %v10878_v5, %v8199_v61  ;;  %v10879_v25 = vld [vmem:[#allocation10_spill] sm:$0xff]  ;;  %v1548_v48 = vadd.f32 %v1532_v35, %v1514_v24  ;;  %v10885_v24 = vld [vmem:[#allocation64_spill] sm:$0xff] }
 0x20c   :  { %2332 = vrot.lane.b32.xlu1 %v2293_v49, %s6492_s15  ;;  %2134 = vrot.lane.b32.xlu0 %v2094_v18, %s6493_s29  ;;  %v301_v27 = vadd.f32 %v10880_v26, %v10879_v25  ;;  %v5969_v49 = vld [vmem:[%s10543_s3 + $0x148] sm:$0xff]  ;;  %v10883_v25 = vld [vmem:[#allocation46_spill] sm:$0xff] }
 0x20d   :  { %v2987_v23 = vadd.f32 %v5913_v22, %v2859_v51  ;;  %v5973_v26 = vld [vmem:[%s10543_s3 + $0x168] sm:$0xff]  ;;  %v5971_v22 = vld [vmem:[%s10543_s3 + $0x158] sm:$0xff] }
 0x20e   :  { %v8548_v18 = vpop.permute.xlu1 %956  ;;  %v8550_v12 = vpop.permute.xlu0 %758  ;;  %v5975_v51 = vld [vmem:[%s10543_s3 + $0x178] sm:$0xff]  ;;  %v399_v5 = vadd.f32 %v10883_v25, %v301_v27  ;;  %v1211_v27 = vmul.f32 %v10843_v17, %v8049_v3  ;;  %v6119_v25 = vpack.c.bf16 %v5973_v26, %v5969_v49  ;;  %v2782_v3 = vmul.f32 %v10812_v43, %v8413_v13  ;;  %v10889_v49 = vld [vmem:[#allocation112_spill] sm:$0xff] }
 0x20f   :  { %10881 = vst [vmem:[#allocation26_spill] sm:$0xff] %v8548_v18  ;;  %10882 = vst [vmem:[#allocation97_spill] sm:$0xff] %v8550_v12  ;;  %v3003_v44 = vmax.f32 %v2987_v23, 0.0  ;;  %v1801_v18 = vmul.f32 %v7087_v4, %v8543_v14  ;;  %v6123_v12 = vpack.c.bf16 %v5975_v51, %v5971_v22  ;;  %v1582_v4 = vadd.f32 %v1566_v28, %v1548_v48  ;;  %v10892_v51 = vld [vmem:[#allocation113_spill] sm:$0xff] }
 0x210   :  { %666 = vrot.lane.b32.xlu1 %v621_v37, %s6493_s29  ;;  %2722 = vrot.lane.b32.xlu0 %v2684_v31, %s6493_s29  ;;  %v497_v35 = vadd.f32 %v10885_v24, %v399_v5  ;;  %v10888_v37 = vld [vmem:[#allocation109_spill] sm:$0xff]  ;;  %v2391_v5 = vmul.f32 %v7282_v9, %v8413_v13  ;;  %v10894_v24 = vld [vmem:[#allocation87_spill] sm:$0xff] }
 0x211   :  { %5956 = vmatmul.mubr.msk.f32.vlgmr.msra.gmra.mrb[0].mxu0 %vm3033_vm0, %v3003_v44  ;;  %5957 = vmatmul.mubr.msk.f32.vlgmr.msra.gmra.mrb[0].mxu1 %vm3033_vm0, %v3003_v44  ;;  %v10893_v44 = vld [vmem:[#allocation79_spill] sm:$0xff] }
 0x212   :  { %v8578_v15 = vpop.permute.xlu1 %1934  ;;  %v8580_v23 = vpop.permute.xlu0 %1346  ;;  %6114 = vmatpush1.bf16.msra.mxu0 %v6113_v46  ;;  %6118 = vmatpush1.bf16.msra.mxu1 %v6117_v39  ;;  %v595_v31 = vadd.f32 %v10888_v37, %v497_v35  ;;  %v10890_v39 = vld [vmem:[#allocation78_spill] sm:$0xff] }
 0x213   :  { %10886 = vst [vmem:[#allocation134_spill] sm:$0xff] %v8578_v15  ;;  %10887 = vst [vmem:[#allocation98_spill] sm:$0xff] %v8580_v23  ;;  %3716 = vmatprep.mubr.f32.mxu0 %v10779_v0  ;;  %3787 = vmatprep.mubr.f32.mxu1 %v10779_v0  ;;  %v1680_v26 = vadd.f32 %v10890_v39, %v1582_v4  ;;  %v918_v4 = vmul.f32 %v6926_v50, %v8270_v10  ;;  %v10898_v39 = vld [vmem:[#allocation28_spill] sm:$0xff] }
 0x214   :  { %1842 = vrot.lane.b32.xlu1 %v1801_v18, %s6492_s15  ;;  %1254 = vrot.lane.b32.xlu0 %v1211_v27, %s6493_s29  ;;  %v693_v46 = vadd.f32 %v10889_v49, %v595_v31  ;;  %v809_v18 = vmul.f32 %v8220_v40, %v7598_v58  ;;  %v843_v31 = vmul.f32 %v8440_v63, %v7618_v7  ;;  %v10897_v49 = vld [vmem:[#allocation83_spill] sm:$0xff] }
 0x215   :  { %6120 = vmatprep.subr.bf16.mxu0 %v6119_v25  ;;  %6124 = vmatprep.subr.bf16.mxu1 %v6123_v12  ;;  %v1778_v27 = vadd.f32 %v10893_v44, %v1680_v26  ;;  %v719_v12 = vmul.f32 %v8429_v60, %v6907_v20  ;;  %v8632_v44 = vld [vmem:[%s10540_s0 + $0x32] sm:$0x3] }
 0x216   :  { %v8593_v48 = vpop.permute.xlu1 %1054  ;;  %v8595_v22 = vpop.permute.xlu0 %2522  ;;  %v791_v28 = vadd.f32 %v10892_v51, %v693_v46  ;;  %v1309_v46 = vmul.f32 %v6968_v47, %v8270_v10 }
 0x217   :  { %10891 = vst [vmem:[#allocation93_spill] sm:$0xff] %v8593_v48  ;;  %v1876_v35 = vadd.f32 %v10894_v24, %v1778_v27 }
 0x218   :  { %2820 = vrot.lane.b32.xlu1 %v2782_v3, %s6493_s29  ;;  %2430 = vrot.lane.b32.xlu0 %v2391_v5, %s6492_s15  ;;  %v825_v40 = vadd.f32 %v809_v18, %v791_v28  ;;  %v1899_v5 = vmul.f32 %v7109_v11, %v8126_v54  ;;  %v8625_v18 = vld [vmem:[%s10540_s0 + $0x7e] sm:$0x3]  ;;  %v877_v54 = vmul.f32 %v8632_v44, %v7637_v56 }
 0x219   :  { %v1974_v3 = vadd.f32 %v10897_v49, %v1876_v35  ;;  %v8644_v35 = vld [vmem:[%s10540_s0 + $0x20] sm:$0x3] }
 0x21a   :  { %v8608_v25 = vpop.permute.xlu1 %1642  ;;  %v8610_v37 = vpop.permute.xlu0 %1444  ;;  %v859_v27 = vadd.f32 %v843_v31, %v825_v40  ;;  %v426_v49 = vmul.f32 %v8644_v35, %v10862_v45  ;;  %v2489_v40 = vmul.f32 %v7324_v19, %v8625_v18 }
 0x21b   :  { %10895 = vst [vmem:[#allocation101_spill] sm:$0xff] %v8608_v25  ;;  %10896 = vst [vmem:[#allocation27_spill] sm:$0xff] %v8610_v37  ;;  %v2072_v26 = vadd.f32 %v10898_v39, %v1974_v3  ;;  %v2256_v37 = vmul.f32 %v7828_v53, %v7994_v1  ;;  %v524_v1 = vmul.f32 %v8389_v62, %v6899_v16  ;;  %v10913_v62 = vld [vmem:[#allocation45_spill] sm:$0xff] }
 0x21c   :  { %962 = vrot.lane.b32.xlu1 %v918_v4, %s6492_s15  ;;  %764 = vrot.lane.b32.xlu0 %v719_v12, %s6493_s29  ;;  %v2188_v4 = vmul.f32 %v8447_v36, %v7798_v52  ;;  %v10900_v12 = vld [vmem:[#allocation85_spill] sm:$0xff]  ;;  %v893_v3 = vadd.f32 %v877_v54, %v859_v27 }
 0x21d   :  { %v2170_v24 = vadd.f32 %v10900_v12, %v2072_v26  ;;  %v1407_v26 = vmul.f32 %v6981_v57, %v8486_v29  ;;  %v1016_v12 = vmul.f32 %v10751_v21, %v8486_v29  ;;  %v10903_v54 = vld [vmem:[#allocation61_spill] sm:$0xff] }
 0x21e   :  { %v2621_v51 = vpop.permute.xlu1 %2620  ;;  %v8627_v28 = vpop.permute.xlu0 %2032  ;;  %v991_v27 = vadd.f32 %v10903_v54, %v893_v3  ;;  %v1606_v3 = vmul.f32 %v7038_v38, %v8313_v32  ;;  %v10907_v54 = vld [vmem:[#allocation24_spill] sm:$0xff] }
 0x21f   :  { %10899 = vst [vmem:[#allocation107_spill] sm:$0xff] %v8627_v28  ;;  %v2204_v39 = vadd.f32 %v2188_v4, %v2170_v24 }
 0x220   :  { %1940 = vrot.lane.b32.xlu1 %v1899_v5, %s6493_s29  ;;  %1352 = vrot.lane.b32.xlu0 %v1309_v46, %s6493_s29  ;;  %v8657_v5 = vld [vmem:[%s10540_s0 + $0x76] sm:$0x3] }
 0x221   :  { %v2222_v46 = vmul.f32 %v8657_v5, %v7814_v41 }
 0x222   :  { %v8650_v31 = vpop.permute.xlu1 %1152  ;;  %v8652_v36 = vpop.permute.xlu0 %564 }
 0x223   :  { %10901 = vst [vmem:[#allocation80_spill] sm:$0xff] %v8650_v31  ;;  %10902 = vst [vmem:[#allocation22_spill] sm:$0xff] %v8652_v36  ;;  %v10906_v31 = vld [vmem:[#allocation75_spill] sm:$0xff] }
 0x224   :  { %472 = vrot.lane.b32.xlu1 %v426_v49, %s6492_s15  ;;  %2528 = vrot.lane.b32.xlu0 %v2489_v40, %s6492_s15  ;;  %v1089_v48 = vadd.f32 %v10906_v31, %v991_v27  ;;  %v2238_v49 = vadd.f32 %v2222_v46, %v2204_v39  ;;  %v1997_v40 = vmul.f32 %v7131_v34, %v8313_v32  ;;  %v10908_v31 = vld [vmem:[#allocation84_spill] sm:$0xff]  ;;  %v10909_v46 = vld [vmem:[#allocation95_spill] sm:$0xff] }
 0x225   :  { %v2587_v39 = vmul.f32 %v7346_v8, %v8199_v61 }
 0x226   :  { %v8668_v4 = vpop.permute.xlu1 %2130  ;;  %v8670_v24 = vpop.permute.xlu0 %1740  ;;  %v1187_v23 = vadd.f32 %v10907_v54, %v1089_v48  ;;  %v2272_v25 = vadd.f32 %v2256_v37, %v2238_v49  ;;  %v1499_v49 = vmul.f32 %v10876_v59, %v7694_v55 }
 0x227   :  { %10904 = vst [vmem:[#allocation116_spill] sm:$0xff] %v8668_v4  ;;  %10905 = vst [vmem:[#allocation117_spill] sm:$0xff] %v8670_v24  ;;  %v10922_v4 = vld [vmem:[#allocation32_spill] sm:$0xff] }
 0x228   :  { %1450 = vrot.lane.b32.xlu1 %v1407_v26, %s6493_s29  ;;  %1060 = vrot.lane.b32.xlu0 %v1016_v12, %s6492_s15  ;;  %v1285_v27 = vadd.f32 %v10908_v31, %v1187_v23  ;;  %v2370_v48 = vadd.f32 %v8470_v30, %v2272_v25  ;;  %v8696_v12 = vld [vmem:[%s10540_s0 + $0x40] sm:$0x3]  ;;  %v1704_v30 = vmul.f32 %v7070_v2, %v8543_v14 }
 0x229   :  { %10910 = vst [vmem:[#allocation123_spill] sm:$0xff] %v8696_v12  ;;  %v1114_v25 = vmul.f32 %v6952_v42, %v8696_v12 }
 0x22a   :  { %v2719_v36 = vpop.permute.xlu1 %2718  ;;  %v8682_v24 = vpop.permute.xlu0 %2328  ;;  %v1383_v26 = vadd.f32 %v10909_v46, %v1285_v27  ;;  %v10915_v46 = vld [vmem:[#allocation127_spill] sm:$0xff] }
 0x22c   :  { %2038 = vrot.lane.b32.xlu1 %v1997_v40, %s6493_s29  ;;  %1648 = vrot.lane.b32.xlu0 %v1606_v3, %s6492_s15  ;;  %v1481_v40 = vadd.f32 %v10913_v62, %v1383_v26  ;;  %v2468_v3 = vadd.f32 %v8516_v33, %v2370_v48  ;;  %v1533_v33 = vmul.f32 %v8565_v6, %v10915_v46  ;;  %v10917_v48 = vld [vmem:[#allocation56_spill] sm:$0xff] }
 0x22d   :  { %v2095_v62 = vmul.f32 %v10917_v48, %v8543_v14 }
 0x22e   :  { %v8698_v23 = vpop.permute.xlu1 %1250  ;;  %v8700_v37 = vpop.permute.xlu0 %662  ;;  %v2566_v54 = vadd.f32 %v8595_v22, %v2468_v3  ;;  %v1515_v59 = vadd.f32 %v1499_v49, %v1481_v40  ;;  %v5914_v49 = vld [vmem:[%s10542_s2 + $0x4] ss:$0 sm:$0xff] }
 0x22f   :  { %10911 = vst [vmem:[#allocation125_spill] sm:$0xff] %v8698_v23  ;;  %10912 = vst [vmem:[#allocation130_spill] sm:$0xff] %v8700_v37  ;;  %v5972_v23 = vld [vmem:[%s10543_s3 + $0x160] sm:$0xff]  ;;  %v5974_v37 = vld [vmem:[%s10543_s3 + $0x170] sm:$0xff] }
 0x230   :  { %570 = vrot.lane.b32.xlu1 %v524_v1, %s6493_s29  ;;  %2626 = vrot.lane.b32.xlu0 %v2587_v39, %s6493_s29  ;;  %v2664_v26 = vadd.f32 %v2621_v51, %v2566_v54  ;;  %v10916_v1 = vld [vmem:[#allocation72_spill] sm:$0xff] }
 0x231   :  { %v2294_v39 = vmul.f32 %v10916_v1, %v8413_v13  ;;  %v5968_v51 = vld [vmem:[%s10543_s3 + $0x140] sm:$0xff] }
 0x232   :  { %v8713_v31 = vpop.permute.xlu1 %2426  ;;  %v8715_v27 = vpop.permute.xlu0 %1838  ;;  %v2762_v22 = vadd.f32 %v2719_v36, %v2664_v26  ;;  %v1549_v36 = vadd.f32 %v1533_v33, %v1515_v59  ;;  %v10923_v59 = vld [vmem:[#allocation23_spill] sm:$0xff] }
 0x233   :  { %10914 = vst [vmem:[#allocation77_spill] sm:$0xff] %v8715_v27  ;;  %v10921_v27 = vld [vmem:[#allocation13_spill] sm:$0xff]  ;;  %v622_v33 = vmul.f32 %v8429_v60, %v10923_v59  ;;  %v6121_v59 = vpack.c.bf16 %v5972_v23, %v5968_v51  ;;  %v10929_v23 = vld [vmem:[#allocation43_spill] sm:$0xff]  ;;  %v10930_v51 = vld [vmem:[#allocation104_spill] sm:$0xff] }
 0x234   :  { %1746 = vrot.lane.b32.xlu1 %v1704_v30, %s6492_s15  ;;  %1158 = vrot.lane.b32.xlu0 %v1114_v25, %s6492_s15  ;;  %v8736_v30 = vld [vmem:[%s10540_s0 + $0x56] sm:$0x3]  ;;  %v10920_v25 = vld [vmem:[#allocation39_spill] sm:$0xff]  ;;  %v302_v28 = vadd.f32 %v10922_v4, %v10921_v27  ;;  %v5979_v4 = vld [vmem:[%s10543_s3 + $0x188] sm:$0xff] }
 0x235   :  { %10919 = vst [vmem:[#allocation10_spill] sm:$0xff] %v8736_v30  ;;  %v1567_v54 = vmul.f32 %v8736_v30, %v10920_v25  ;;  %v8760_v25 = vld [vmem:[%s10540_s0 + $0x60] sm:$0x3]  ;;  %v10925_v27 = vld [vmem:[#allocation49_spill] sm:$0xff] }
 0x236   :  { %v8725_v3 = vpop.permute.xlu1 %760  ;;  %v2817_v40 = vpop.permute.xlu0 %2816 }
 0x237   :  { %10918 = vst [vmem:[#allocation128_spill] sm:$0xff] %v8725_v3  ;;  %v2860_v26 = vadd.f32 %v2817_v40, %v2762_v22  ;;  %v5970_v3 = vld [vmem:[%s10543_s3 + $0x150] sm:$0xff]  ;;  %v1583_v30 = vadd.f32 %v1567_v54, %v1549_v36 }
 0x238   :  { %2334 = vrot.lane.b32.xlu1 %v2294_v39, %s6492_s15  ;;  %2136 = vrot.lane.b32.xlu0 %v2095_v62, %s6493_s29  ;;  %v10924_v22 = vld [vmem:[#allocation86_spill] sm:$0xff]  ;;  %v400_v39 = vadd.f32 %v10925_v27, %v302_v28  ;;  %v6125_v1 = vpack.c.bf16 %v5974_v37, %v5970_v3  ;;  %v10928_v27 = vld [vmem:[#allocation67_spill] sm:$0xff]  ;;  %v1802_v37 = vmul.f32 %v10929_v23, %v8760_v25 }
 0x239   :  { %v2685_v40 = vmul.f32 %v10924_v22, %v8413_v13  ;;  %v2988_v15 = vadd.f32 %v5914_v49, %v2860_v26  ;;  %v5983_v49 = vld [vmem:[%s10543_s3 + $0x1a8] sm:$0xff]  ;;  %v5981_v26 = vld [vmem:[%s10543_s3 + $0x198] sm:$0xff]  ;;  %v1212_v3 = vmul.f32 %v10843_v17, %v8270_v10  ;;  %v2783_v10 = vmul.f32 %v10812_v43, %v8625_v18 }
 0x23a   :  { %v8766_v48 = vpop.permute.xlu1 %1348  ;;  %v8768_v62 = vpop.permute.xlu0 %958  ;;  %v5985_v22 = vld [vmem:[%s10543_s3 + $0x1b8] sm:$0xff]  ;;  %v6127_v54 = vpack.c.bf16 %v5983_v49, %v5979_v4  ;;  %v810_v49 = vmul.f32 %v8440_v63, %v7598_v58 }
 0x23b   :  { %10926 = vst [vmem:[#allocation29_spill] sm:$0xff] %v8766_v48  ;;  %10927 = vst [vmem:[#allocation46_spill] sm:$0xff] %v8768_v62  ;;  %v3004_v28 = vmax.f32 %v2988_v15, 0.0  ;;  %v498_v48 = vadd.f32 %v10928_v27, %v400_v39  ;;  %v1681_v62 = vadd.f32 %v10930_v51, %v1583_v30  ;;  %v6131_v15 = vpack.c.bf16 %v5985_v22, %v5981_v26  ;;  %v10933_v27 = vld [vmem:[#allocation94_spill] sm:$0xff]  ;;  %v10935_v22 = vld [vmem:[#allocation91_spill] sm:$0xff] }
 0x23c   :  { %668 = vrot.lane.b32.xlu1 %v622_v33, %s6493_s29  ;;  %2724 = vrot.lane.b32.xlu0 %v2685_v40, %s6493_s29  ;;  %v10932_v33 = vld [vmem:[#allocation121_spill] sm:$0xff]  ;;  %v2392_v30 = vmul.f32 %v7282_v9, %v8625_v18  ;;  %v720_v51 = vmul.f32 %v8644_v35, %v6907_v20 }
 0x23d   :  { %5966 = vmatmul.mubr.msk.f32.vlgmr.msra.gmra.mrb[0].mxu0 %vm3033_vm0, %v3004_v28  ;;  %5967 = vmatmul.mubr.msk.f32.vlgmr.msra.gmra.mrb[0].mxu1 %vm3033_vm0, %v3004_v28  ;;  %v596_v40 = vadd.f32 %v10932_v33, %v498_v48  ;;  %v1779_v23 = vadd.f32 %v10933_v27, %v1681_v62  ;;  %v10938_v26 = vld [vmem:[#allocation129_spill] sm:$0xff]  ;;  %v844_v27 = vmul.f32 %v8632_v44, %v7618_v7 }
 0x23e   :  { %v8789_v36 = vpop.permute.xlu1 %2524  ;;  %v8791_v39 = vpop.permute.xlu0 %1936  ;;  %6122 = vmatpush1.bf16.msra.mxu0 %v6121_v59  ;;  %6126 = vmatpush1.bf16.msra.mxu1 %v6125_v1  ;;  %v10934_v59 = vld [vmem:[#allocation126_spill] sm:$0xff] }
 0x23f   :  { %10931 = vst [vmem:[#allocation64_spill] sm:$0xff] %v8791_v39  ;;  %3874 = vmatprep.mubr.f32.mxu0 %v10779_v0  ;;  %3945 = vmatprep.mubr.f32.mxu1 %v10779_v0  ;;  %v694_v1 = vadd.f32 %v10934_v59, %v596_v40  ;;  %v1877_v48 = vadd.f32 %v10935_v22, %v1779_v23 }
 0x240   :  { %1844 = vrot.lane.b32.xlu1 %v1802_v37, %s6492_s15  ;;  %1256 = vrot.lane.b32.xlu0 %v1212_v3, %s6493_s29  ;;  %v10939_v37 = vld [vmem:[#allocation82_spill] sm:$0xff]  ;;  %v919_v23 = vmul.f32 %v6926_v50, %v8486_v29  ;;  %v1310_v22 = vmul.f32 %v6968_v47, %v8486_v29 }
 0x241   :  { %6128 = vmatprep.subr.bf16.mxu0 %v6127_v54  ;;  %6132 = vmatprep.subr.bf16.mxu1 %v6131_v15  ;;  %v792_v28 = vadd.f32 %v10938_v26, %v694_v1  ;;  %v1975_v3 = vadd.f32 %v10939_v37, %v1877_v48  ;;  %v10940_v54 = vld [vmem:[#allocation108_spill] sm:$0xff]  ;;  %v1900_v1 = vmul.f32 %v7109_v11, %v8313_v32  ;;  %v8838_v48 = vld [vmem:[%s10540_s0 + $0x80] sm:$0x3] }
 0x242   :  { %v8805_v4 = vpop.permute.xlu1 %1446  ;;  %v8807_v62 = vpop.permute.xlu0 %1056  ;;  %10944 = vst [vmem:[#allocation79_spill] sm:$0xff] %v8838_v48 }
 0x243   :  { %10936 = vst [vmem:[#allocation109_spill] sm:$0xff] %v8805_v4  ;;  %10937 = vst [vmem:[#allocation112_spill] sm:$0xff] %v8807_v62  ;;  %v2073_v15 = vadd.f32 %v10940_v54, %v1975_v3  ;;  %v826_v63 = vadd.f32 %v810_v49, %v792_v28  ;;  %v8845_v28 = vld [vmem:[%s10540_s0 + $0x34] sm:$0x3]  ;;  %v8852_v3 = vld [vmem:[%s10540_s0 + $0x78] sm:$0x3] }
 0x244   :  { %2822 = vrot.lane.b32.xlu1 %v2783_v10, %s6493_s29  ;;  %2432 = vrot.lane.b32.xlu0 %v2392_v30, %s6492_s15  ;;  %v2189_v10 = vmul.f32 %v8657_v5, %v7798_v52  ;;  %v10943_v30 = vld [vmem:[#allocation30_spill] sm:$0xff]  ;;  %v878_v32 = vmul.f32 %v8845_v28, %v7637_v56 }
 0x245   :  { %v2171_v59 = vadd.f32 %v10943_v30, %v2073_v15  ;;  %v860_v26 = vadd.f32 %v844_v27, %v826_v63  ;;  %v2490_v15 = vmul.f32 %v7324_v19, %v8838_v48  ;;  %v10953_v62 = vld [vmem:[#allocation90_spill] sm:$0xff] }
 0x246   :  { %v8820_v33 = vpop.permute.xlu1 %2034  ;;  %v8822_v40 = vpop.permute.xlu0 %1644 }
 0x247   :  { %10941 = vst [vmem:[#allocation78_spill] sm:$0xff] %v8820_v33  ;;  %10942 = vst [vmem:[#allocation113_spill] sm:$0xff] %v8822_v40  ;;  %v2205_v37 = vadd.f32 %v2189_v10, %v2171_v59  ;;  %v894_v10 = vadd.f32 %v878_v32, %v860_v26  ;;  %v2257_v59 = vmul.f32 %v7828_v53, %v8199_v61  ;;  %v10950_v26 = vld [vmem:[#allocation63_spill] sm:$0xff] }
 0x248   :  { %964 = vrot.lane.b32.xlu1 %v919_v23, %s6492_s15  ;;  %766 = vrot.lane.b32.xlu0 %v720_v51, %s6493_s29  ;;  %v2223_v23 = vmul.f32 %v8852_v3, %v7814_v41  ;;  %v8861_v51 = vld [vmem:[%s10540_s0 + $0x22] sm:$0x3]  ;;  %v1998_v61 = vmul.f32 %v7131_v34, %v8543_v14 }
 0x249   :  { %v427_v54 = vmul.f32 %v8861_v51, %v10862_v45  ;;  %v1017_v45 = vmul.f32 %v10751_v21, %v8696_v12 }
 0x24a   :  { %v8840_v49 = vpop.permute.xlu1 %566  ;;  %v2623_v5 = vpop.permute.xlu0 %2622  ;;  %v2239_v30 = vadd.f32 %v2223_v23, %v2205_v37  ;;  %v1607_v23 = vmul.f32 %v7038_v38, %v8543_v14 }
 0x24b   :  { %10945 = vst [vmem:[#allocation87_spill] sm:$0xff] %v8840_v49  ;;  %v10965_v49 = vld [vmem:[#allocation86_spill] sm:$0xff] }
 0x24c   :  { %1942 = vrot.lane.b32.xlu1 %v1900_v1, %s6493_s29  ;;  %1354 = vrot.lane.b32.xlu0 %v1310_v22, %s6493_s29  ;;  %v1408_v1 = vmul.f32 %v6981_v57, %v8696_v12  ;;  %v10948_v22 = vld [vmem:[#allocation8_spill] sm:$0xff]  ;;  %v2273_v37 = vadd.f32 %v2257_v59, %v2239_v30  ;;  %v525_v59 = vmul.f32 %v8429_v60, %v6899_v16  ;;  %v10957_v16 = vld [vmem:[#allocation9_spill] sm:$0xff] }
 0x24d   :  { %v992_v4 = vadd.f32 %v10948_v22, %v894_v10 }
 0x24e   :  { %v8867_v63 = vpop.permute.xlu1 %1742  ;;  %v8869_v27 = vpop.permute.xlu0 %1154  ;;  %v2371_v10 = vadd.f32 %v8682_v24, %v2273_v37  ;;  %v1500_v37 = vmul.f32 %v8565_v6, %v7694_v55 }
 0x24f   :  { %10946 = vst [vmem:[#allocation83_spill] sm:$0xff] %v8867_v63  ;;  %10947 = vst [vmem:[#allocation28_spill] sm:$0xff] %v8869_v27  ;;  %v1090_v32 = vadd.f32 %v10950_v26, %v992_v4 }
 0x250   :  { %474 = vrot.lane.b32.xlu1 %v427_v54, %s6492_s15  ;;  %2530 = vrot.lane.b32.xlu0 %v2490_v15, %s6492_s15  ;;  %v10951_v54 = vld [vmem:[#allocation114_spill] sm:$0xff]  ;;  %v2469_v30 = vadd.f32 %v8713_v31, %v2371_v10 }
 0x251   :  { %v1188_v15 = vadd.f32 %v10951_v54, %v1090_v32 }
 0x252   :  { %v8880_v63 = vpop.permute.xlu1 %2330  ;;  %v8882_v40 = vpop.permute.xlu0 %2132  ;;  %v2567_v24 = vadd.f32 %v8789_v36, %v2469_v30  ;;  %v1705_v36 = vmul.f32 %v7070_v2, %v8760_v25  ;;  %v10958_v30 = vld [vmem:[#allocation10_spill] sm:$0xff] }
 0x253   :  { %10949 = vst [vmem:[#allocation85_spill] sm:$0xff] %v8882_v40  ;;  %v1286_v4 = vadd.f32 %v10953_v62, %v1188_v15  ;;  %v8908_v62 = vld [vmem:[%s10540_s0 + $0x42] sm:$0x3]  ;;  %v5915_v15 = vld [vmem:[%s10542_s2 + $0x5] ss:$0 sm:$0xff]  ;;  %v2686_v40 = vmul.f32 %v10965_v49, %v8625_v18 }
 0x254   :  { %1452 = vrot.lane.b32.xlu1 %v1408_v1, %s6493_s29  ;;  %1062 = vrot.lane.b32.xlu0 %v1017_v45, %s6492_s15  ;;  %v2588_v1 = vmul.f32 %v7346_v8, %v8413_v13  ;;  %v10954_v45 = vld [vmem:[#allocation99_spill] sm:$0xff] }
 0x255   :  { %v1384_v26 = vadd.f32 %v10954_v45, %v1286_v4  ;;  %v5980_v45 = vld [vmem:[%s10543_s3 + $0x190] sm:$0xff] }
 0x256   :  { %v8893_v22 = vpop.permute.xlu1 %664  ;;  %v2721_v27 = vpop.permute.xlu0 %2720 }
 0x257   :  { %10952 = vst [vmem:[#allocation61_spill] sm:$0xff] %v8893_v22  ;;  %v1482_v60 = vadd.f32 %v10957_v16, %v1384_v26  ;;  %v5984_v26 = vld [vmem:[%s10543_s3 + $0x1b0] sm:$0xff]  ;;  %v10960_v16 = vld [vmem:[#allocation56_spill] sm:$0xff] }
 0x258   :  { %2040 = vrot.lane.b32.xlu1 %v1998_v61, %s6493_s29  ;;  %1650 = vrot.lane.b32.xlu0 %v1607_v23, %s6492_s15  ;;  %v2665_v61 = vadd.f32 %v2623_v5, %v2567_v24  ;;  %v1115_v23 = vmul.f32 %v6952_v42, %v8908_v62  ;;  %v5978_v5 = vld [vmem:[%s10543_s3 + $0x180] sm:$0xff]  ;;  %v6133_v22 = vpack.c.bf16 %v5984_v26, %v5980_v45 }
 0x259   :  { %v1516_v4 = vadd.f32 %v1500_v37, %v1482_v60  ;;  %v10959_v24 = vld [vmem:[#allocation72_spill] sm:$0xff]  ;;  %v2096_v60 = vmul.f32 %v10960_v16, %v8760_v25  ;;  %v10964_v26 = vld [vmem:[#allocation23_spill] sm:$0xff] }
 0x25a   :  { %v8910_v31 = vpop.permute.xlu1 %1840  ;;  %v8912_v32 = vpop.permute.xlu0 %1252  ;;  %v2763_v54 = vadd.f32 %v2721_v27, %v2665_v61  ;;  %v5982_v27 = vld [vmem:[%s10543_s3 + $0x1a0] sm:$0xff]  ;;  %v2295_v37 = vmul.f32 %v10959_v24, %v8625_v18 }
 0x25b   :  { %10955 = vst [vmem:[#allocation75_spill] sm:$0xff] %v8910_v31  ;;  %10956 = vst [vmem:[#allocation24_spill] sm:$0xff] %v8912_v32  ;;  %v6129_v32 = vpack.c.bf16 %v5982_v27, %v5978_v5  ;;  %v10963_v5 = vld [vmem:[#allocation39_spill] sm:$0xff] }
 0x25c   :  { %572 = vrot.lane.b32.xlu1 %v525_v59, %s6493_s29  ;;  %2628 = vrot.lane.b32.xlu0 %v2588_v1, %s6493_s29  ;;  %v1534_v59 = vmul.f32 %v10958_v30, %v10915_v46 }
 0x25e   :  { %v2819_v10 = vpop.permute.xlu1 %2818  ;;  %v8926_v6 = vpop.permute.xlu0 %2428 }
 0x25f   :  { %v2861_v1 = vadd.f32 %v2819_v10, %v2763_v54  ;;  %v5989_v54 = vld [vmem:[%s10543_s3 + $0x1c8] sm:$0xff] }
 0x260   :  { %1748 = vrot.lane.b32.xlu1 %v1705_v36, %s6492_s15  ;;  %1160 = vrot.lane.b32.xlu0 %v1115_v23, %s6492_s15  ;;  %v5993_v36 = vld [vmem:[%s10543_s3 + $0x1e8] sm:$0xff]  ;;  %v5991_v23 = vld [vmem:[%s10543_s3 + $0x1d8] sm:$0xff] }
 0x261   :  { %v2989_v61 = vadd.f32 %v5915_v15, %v2861_v1  ;;  %v5995_v15 = vld [vmem:[%s10543_s3 + $0x1f8] sm:$0xff]  ;;  %v1550_v1 = vadd.f32 %v1534_v59, %v1516_v4  ;;  %v10966_v4 = vld [vmem:[#allocation12_spill] sm:$0xff] }
 0x262   :  { %v8951_v10 = vpop.permute.xlu1 %960  ;;  %v8953_v31 = vpop.permute.xlu0 %762  ;;  %v10967_v59 = vld [vmem:[#allocation31_spill] sm:$0xff] }
 0x263   :  { %10961 = vst [vmem:[#allocation84_spill] sm:$0xff] %v8951_v10  ;;  %10962 = vst [vmem:[#allocation95_spill] sm:$0xff] %v8953_v31  ;;  %v8967_v10 = vld [vmem:[%s10540_s0 + $0x58] sm:$0x3]  ;;  %v3005_v45 = vmax.f32 %v2989_v61, 0.0  ;;  %v623_v31 = vmul.f32 %v8644_v35, %v10964_v26  ;;  %v303_v33 = vadd.f32 %v10967_v59, %v10966_v4  ;;  %v10970_v26 = vld [vmem:[#allocation48_spill] sm:$0xff] }
 0x264   :  { %v1568_v27 = vmul.f32 %v8967_v10, %v10963_v5  ;;  %2336 = vrot.lane.b32.xlu1 %v2295_v37, %s6492_s15  ;;  %2138 = vrot.lane.b32.xlu0 %v2096_v60, %s6493_s29  ;;  %v8984_v61 = vld [vmem:[%s10540_s0 + $0x62] sm:$0x3]  ;;  %v6135_v37 = vpack.c.bf16 %v5993_v36, %v5989_v54  ;;  %v6139_v60 = vpack.c.bf16 %v5995_v15, %v5991_v23  ;;  %v10972_v15 = vld [vmem:[#allocation66_spill] sm:$0xff]  ;;  %v10976_v59 = vld [vmem:[#allocation120_spill] sm:$0xff] }
 0x265   :  { %5976 = vmatmul.mubr.msk.f32.vlgmr.msra.gmra.mrb[0].mxu0 %vm3033_vm0, %v3005_v45  ;;  %5977 = vmatmul.mubr.msk.f32.vlgmr.msra.gmra.mrb[0].mxu1 %vm3033_vm0, %v3005_v45  ;;  %v401_v5 = vadd.f32 %v10970_v26, %v303_v33  ;;  %v10971_v54 = vld [vmem:[#allocation43_spill] sm:$0xff]  ;;  %v1213_v23 = vmul.f32 %v10843_v17, %v8486_v29  ;;  %v2784_v29 = vmul.f32 %v10812_v43, %v8838_v48 }
 0x266   :  { %v8986_v39 = vpop.permute.xlu1 %1938  ;;  %v8988_v35 = vpop.permute.xlu0 %1350  ;;  %6130 = vmatpush1.bf16.msra.mxu0 %v6129_v32  ;;  %6134 = vmatpush1.bf16.msra.mxu1 %v6133_v22  ;;  %v1584_v4 = vadd.f32 %v1568_v27, %v1550_v1  ;;  %v1803_v36 = vmul.f32 %v10971_v54, %v8984_v61  ;;  %v10973_v22 = vld [vmem:[#allocation111_spill] sm:$0xff]  ;;  %v10975_v27 = vld [vmem:[#allocation132_spill] sm:$0xff] }
 0x267   :  { %10968 = vst [vmem:[#allocation45_spill] sm:$0xff] %v8986_v39  ;;  %10969 = vst [vmem:[#allocation127_spill] sm:$0xff] %v8988_v35  ;;  %4032 = vmatprep.mubr.f32.mxu0 %v10779_v0  ;;  %4103 = vmatprep.mubr.f32.mxu1 %v10779_v0  ;;  %v499_v32 = vadd.f32 %v10972_v15, %v401_v5  ;;  %v2393_v5 = vmul.f32 %v7282_v9, %v8838_v48  ;;  %v10978_v26 = vld [vmem:[#allocation47_spill] sm:$0xff] }
 0x268   :  { %670 = vrot.lane.b32.xlu1 %v623_v31, %s6493_s29  ;;  %2726 = vrot.lane.b32.xlu0 %v2686_v40, %s6493_s29  ;;  %v1682_v45 = vadd.f32 %v10973_v22, %v1584_v4 }
 0x269   :  { %6136 = vmatprep.subr.bf16.mxu0 %v6135_v37  ;;  %6140 = vmatprep.subr.bf16.mxu1 %v6139_v60  ;;  %v597_v31 = vadd.f32 %v10975_v27, %v499_v32  ;;  %v10977_v37 = vld [vmem:[#allocation88_spill] sm:$0xff]  ;;  %v811_v32 = vmul.f32 %v8632_v44, %v7598_v58 }
 0x26a   :  { %v9001_v33 = vpop.permute.xlu1 %470  ;;  %v9003_v1 = vpop.permute.xlu0 %2526  ;;  %v1780_v40 = vadd.f32 %v10976_v59, %v1682_v45  ;;  %v721_v59 = vmul.f32 %v8861_v51, %v6907_v20  ;;  %v1901_v20 = vmul.f32 %v7109_v11, %v8543_v14  ;;  %v1311_v51 = vmul.f32 %v6968_v47, %v8696_v12 }
 0x26b   :  { %10974 = vst [vmem:[#allocation13_spill] sm:$0xff] %v9001_v33  ;;  %v695_v60 = vadd.f32 %v10977_v37, %v597_v31  ;;  %v920_v31 = vmul.f32 %v6926_v50, %v8696_v12 }
 0x26c   :  { %1846 = vrot.lane.b32.xlu1 %v1803_v36, %s6492_s15  ;;  %1258 = vrot.lane.b32.xlu0 %v1213_v23, %s6493_s29  ;;  %v1878_v4 = vadd.f32 %v10978_v26, %v1780_v40  ;;  %v10981_v36 = vld [vmem:[#allocation51_spill] sm:$0xff]  ;;  %v10982_v23 = vld [vmem:[#allocation134_spill] sm:$0xff] }
 0x26d   :  { %v793_v45 = vadd.f32 %v10981_v36, %v695_v60  ;;  %v10983_v40 = vld [vmem:[#allocation107_spill] sm:$0xff]  ;;  %v845_v60 = vmul.f32 %v8845_v28, %v7618_v7 }
 0x26e   :  { %v9015_v15 = vpop.permute.xlu1 %1448  ;;  %v9017_v22 = vpop.permute.xlu0 %1058  ;;  %v1976_v27 = vadd.f32 %v10982_v23, %v1878_v4 }
 0x26f   :  { %10979 = vst [vmem:[#allocation32_spill] sm:$0xff] %v9015_v15  ;;  %10980 = vst [vmem:[#allocation49_spill] sm:$0xff] %v9017_v22  ;;  %v827_v44 = vadd.f32 %v811_v32, %v793_v45  ;;  %v9048_v32 = vld [vmem:[%s10540_s0 + $0x82] sm:$0x3]  ;;  %v9055_v45 = vld [vmem:[%s10540_s0 + $0x36] sm:$0x3] }
 0x270   :  { %2824 = vrot.lane.b32.xlu1 %v2784_v29, %s6493_s29  ;;  %2434 = vrot.lane.b32.xlu0 %v2393_v5, %s6492_s15  ;;  %v2074_v37 = vadd.f32 %v10983_v40, %v1976_v27  ;;  %v2190_v29 = vmul.f32 %v8852_v3, %v7798_v52  ;;  %v10986_v5 = vld [vmem:[#allocation116_spill] sm:$0xff]  ;;  %10988 = vst [vmem:[#allocation94_spill] sm:$0xff] %v9055_v45  ;;  %v11005_v22 = vld [vmem:[#allocation34_spill] sm:$0xff] }
 0x271   :  { %v879_v23 = vmul.f32 %v9055_v45, %v7637_v56  ;;  %v861_v14 = vadd.f32 %v845_v60, %v827_v44  ;;  %v1018_v40 = vmul.f32 %v10751_v21, %v8908_v62 }
 0x272   :  { %v9030_v26 = vpop.permute.xlu1 %2036  ;;  %v9032_v39 = vpop.permute.xlu0 %1646  ;;  %v2172_v4 = vadd.f32 %v10986_v5, %v2074_v37  ;;  %v2491_v37 = vmul.f32 %v7324_v19, %v9048_v32  ;;  %v2258_v5 = vmul.f32 %v7828_v53, %v8413_v13 }
 0x273   :  { %10984 = vst [vmem:[#allocation67_spill] sm:$0xff] %v9030_v26  ;;  %10985 = vst [vmem:[#allocation104_spill] sm:$0xff] %v9032_v39  ;;  %v10991_v39 = vld [vmem:[#allocation92_spill] sm:$0xff] }
 0x274   :  { %966 = vrot.lane.b32.xlu1 %v920_v31, %s6492_s15  ;;  %768 = vrot.lane.b32.xlu0 %v721_v59, %s6493_s29  ;;  %v2206_v27 = vadd.f32 %v2190_v29, %v2172_v4  ;;  %v9062_v31 = vld [vmem:[%s10540_s0 + $0x7a] sm:$0x3]  ;;  %v895_v29 = vadd.f32 %v879_v23, %v861_v14  ;;  %v10993_v23 = vld [vmem:[#allocation103_spill] sm:$0xff] }
 0x275   :  { %v2224_v59 = vmul.f32 %v9062_v31, %v7814_v41 }
 0x276   :  { %v9050_v36 = vpop.permute.xlu1 %568  ;;  %v2625_v3 = vpop.permute.xlu0 %2624  ;;  %v993_v26 = vadd.f32 %v10991_v39, %v895_v29  ;;  %v9101_v29 = vld [vmem:[%s10540_s0 + $0x44] sm:$0x3] }
 0x277   :  { %10987 = vst [vmem:[#allocation121_spill] sm:$0xff] %v9050_v36  ;;  %v2240_v4 = vadd.f32 %v2224_v59, %v2206_v27  ;;  %v2589_v27 = vmul.f32 %v7346_v8, %v8625_v18  ;;  %v1999_v59 = vmul.f32 %v7131_v34, %v8760_v25  ;;  %10995 = vst [vmem:[#allocation82_spill] sm:$0xff] %v9101_v29 }
 0x278   :  { %1944 = vrot.lane.b32.xlu1 %v1901_v20, %s6493_s29  ;;  %1356 = vrot.lane.b32.xlu0 %v1311_v51, %s6493_s29  ;;  %v1608_v20 = vmul.f32 %v7038_v38, %v8760_v25  ;;  %v1409_v51 = vmul.f32 %v6981_v57, %v8908_v62  ;;  %v1091_v14 = vadd.f32 %v10993_v23, %v993_v26 }
 0x279   :  { %v2274_v13 = vadd.f32 %v2258_v5, %v2240_v4  ;;  %v10997_v4 = vld [vmem:[#allocation89_spill] sm:$0xff]  ;;  %v1706_v23 = vmul.f32 %v7070_v2, %v8984_v61 }
 0x27a   :  { %v9072_v44 = vpop.permute.xlu1 %1744  ;;  %v9074_v60 = vpop.permute.xlu0 %1156 }
 0x27b   :  { %10989 = vst [vmem:[#allocation126_spill] sm:$0xff] %v9072_v44  ;;  %10990 = vst [vmem:[#allocation91_spill] sm:$0xff] %v9074_v60  ;;  %v2372_v39 = vadd.f32 %v8880_v63, %v2274_v13  ;;  %v1116_v63 = vmul.f32 %v6952_v42, %v9101_v29 }
 0x27c   :  { %1064 = vrot.lane.b32.xlu1 %v1018_v40, %s6492_s15  ;;  %2532 = vrot.lane.b32.xlu0 %v2491_v37, %s6492_s15  ;;  %v10994_v40 = vld [vmem:[#allocation44_spill] sm:$0xff] }
 0x27d   :  { %v1189_v37 = vadd.f32 %v10994_v40, %v1091_v14  ;;  %v10998_v14 = vld [vmem:[#allocation76_spill] sm:$0xff] }
 0x27e   :  { %v9085_v44 = vpop.permute.xlu1 %2332  ;;  %v9087_v60 = vpop.permute.xlu0 %2134 }
 0x27f   :  { %10992 = vst [vmem:[#allocation129_spill] sm:$0xff] %v9087_v60 }
 0x280   :  { %1652 = vrot.lane.b32.xlu1 %v1608_v20, %s6492_s15  ;;  %1454 = vrot.lane.b32.xlu0 %v1409_v51, %s6493_s29  ;;  %v1287_v20 = vadd.f32 %v10997_v4, %v1189_v37  ;;  %v2470_v51 = vadd.f32 %v8926_v6, %v2372_v39  ;;  %v1501_v6 = vmul.f32 %v10958_v30, %v7694_v55 }
 0x281   :  { %v2296_v39 = vmul.f32 %v10959_v24, %v8838_v48 }
 0x282   :  { %v9103_v26 = vpop.permute.xlu1 %666  ;;  %v2723_v5 = vpop.permute.xlu0 %2722  ;;  %v1385_v13 = vadd.f32 %v10998_v14, %v1287_v20  ;;  %v2568_v40 = vadd.f32 %v9003_v1, %v2470_v51  ;;  %v2097_v1 = vmul.f32 %v10960_v16, %v8984_v61  ;;  %v5916_v20 = vld [vmem:[%s10542_s2 + $0x6] ss:$0 sm:$0xff] }
 0x283   :  { %10996 = vst [vmem:[#allocation108_spill] sm:$0xff] %v9103_v26 }
 0x284   :  { %2630 = vrot.lane.b32.xlu1 %v2589_v27, %s6493_s29  ;;  %2042 = vrot.lane.b32.xlu0 %v1999_v59, %s6493_s29  ;;  %v11001_v27 = vld [vmem:[#allocation100_spill] sm:$0xff]  ;;  %v2666_v59 = vadd.f32 %v2625_v3, %v2568_v40  ;;  %v5994_v40 = vld [vmem:[%s10543_s3 + $0x1f0] sm:$0xff] }
 0x285   :  { %v1483_v37 = vadd.f32 %v11001_v27, %v1385_v13  ;;  %v5988_v3 = vld [vmem:[%s10543_s3 + $0x1c0] sm:$0xff]  ;;  %v5990_v13 = vld [vmem:[%s10543_s3 + $0x1d0] sm:$0xff]  ;;  %v2687_v27 = vmul.f32 %v10965_v49, %v8838_v48 }
 0x286   :  { %v9115_v60 = vpop.permute.xlu1 %1842  ;;  %v9117_v26 = vpop.permute.xlu0 %1254  ;;  %v2764_v4 = vadd.f32 %v2723_v5, %v2666_v59  ;;  %v5992_v5 = vld [vmem:[%s10543_s3 + $0x1e0] sm:$0xff] }
 0x287   :  { %10999 = vst [vmem:[#allocation30_spill] sm:$0xff] %v9115_v60  ;;  %11000 = vst [vmem:[#allocation8_spill] sm:$0xff] %v9117_v26  ;;  %v9156_v59 = vld [vmem:[%s10540_s0 + $0x64] sm:$0x3]  ;;  %v6141_v60 = vpack.c.bf16 %v5994_v40, %v5990_v13  ;;  %v6003_v26 = vld [vmem:[%s10543_s3 + $0x228] sm:$0xff] }
 0x288   :  { %1750 = vrot.lane.b32.xlu1 %v1706_v23, %s6492_s15  ;;  %1162 = vrot.lane.b32.xlu0 %v1116_v63, %s6492_s15  ;;  %v1517_v23 = vadd.f32 %v1501_v6, %v1483_v37  ;;  %v1535_v63 = vmul.f32 %v8967_v10, %v10915_v46  ;;  %v1214_v6 = vmul.f32 %v10843_v17, %v8696_v12  ;;  %v11004_v12 = vld [vmem:[#allocation15_spill] sm:$0xff] }
 0x289   :  { %v304_v15 = vadd.f32 %v11005_v22, %v11004_v12  ;;  %v1804_v12 = vmul.f32 %v10971_v54, %v9156_v59  ;;  %v11008_v22 = vld [vmem:[#allocation53_spill] sm:$0xff] }
 0x28a   :  { %v2821_v51 = vpop.permute.xlu1 %2820  ;;  %v9131_v30 = vpop.permute.xlu0 %2430  ;;  %v1551_v40 = vadd.f32 %v1535_v63, %v1517_v23  ;;  %v11009_v23 = vld [vmem:[#allocation17_spill] sm:$0xff]  ;;  %v11010_v63 = vld [vmem:[#allocation36_spill] sm:$0xff] }
 0x28b   :  { %v2862_v14 = vadd.f32 %v2821_v51, %v2764_v4  ;;  %v5999_v4 = vld [vmem:[%s10543_s3 + $0x208] sm:$0xff]  ;;  %v402_v36 = vadd.f32 %v11008_v22, %v304_v15  ;;  %v11013_v15 = vld [vmem:[#allocation55_spill] sm:$0xff] }
 0x28c   :  { %2338 = vrot.lane.b32.xlu1 %v2296_v39, %s6492_s15  ;;  %2140 = vrot.lane.b32.xlu0 %v2097_v1, %s6493_s29  ;;  %v6137_v1 = vpack.c.bf16 %v5992_v5, %v5988_v3  ;;  %v9179_v3 = vld [vmem:[%s10540_s0 + $0x5a] sm:$0x3]  ;;  %v11007_v5 = vld [vmem:[#allocation39_spill] sm:$0xff]  ;;  %v6143_v35 = vpack.c.bf16 %v6003_v26, %v5999_v4  ;;  %v921_v26 = vmul.f32 %v6926_v50, %v8908_v62  ;;  %v11019_v22 = vld [vmem:[#allocation117_spill] sm:$0xff] }
 0x28d   :  { %v2990_v37 = vadd.f32 %v5916_v20, %v2862_v14  ;;  %v6001_v20 = vld [vmem:[%s10543_s3 + $0x218] sm:$0xff]  ;;  %11006 = vst [vmem:[#allocation90_spill] sm:$0xff] %v9179_v3  ;;  %v1569_v13 = vmul.f32 %v9179_v3, %v11007_v5  ;;  %v2785_v4 = vmul.f32 %v10812_v43, %v9048_v32 }
 0x28e   :  { %v9161_v51 = vpop.permute.xlu1 %962  ;;  %v9163_v39 = vpop.permute.xlu0 %764  ;;  %v6005_v14 = vld [vmem:[%s10543_s3 + $0x238] sm:$0xff] }
 0x28f   :  { %11002 = vst [vmem:[#allocation63_spill] sm:$0xff] %v9161_v51  ;;  %11003 = vst [vmem:[#allocation114_spill] sm:$0xff] %v9163_v39  ;;  %v3006_v51 = vmax.f32 %v2990_v37, 0.0  ;;  %v2394_v39 = vmul.f32 %v7282_v9, %v9048_v32  ;;  %v6147_v33 = vpack.c.bf16 %v6005_v14, %v6001_v20  ;;  %v306_v37 = vadd.f32 %v11010_v63, %v11009_v23  ;;  %v11012_v9 = vld [vmem:[#allocation69_spill] sm:$0xff]  ;;  %v11016_v20 = vld [vmem:[#allocation71_spill] sm:$0xff] }
 0x290   :  { %1260 = vrot.lane.b32.xlu1 %v1214_v6, %s6493_s29  ;;  %2728 = vrot.lane.b32.xlu0 %v2687_v27, %s6493_s29  ;;  %v500_v49 = vadd.f32 %v11012_v9, %v402_v36  ;;  %v1585_v54 = vadd.f32 %v1569_v13, %v1551_v40  ;;  %v11015_v9 = vld [vmem:[#allocation101_spill] sm:$0xff]  ;;  %v11020_v50 = vld [vmem:[#allocation115_spill] sm:$0xff] }
 0x291   :  { %5986 = vmatmul.mubr.msk.f32.vlgmr.msra.gmra.mrb[0].mxu0 %vm3033_vm0, %v3006_v51  ;;  %5987 = vmatmul.mubr.msk.f32.vlgmr.msra.gmra.mrb[0].mxu1 %vm3033_vm0, %v3006_v51  ;;  %v404_v51 = vadd.f32 %v11013_v15, %v306_v37  ;;  %v11022_v15 = vld [vmem:[#allocation77_spill] sm:$0xff] }
 0x292   :  { %v9194_v6 = vpop.permute.xlu1 %1940  ;;  %v9196_v27 = vpop.permute.xlu0 %1352  ;;  %6138 = vmatpush1.bf16.msra.mxu0 %v6137_v1  ;;  %6142 = vmatpush1.bf16.msra.mxu1 %v6141_v60  ;;  %v11014_v60 = vld [vmem:[#allocation110_spill] sm:$0xff]  ;;  %v1683_v36 = vadd.f32 %v11015_v9, %v1585_v54  ;;  %v812_v54 = vmul.f32 %v8845_v28, %v7598_v58 }
 0x293   :  { %11011 = vst [vmem:[#allocation99_spill] sm:$0xff] %v9194_v6  ;;  %4190 = vmatprep.mubr.f32.mxu0 %v10779_v0  ;;  %4261 = vmatprep.mubr.f32.mxu1 %v10779_v0  ;;  %v598_v1 = vadd.f32 %v11014_v60, %v500_v49  ;;  %v502_v14 = vadd.f32 %v11016_v20, %v404_v51  ;;  %v9231_v60 = vld [vmem:[%s10540_s0 + $0x84] sm:$0x3]  ;;  %v11025_v20 = vld [vmem:[#allocation35_spill] sm:$0xff]  ;;  %v9243_v28 = vld [vmem:[%s10540_s0 + $0x38] sm:$0x3] }
 0x294   :  { %2436 = vrot.lane.b32.xlu1 %v2394_v39, %s6492_s15  ;;  %1848 = vrot.lane.b32.xlu0 %v1804_v12, %s6492_s15  ;;  %v11018_v39 = vld [vmem:[#allocation118_spill] sm:$0xff]  ;;  %v1781_v23 = vadd.f32 %v11019_v22, %v1683_v36  ;;  %v1902_v49 = vmul.f32 %v7109_v11, %v8760_v25  ;;  %v11024_v36 = vld [vmem:[#allocation16_spill] sm:$0xff]  ;;  %11026 = vst [vmem:[#allocation10_spill] sm:$0xff] %v9243_v28 }
 0x295   :  { %6144 = vmatprep.subr.bf16.mxu0 %v6143_v35  ;;  %6148 = vmatprep.subr.bf16.mxu1 %v6147_v33  ;;  %v696_v12 = vadd.f32 %v11018_v39, %v598_v1  ;;  %v600_v63 = vadd.f32 %v11020_v50, %v502_v14  ;;  %v1312_v35 = vmul.f32 %v6968_v47, %v8908_v62  ;;  %v11021_v33 = vld [vmem:[#allocation96_spill] sm:$0xff]  ;;  %v11030_v6 = vld [vmem:[#allocation78_spill] sm:$0xff] }
 0x296   :  { %v9211_v13 = vpop.permute.xlu1 %472  ;;  %v9213_v40 = vpop.permute.xlu0 %2528  ;;  %v1879_v51 = vadd.f32 %v11022_v15, %v1781_v23  ;;  %v307_v14 = vadd.f32 %v11025_v20, %v11024_v36  ;;  %v814_v39 = vmul.f32 %v9243_v28, %v7598_v58  ;;  %v11028_v23 = vld [vmem:[#allocation97_spill] sm:$0xff]  ;;  %v11029_v15 = vld [vmem:[#allocation54_spill] sm:$0xff]  ;;  %v846_v20 = vmul.f32 %v9055_v45, %v7618_v7 }
 0x297   :  { %11017 = vst [vmem:[#allocation9_spill] sm:$0xff] %v9211_v13  ;;  %v794_v37 = vadd.f32 %v11021_v33, %v696_v12  ;;  %v11027_v12 = vld [vmem:[#allocation64_spill] sm:$0xff]  ;;  %v2492_v33 = vmul.f32 %v7324_v19, %v9231_v60 }
 0x298   :  { %968 = vrot.lane.b32.xlu1 %v921_v26, %s6492_s15  ;;  %2826 = vrot.lane.b32.xlu0 %v2785_v4, %s6493_s29  ;;  %v11023_v26 = vld [vmem:[#allocation25_spill] sm:$0xff]  ;;  %v1977_v22 = vadd.f32 %v11027_v12, %v1879_v51 }
 0x299   :  { %v698_v4 = vadd.f32 %v11023_v26, %v600_v63  ;;  %v1019_v63 = vmul.f32 %v10751_v21, %v9101_v29  ;;  %v405_v26 = vadd.f32 %v11029_v15, %v307_v14  ;;  %v828_v36 = vadd.f32 %v812_v54, %v794_v37  ;;  %v9267_v21 = vld [vmem:[%s10540_s0 + $0x3a] sm:$0x3]  ;;  %v11035_v37 = vld [vmem:[#allocation85_spill] sm:$0xff] }
 0x29a   :  { %v9234_v1 = vpop.permute.xlu1 %1450  ;;  %v9236_v9 = vpop.permute.xlu0 %1060  ;;  %v2075_v51 = vadd.f32 %v11030_v6, %v1977_v22  ;;  %11034 = vst [vmem:[#allocation23_spill] sm:$0xff] %v9267_v21  ;;  %v848_v14 = vmul.f32 %v9267_v21, %v7618_v7  ;;  %v2191_v54 = vmul.f32 %v9062_v31, %v7798_v52  ;;  %v1609_v22 = vmul.f32 %v7038_v38, %v8984_v61  ;;  %v11037_v31 = vld [vmem:[#allocation14_spill] sm:$0xff]  ;;  %v11038_v52 = vld [vmem:[#allocation33_spill] sm:$0xff] }
 0x29b   :  { %v796_v50 = vadd.f32 %v11028_v23, %v698_v4  ;;  %v1410_v15 = vmul.f32 %v6981_v57, %v9101_v29 }
 0x29c   :  { %1946 = vrot.lane.b32.xlu1 %v1902_v49, %s6493_s29  ;;  %1358 = vrot.lane.b32.xlu0 %v1312_v35, %s6493_s29  ;;  %v11033_v49 = vld [vmem:[#allocation70_spill] sm:$0xff]  ;;  %v2173_v23 = vadd.f32 %v11035_v37, %v2075_v51  ;;  %v305_v51 = vadd.f32 %v11038_v52, %v11037_v31  ;;  %v6438_v37 = vld [vmem:[%s10540_s0 + $0x3c] sm:$0x3]  ;;  %v2000_v31 = vmul.f32 %v7131_v34, %v8984_v61 }
 0x29d   :  { %v503_v35 = vadd.f32 %v11033_v49, %v405_v26  ;;  %v830_v6 = vadd.f32 %v814_v39, %v796_v50  ;;  %v862_v26 = vadd.f32 %v846_v20, %v828_v36  ;;  %v880_v49 = vmul.f32 %v9243_v28, %v7637_v56 }
 0x29e   :  { %v9259_v12 = vpop.permute.xlu1 %2038  ;;  %v9261_v4 = vpop.permute.xlu0 %1648  ;;  %v882_v36 = vmul.f32 %v6438_v37, %v7637_v56  ;;  %v2207_v20 = vadd.f32 %v2191_v54, %v2173_v23  ;;  %v11042_v54 = vld [vmem:[#allocation19_spill] sm:$0xff]  ;;  %v11043_v23 = vld [vmem:[#allocation38_spill] sm:$0xff]  ;;  %v815_v28 = vmul.f32 %v9267_v21, %v7598_v58 }
 0x29f   :  { %11031 = vst [vmem:[#allocation72_spill] sm:$0xff] %v9259_v12  ;;  %11032 = vst [vmem:[#allocation56_spill] sm:$0xff] %v9261_v4  ;;  %v11036_v12 = vld [vmem:[#allocation22_spill] sm:$0xff]  ;;  %v11044_v4 = vld [vmem:[#allocation128_spill] sm:$0xff] }
 0x2a0   :  { %1066 = vrot.lane.b32.xlu1 %v1019_v63, %s6492_s15  ;;  %2534 = vrot.lane.b32.xlu0 %v2492_v33, %s6492_s15  ;;  %v601_v13 = vadd.f32 %v11036_v12, %v503_v35  ;;  %v11040_v63 = vld [vmem:[#allocation130_spill] sm:$0xff]  ;;  %v9297_v12 = vld [vmem:[%s10540_s0 + $0x7c] sm:$0x3]  ;;  %v864_v35 = vadd.f32 %v848_v14, %v830_v6  ;;  %v9315_v14 = vld [vmem:[%s10540_s0 + $0x46] sm:$0x3] }
 0x2a1   :  { %11041 = vst [vmem:[#allocation31_spill] sm:$0xff] %v9297_v12  ;;  %v2225_v52 = vmul.f32 %v9297_v12, %v7814_v41  ;;  %v11045_v6 = vld [vmem:[#allocation18_spill] sm:$0xff] }
 0x2a2   :  { %v9285_v39 = vpop.permute.xlu1 %570  ;;  %v9287_v50 = vpop.permute.xlu0 %2626  ;;  %v699_v33 = vadd.f32 %v11040_v63, %v601_v13  ;;  %v2590_v13 = vmul.f32 %v7346_v8, %v8838_v48  ;;  %v308_v63 = vadd.f32 %v11043_v23, %v11042_v54  ;;  %v11047_v48 = vld [vmem:[#allocation52_spill] sm:$0xff]  ;;  %v11050_v54 = vld [vmem:[#allocation106_spill] sm:$0xff]  ;;  %v898_v21 = vadd.f32 %v882_v36, %v864_v35 }
 0x2a3   :  { %11039 = vst [vmem:[#allocation12_spill] sm:$0xff] %v9285_v39  ;;  %v896_v39 = vadd.f32 %v880_v49, %v862_v26  ;;  %v403_v12 = vadd.f32 %v11047_v48, %v305_v51  ;;  %v11049_v26 = vld [vmem:[#allocation58_spill] sm:$0xff]  ;;  %v1707_v48 = vmul.f32 %v7070_v2, %v9156_v59  ;;  %v1117_v51 = vmul.f32 %v6952_v42, %v9315_v14  ;;  %v11054_v36 = vld [vmem:[#allocation68_spill] sm:$0xff]  ;;  %v11058_v2 = vld [vmem:[#allocation11_spill] sm:$0xff] }
 0x2a4   :  { %1654 = vrot.lane.b32.xlu1 %v1609_v22, %s6492_s15  ;;  %1456 = vrot.lane.b32.xlu0 %v1410_v15, %s6493_s29  ;;  %v797_v41 = vadd.f32 %v11044_v4, %v699_v33  ;;  %v11046_v22 = vld [vmem:[#allocation37_spill] sm:$0xff]  ;;  %v406_v49 = vadd.f32 %v11049_v26, %v308_v63  ;;  %v2259_v4 = vmul.f32 %v7828_v53, %v8625_v18  ;;  %v11055_v35 = vld [vmem:[#allocation46_spill] sm:$0xff]  ;;  %v11059_v42 = vld [vmem:[#allocation87_spill] sm:$0xff] }
 0x2a5   :  { %v309_v15 = vadd.f32 %v11046_v22, %v11045_v6  ;;  %v994_v23 = vadd.f32 %v11050_v54, %v896_v39  ;;  %v2241_v33 = vadd.f32 %v2225_v52, %v2207_v20  ;;  %v11051_v6 = vld [vmem:[#allocation73_spill] sm:$0xff]  ;;  %v849_v54 = vmul.f32 %v6438_v37, %v7618_v7 }
 0x2a6   :  { %v9320_v34 = vpop.permute.xlu1 %1746  ;;  %v9322_v8 = vpop.permute.xlu0 %1158  ;;  %v504_v22 = vadd.f32 %v11051_v6, %v406_v49  ;;  %v11052_v63 = vld [vmem:[#allocation105_spill] sm:$0xff]  ;;  %v831_v39 = vadd.f32 %v815_v28, %v797_v41  ;;  %v501_v52 = vadd.f32 %v11054_v36, %v403_v12  ;;  %v6440_v41 = vld [vmem:[%s10540_s0 + $0x3e] sm:$0x3]  ;;  %v816_v36 = vmul.f32 %v6438_v37, %v7598_v58 }
 0x2a7   :  { %11048 = vst [vmem:[#allocation48_spill] sm:$0xff] %v9320_v34  ;;  %v1092_v26 = vadd.f32 %v11052_v63, %v994_v23  ;;  %v11053_v18 = vld [vmem:[#allocation57_spill] sm:$0xff]  ;;  %v883_v28 = vmul.f32 %v6440_v41, %v7637_v56  ;;  %v2275_v49 = vadd.f32 %v2259_v4, %v2241_v33  ;;  %v1502_v4 = vmul.f32 %v8967_v10, %v7694_v55 }
 0x2a8   :  { %2632 = vrot.lane.b32.xlu1 %v2590_v13, %s6493_s29  ;;  %2044 = vrot.lane.b32.xlu0 %v2000_v31, %s6493_s29  ;;  %v407_v20 = vadd.f32 %v11053_v18, %v309_v15  ;;  %v996_v13 = vadd.f32 %v11055_v35, %v898_v21  ;;  %v602_v45 = vadd.f32 %v11059_v42, %v504_v22  ;;  %v11060_v15 = vld [vmem:[#allocation112_spill] sm:$0xff]  ;;  %v11061_v12 = vld [vmem:[#allocation65_spill] sm:$0xff]  ;;  %v11067_v35 = vld [vmem:[#allocation95_spill] sm:$0xff] }
 0x2a9   :  { %v1190_v34 = vadd.f32 %v11058_v2, %v1092_v26  ;;  %v2297_v21 = vmul.f32 %v10959_v24, %v9048_v32  ;;  %v2098_v2 = vmul.f32 %v10960_v16, %v9156_v59  ;;  %v11062_v22 = vld [vmem:[#allocation61_spill] sm:$0xff]  ;;  %v865_v26 = vadd.f32 %v849_v54, %v831_v39  ;;  %v11066_v54 = vld [vmem:[#allocation98_spill] sm:$0xff] }
 0x2aa   :  { %v9340_v31 = vpop.permute.xlu1 %2334  ;;  %v9342_v53 = vpop.permute.xlu0 %2136  ;;  %v1094_v23 = vadd.f32 %v11060_v15, %v996_v13  ;;  %v700_v63 = vadd.f32 %v11062_v22, %v602_v45  ;;  %v2373_v18 = vadd.f32 %v9085_v44, %v2275_v49  ;;  %v9364_v33 = vmul.f32 %v9179_v3, %v10915_v46  ;;  %v11064_v45 = vld [vmem:[#allocation28_spill] sm:$0xff]  ;;  %v11079_v3 = vld [vmem:[#allocation49_spill] sm:$0xff] }
 0x2ab   :  { %11056 = vst [vmem:[#allocation66_spill] sm:$0xff] %v9340_v31  ;;  %11057 = vst [vmem:[#allocation111_spill] sm:$0xff] %v9342_v53  ;;  %v1288_v6 = vadd.f32 %v11061_v12, %v1190_v34  ;;  %v11068_v49 = vld [vmem:[#allocation24_spill] sm:$0xff]  ;;  %v11069_v12 = vld [vmem:[#allocation86_spill] sm:$0xff]  ;;  %v899_v37 = vadd.f32 %v883_v28, %v865_v26 }
 0x2ac   :  { %1752 = vrot.lane.b32.xlu1 %v1707_v48, %s6492_s15  ;;  %1164 = vrot.lane.b32.xlu0 %v1117_v51, %s6492_s15  ;;  %v9369_v48 = vld [vmem:[%s10540_s0 + $0x5c] sm:$0x3]  ;;  %v1192_v51 = vadd.f32 %v11064_v45, %v1094_v23  ;;  %v798_v13 = vadd.f32 %v11067_v35, %v700_v63  ;;  %v2471_v42 = vadd.f32 %v9131_v30, %v2373_v18  ;;  %v11070_v45 = vld [vmem:[#allocation62_spill] sm:$0xff]  ;;  %v11076_v53 = vld [vmem:[#allocation32_spill] sm:$0xff] }
 0x2ad   :  { %11063 = vst [vmem:[#allocation132_spill] sm:$0xff] %v9369_v48  ;;  %v9373_v34 = vmul.f32 %v9369_v48, %v11007_v5  ;;  %v1386_v10 = vadd.f32 %v11066_v54, %v1288_v6  ;;  %v1215_v23 = vmul.f32 %v10843_v17, %v8908_v62  ;;  %v2688_v22 = vmul.f32 %v11069_v12, %v9048_v32  ;;  %v11071_v54 = vld [vmem:[#allocation13_spill] sm:$0xff] }
 0x2ae   :  { %v9376_v39 = vpop.permute.xlu1 %668  ;;  %v2725_v44 = vpop.permute.xlu0 %2724  ;;  %v1290_v15 = vadd.f32 %v11068_v49, %v1192_v51  ;;  %v9390_v6 = vadd.f32 %v11070_v45, %v501_v52  ;;  %v505_v63 = vadd.f32 %v11071_v54, %v407_v20  ;;  %v2569_v30 = vadd.f32 %v9213_v40, %v2471_v42  ;;  %v11073_v51 = vld [vmem:[#allocation127_spill] sm:$0xff]  ;;  %v11074_v20 = vld [vmem:[#allocation84_spill] sm:$0xff]  ;;  %v11075_v42 = vld [vmem:[#allocation121_spill] sm:$0xff] }
 0x2af   :  { %11065 = vst [vmem:[#allocation120_spill] sm:$0xff] %v9376_v39  ;;  %v1504_v35 = vmul.f32 %v9369_v48, %v7694_v55  ;;  %v850_v52 = vmul.f32 %v6440_v41, %v7618_v7  ;;  %v997_v40 = vadd.f32 %v11074_v20, %v899_v37  ;;  %v832_v26 = vadd.f32 %v816_v36, %v798_v13  ;;  %v11080_v37 = vld [vmem:[#allocation108_spill] sm:$0xff]  ;;  %v11081_v13 = vld [vmem:[#allocation123_spill] sm:$0xff] }
 0x2b0   :  { %2340 = vrot.lane.b32.xlu1 %v2297_v21, %s6492_s15  ;;  %2142 = vrot.lane.b32.xlu0 %v2098_v2, %s6493_s29  ;;  %v9397_v21 = vld [vmem:[%s10540_s0 + $0x66] sm:$0x3]  ;;  %v11072_v2 = vld [vmem:[#allocation27_spill] sm:$0xff]  ;;  %v1388_v17 = vadd.f32 %v11073_v51, %v1290_v15  ;;  %v603_v45 = vadd.f32 %v11075_v42, %v505_v63  ;;  %v2667_v54 = vadd.f32 %v9287_v50, %v2569_v30  ;;  %v11077_v15 = vld [vmem:[#allocation74_spill] sm:$0xff] }
 0x2b1   :  { %v1484_v18 = vadd.f32 %v11072_v2, %v1386_v10  ;;  %v2395_v2 = vmul.f32 %v11077_v15, %v9231_v60  ;;  %v11078_v51 = vld [vmem:[#allocation43_spill] sm:$0xff]  ;;  %v1095_v31 = vadd.f32 %v11079_v3, %v997_v40  ;;  %v884_v63 = vmul.f32 %v7637_v56, %v11081_v13 }
 0x2b2   :  { %v9404_v49 = vpop.permute.xlu1 %1844  ;;  %v9406_v28 = vpop.permute.xlu0 %1256  ;;  %v1486_v10 = vadd.f32 %v11076_v53, %v1388_v17  ;;  %v1805_v48 = vmul.f32 %v11078_v51, %v9397_v21  ;;  %v701_v36 = vadd.f32 %v11080_v37, %v603_v45  ;;  %v2765_v50 = vadd.f32 %v2725_v44, %v2667_v54  ;;  %v5917_v17 = vld [vmem:[%s10542_s2 + $0x7] ss:$0 sm:$0xff]  ;;  %v11084_v20 = vld [vmem:[#allocation91_spill] sm:$0xff]  ;;  %v11085_v45 = vld [vmem:[#allocation114_spill] sm:$0xff] }
 0x2b3   :  { %v1518_v30 = vadd.f32 %v1502_v4, %v1484_v18  ;;  %v817_v53 = vmul.f32 %v6440_v41, %v7598_v58  ;;  %v9432_v3 = vmul.f32 %v11007_v5, %v8760_v25  ;;  %v9442_v41 = vld [vmem:[%s10540_s0 + $0x86] sm:$0x3]  ;;  %v1193_v40 = vadd.f32 %v11084_v20, %v1095_v31  ;;  %v6004_v51 = vld [vmem:[%s10543_s3 + $0x230] sm:$0xff] }
 0x2b4   :  { %1262 = vrot.lane.b32.xlu1 %v1215_v23, %s6493_s29  ;;  %2730 = vrot.lane.b32.xlu0 %v2688_v22, %s6493_s29  ;;  %v9426_v23 = vld [vmem:[%s10540_s0 + $0x5e] sm:$0x3]  ;;  %v5998_v18 = vld [vmem:[%s10543_s3 + $0x200] sm:$0xff]  ;;  %v866_v42 = vadd.f32 %v850_v52, %v832_v26  ;;  %v799_v54 = vadd.f32 %v11085_v45, %v701_v36  ;;  %v1520_v15 = vadd.f32 %v1504_v35, %v1486_v10 }
 0x2b5   :  { %11082 = vst [vmem:[#allocation88_spill] sm:$0xff] %v9426_v23  ;;  %v1538_v22 = vmul.f32 %v9426_v23, %v10915_v46  ;;  %v6002_v39 = vld [vmem:[%s10543_s3 + $0x220] sm:$0xff]  ;;  %v1313_v31 = vmul.f32 %v6968_v47, %v9101_v29  ;;  %v2786_v52 = vmul.f32 %v10812_v43, %v9231_v60  ;;  %v851_v20 = vmul.f32 %v7618_v7, %v11081_v13  ;;  %v6009_v35 = vld [vmem:[%s10543_s3 + $0x248] sm:$0xff]  ;;  %v6011_v13 = vld [vmem:[%s10543_s3 + $0x258] sm:$0xff] }
 0x2b6   :  { %v2823_v44 = vpop.permute.xlu1 %2822  ;;  %v9437_v4 = vpop.permute.xlu0 %2432  ;;  %v11086_v26 = vld [vmem:[#allocation8_spill] sm:$0xff] }
 0x2b7   :  { %11083 = vst [vmem:[#allocation47_spill] sm:$0xff] %v9437_v4  ;;  %v2863_v37 = vadd.f32 %v2823_v44, %v2765_v50  ;;  %v6000_v4 = vld [vmem:[%s10543_s3 + $0x210] sm:$0xff]  ;;  %v1291_v36 = vadd.f32 %v11086_v26, %v1193_v40  ;;  %v1505_v50 = vmul.f32 %v9426_v23, %v7694_v55  ;;  %v6013_v47 = vld [vmem:[%s10543_s3 + $0x268] sm:$0xff]  ;;  %v2493_v40 = vmul.f32 %v7324_v19, %v9442_v41 }
 0x2b8   :  { %2438 = vrot.lane.b32.xlu1 %v2395_v2, %s6492_s15  ;;  %1850 = vrot.lane.b32.xlu0 %v1805_v48, %s6492_s15  ;;  %v1552_v48 = vadd.f32 %v9364_v33, %v1518_v30  ;;  %v6149_v45 = vpack.c.bf16 %v6004_v51, %v6000_v4  ;;  %v900_v26 = vadd.f32 %v884_v63, %v866_v42  ;;  %v11087_v4 = vld [vmem:[#allocation63_spill] sm:$0xff] }
 0x2b9   :  { %v2991_v44 = vadd.f32 %v5917_v17, %v2863_v37  ;;  %v6145_v17 = vpack.c.bf16 %v6002_v39, %v5998_v18  ;;  %v6015_v37 = vld [vmem:[%s10543_s3 + $0x278] sm:$0xff]  ;;  %v833_v23 = vadd.f32 %v817_v53, %v799_v54  ;;  %v1389_v33 = vadd.f32 %v9196_v27, %v1291_v36 }
 0x2ba   :  { %v965_v10 = vpop.permute.xlu1 %964  ;;  %v9476_v2 = vpop.permute.xlu0 %766  ;;  %v1554_v29 = vadd.f32 %v1538_v22, %v1520_v15  ;;  %v1903_v39 = vmul.f32 %v7109_v11, %v8984_v61  ;;  %v6151_v51 = vpack.c.bf16 %v6013_v47, %v6009_v35  ;;  %v998_v18 = vadd.f32 %v11087_v4, %v900_v26  ;;  %v11088_v27 = vld [vmem:[#allocation119_spill] sm:$0xff]  ;;  %v11091_v47 = vld [vmem:[#allocation122_spill] sm:$0xff] }
 0x2bb   :  { %v3007_v30 = vmax.f32 %v2991_v44, 0.0  ;;  %v1487_v55 = vadd.f32 %v9234_v1, %v1389_v33  ;;  %v6155_v63 = vpack.c.bf16 %v6015_v37, %v6011_v13  ;;  %v697_v15 = vadd.f32 %v11088_v27, %v9390_v6  ;;  %v11089_v6 = vld [vmem:[#allocation113_spill] sm:$0xff]  ;;  %v11093_v37 = vld [vmem:[#allocation56_spill] sm:$0xff] }
 0x2bc   :  { %1360 = vrot.lane.b32.xlu1 %v1313_v31, %s6493_s29  ;;  %2828 = vrot.lane.b32.xlu0 %v2786_v52, %s6493_s29  ;;  %v1586_v53 = vadd.f32 %v9373_v34, %v1552_v48  ;;  %v885_v22 = vmul.f32 %v7637_v56, %v8908_v62  ;;  %v1096_v31 = vadd.f32 %v9236_v9, %v998_v18 }
 0x2bd   :  { %5996 = vmatmul.mubr.msk.f32.vlgmr.msra.gmra.mrb[0].mxu0 %vm3033_vm0, %v3007_v30  ;;  %5997 = vmatmul.mubr.msk.f32.vlgmr.msra.gmra.mrb[0].mxu1 %vm3033_vm0, %v3007_v30  ;;  %v867_v1 = vadd.f32 %v851_v20, %v833_v23  ;;  %v1539_v52 = vmul.f32 %v10915_v46, %v8760_v25  ;;  %v1610_v34 = vmul.f32 %v7038_v38, %v9156_v59  ;;  %v11090_v20 = vld [vmem:[#allocation94_spill] sm:$0xff] }
 0x2be   :  { %v1943_v42 = vpop.permute.xlu1 %1942  ;;  %v1355_v54 = vpop.permute.xlu0 %1354  ;;  %6146 = vmatpush1.bf16.msra.mxu0 %v6145_v17  ;;  %6150 = vmatpush1.bf16.msra.mxu1 %v6149_v45  ;;  %v1684_v36 = vadd.f32 %v11089_v6, %v1586_v53  ;;  %v1411_v9 = vmul.f32 %v6981_v57, %v9315_v14  ;;  %v1521_v23 = vadd.f32 %v1505_v50, %v1487_v55  ;;  %v11095_v50 = vld [vmem:[#allocation81_spill] sm:$0xff]  ;;  %v11096_v30 = vld [vmem:[#allocation50_spill] sm:$0xff] }
 0x2bf   :  { %4348 = vmatprep.mubr.f32.mxu0 %v10779_v0  ;;  %4419 = vmatprep.mubr.f32.mxu1 %v10779_v0  ;;  %v1588_v44 = vadd.f32 %v9432_v3, %v1554_v29  ;;  %v1194_v25 = vadd.f32 %v9322_v8, %v1096_v31  ;;  %v813_v35 = vmul.f32 %v11090_v20, %v7598_v58  ;;  %v11094_v29 = vld [vmem:[#allocation75_spill] sm:$0xff] }
 0x2c0   :  { %2536 = vrot.lane.b32.xlu1 %v2493_v40, %s6492_s15  ;;  %1948 = vrot.lane.b32.xlu0 %v1903_v39, %s6493_s29  ;;  %v795_v48 = vadd.f32 %v11091_v47, %v697_v15  ;;  %v11092_v40 = vld [vmem:[#allocation83_spill] sm:$0xff]  ;;  %v901_v55 = vadd.f32 %v885_v22, %v867_v1  ;;  %v1573_v8 = vmul.f32 %v11007_v5, %v8984_v61  ;;  %v11098_v15 = vld [vmem:[#allocation10_spill] sm:$0xff]  ;;  %v11099_v1 = vld [vmem:[#allocation45_spill] sm:$0xff] }
 0x2c1   :  { %6152 = vmatprep.subr.bf16.mxu0 %v6151_v51  ;;  %6156 = vmatprep.subr.bf16.mxu1 %v6155_v63  ;;  %v1782_v17 = vadd.f32 %v11092_v40, %v1684_v36  ;;  %v1686_v26 = vadd.f32 %v11093_v37, %v1588_v44  ;;  %v1292_v57 = vadd.f32 %v9406_v28, %v1194_v25  ;;  %v11097_v51 = vld [vmem:[#allocation48_spill] sm:$0xff]  ;;  %v11101_v44 = vld [vmem:[#allocation41_spill] sm:$0xff]  ;;  %v11104_v47 = vld [vmem:[#allocation59_spill] sm:$0xff] }
 0x2c2   :  { %v475_v45 = vpop.permute.xlu1 %474  ;;  %v9518_v13 = vpop.permute.xlu0 %2530  ;;  %v2591_v33 = vmul.f32 %v11095_v50, %v9048_v32  ;;  %v2001_v39 = vmul.f32 %v11096_v30, %v9156_v59  ;;  %v999_v18 = vadd.f32 %v965_v10, %v901_v55  ;;  %v1555_v63 = vadd.f32 %v1539_v52, %v1521_v23  ;;  %v11103_v23 = vld [vmem:[#allocation67_spill] sm:$0xff]  ;;  %v11106_v55 = vld [vmem:[#allocation102_spill] sm:$0xff] }
 0x2c3   :  { %v1880_v3 = vadd.f32 %v11094_v29, %v1782_v17  ;;  %v1784_v4 = vadd.f32 %v11097_v51, %v1686_v26  ;;  %v1390_v28 = vadd.f32 %v1355_v54, %v1292_v57  ;;  %v829_v27 = vadd.f32 %v813_v35, %v795_v48  ;;  %v11102_v54 = vld [vmem:[#allocation40_spill] sm:$0xff]  ;;  %v11105_v40 = vld [vmem:[#allocation23_spill] sm:$0xff] }
 0x2c4   :  { %1656 = vrot.lane.b32.xlu1 %v1610_v34, %s6492_s15  ;;  %1458 = vrot.lane.b32.xlu0 %v1411_v9, %s6493_s29  ;;  %v847_v53 = vmul.f32 %v11098_v15, %v7618_v7  ;;  %v11100_v9 = vld [vmem:[#allocation20_spill] sm:$0xff]  ;;  %v2099_v10 = vmul.f32 %v10960_v16, %v9397_v21  ;;  %v1708_v52 = vmul.f32 %v11102_v54, %v9397_v21  ;;  %v11107_v29 = vld [vmem:[#allocation31_spill] sm:$0xff] }
 0x2c5   :  { %v1978_v6 = vadd.f32 %v11099_v1, %v1880_v3  ;;  %v1882_v36 = vadd.f32 %v9404_v49, %v1784_v4  ;;  %v311_v25 = vadd.f32 %v11101_v44, %v11100_v9  ;;  %v1589_v49 = vadd.f32 %v1573_v8, %v1555_v63  ;;  %v11112_v44 = vld [vmem:[#allocation26_spill] sm:$0xff] }
 0x2c6   :  { %v1453_v22 = vpop.permute.xlu1 %1452  ;;  %v1063_v31 = vpop.permute.xlu0 %1062  ;;  %v881_v17 = vmul.f32 %v11105_v40, %v7637_v56  ;;  %v863_v37 = vadd.f32 %v847_v53, %v829_v27  ;;  %v2192_v3 = vmul.f32 %v11107_v29, %v11106_v55  ;;  %v2298_v8 = vmul.f32 %v10959_v24, %v9231_v60  ;;  %v11109_v53 = vld [vmem:[#allocation21_spill] sm:$0xff]  ;;  %v11117_v40 = vld [vmem:[#allocation79_spill] sm:$0xff] }
 0x2c7   :  { %v9536_v34 = vadd.f32 %v1453_v22, %v1390_v28  ;;  %v1097_v32 = vadd.f32 %v1063_v31, %v999_v18  ;;  %v2076_v20 = vadd.f32 %v11103_v23, %v1978_v6  ;;  %v1980_v35 = vadd.f32 %v1943_v42, %v1882_v36  ;;  %v9562_v28 = vld [vmem:[%s10540_s0 + $0x68] sm:$0x3]  ;;  %v11110_v22 = vld [vmem:[#allocation42_spill] sm:$0xff]  ;;  %v9569_v6 = vld [vmem:[%s10540_s0 + $0x7e] sm:$0x3] }
 0x2c8   :  { %2634 = vrot.lane.b32.xlu1 %v2591_v33, %s6493_s29  ;;  %2046 = vrot.lane.b32.xlu0 %v2001_v39, %s6493_s29  ;;  %v409_v48 = vadd.f32 %v11104_v47, %v311_v25  ;;  %v11108_v33 = vld [vmem:[#allocation129_spill] sm:$0xff]  ;;  %v2689_v42 = vmul.f32 %v11069_v12, %v9231_v60  ;;  %v897_v63 = vadd.f32 %v881_v17, %v863_v37  ;;  %v11111_v36 = vld [vmem:[#allocation131_spill] sm:$0xff] }
 0x2c9   :  { %v2174_v39 = vadd.f32 %v11108_v33, %v2076_v20  ;;  %v310_v31 = vadd.f32 %v11110_v22, %v11109_v53  ;;  %v11114_v23 = vld [vmem:[#allocation43_spill] sm:$0xff]  ;;  %v11116_v47 = vld [vmem:[#allocation93_spill] sm:$0xff]  ;;  %v11121_v53 = vld [vmem:[#allocation12_spill] sm:$0xff] }
 0x2ca   :  { %v2041_v26 = vpop.permute.xlu1 %2040  ;;  %v1651_v57 = vpop.permute.xlu0 %1650  ;;  %v507_v18 = vadd.f32 %v475_v45, %v409_v48  ;;  %v2226_v45 = vmul.f32 %v9569_v6, %v11111_v36  ;;  %v995_v25 = vadd.f32 %v11112_v44, %v897_v63  ;;  %v1806_v20 = vmul.f32 %v11114_v23, %v9562_v28  ;;  %v11118_v17 = vld [vmem:[#allocation133_spill] sm:$0xff] }
 0x2cb   :  { %v2078_v51 = vadd.f32 %v2041_v26, %v1980_v35  ;;  %v1687_v4 = vadd.f32 %v1651_v57, %v1589_v49  ;;  %v2208_v1 = vadd.f32 %v2192_v3, %v2174_v39  ;;  %v11115_v35 = vld [vmem:[#allocation60_spill] sm:$0xff]  ;;  %v2260_v37 = vmul.f32 %v11118_v17, %v11117_v40  ;;  %v11119_v29 = vld [vmem:[#allocation9_spill] sm:$0xff]  ;;  %v11125_v40 = vld [vmem:[#allocation66_spill] sm:$0xff] }
 0x2cc   :  { %2144 = vrot.lane.b32.xlu1 %v2099_v10, %s6493_s29  ;;  %1754 = vrot.lane.b32.xlu0 %v1708_v52, %s6492_s15  ;;  %v11113_v10 = vld [vmem:[#allocation74_spill] sm:$0xff]  ;;  %v408_v49 = vadd.f32 %v11115_v35, %v310_v31  ;;  %v1093_v48 = vadd.f32 %v11116_v47, %v995_v25  ;;  %v1904_v63 = vmul.f32 %v7109_v11, %v9156_v59  ;;  %v9596_v31 = vld [vmem:[%s10540_s0 + $0x88] sm:$0x3]  ;;  %v11124_v35 = vld [vmem:[#allocation29_spill] sm:$0xff] }
 0x2cd   :  { %v2396_v52 = vmul.f32 %v11113_v10, %v9442_v41  ;;  %v2242_v33 = vadd.f32 %v2226_v45, %v2208_v1  ;;  %v11123_v25 = vld [vmem:[#allocation120_spill] sm:$0xff]  ;;  %v1611_v47 = vmul.f32 %v7038_v38, %v9397_v21 }
 0x2ce   :  { %v573_v27 = vpop.permute.xlu1 %572  ;;  %v2629_v15 = vpop.permute.xlu0 %2628  ;;  %v506_v3 = vadd.f32 %v11119_v29, %v408_v49  ;;  %v11126_v29 = vld [vmem:[#allocation124_spill] sm:$0xff] }
 0x2cf   :  { %v605_v9 = vadd.f32 %v573_v27, %v507_v18  ;;  %v2787_v27 = vmul.f32 %v10812_v43, %v9442_v41  ;;  %v2276_v44 = vadd.f32 %v2260_v37, %v2242_v33  ;;  %v6444_v37 = vld [vmem:[%s10540_s0 + $0x40] sm:$0x3] }
 0x2d0   :  { %2732 = vrot.lane.b32.xlu1 %v2689_v42, %s6493_s29  ;;  %2342 = vrot.lane.b32.xlu0 %v2298_v8, %s6492_s15  ;;  %v11120_v8 = vld [vmem:[#allocation80_spill] sm:$0xff]  ;;  %v604_v22 = vadd.f32 %v11121_v53, %v506_v3  ;;  %v11127_v3 = vld [vmem:[#allocation90_spill] sm:$0xff] }
 0x2d1   :  { %v1191_v18 = vadd.f32 %v11120_v8, %v1093_v48  ;;  %v2494_v48 = vmul.f32 %v7324_v19, %v9596_v31  ;;  %v1503_v33 = vmul.f32 %v11127_v3, %v11126_v29  ;;  %v11128_v8 = vld [vmem:[#allocation109_spill] sm:$0xff] }
 0x2d2   :  { %v1749_v26 = vpop.permute.xlu1 %1748  ;;  %v1161_v57 = vpop.permute.xlu0 %1160 }
 0x2d3   :  { %v1785_v39 = vadd.f32 %v1749_v26, %v1687_v4  ;;  %v1195_v42 = vadd.f32 %v1161_v57, %v1097_v32  ;;  %v11122_v32 = vld [vmem:[#allocation125_spill] sm:$0xff]  ;;  %v2374_v26 = vadd.f32 %v11125_v40, %v2276_v44  ;;  %v852_v44 = vmul.f32 %v7618_v7, %v8908_v62 }
 0x2d4   :  { %2440 = vrot.lane.b32.xlu1 %v2396_v52, %s6492_s15  ;;  %1852 = vrot.lane.b32.xlu0 %v1806_v20, %s6492_s15  ;;  %v1289_v4 = vadd.f32 %v11122_v32, %v1191_v18  ;;  %v702_v52 = vadd.f32 %v11123_v25, %v604_v22  ;;  %v2592_v32 = vmul.f32 %v11095_v50, %v9231_v60 }
 0x2d6   :  { %v9599_v1 = vpop.permute.xlu1 %2336  ;;  %v2139_v45 = vpop.permute.xlu0 %2138  ;;  %v1387_v49 = vadd.f32 %v11124_v35, %v1289_v4  ;;  %v800_v57 = vadd.f32 %v9476_v2, %v702_v52  ;;  %v2002_v2 = vmul.f32 %v11096_v30, %v9397_v21  ;;  %v11130_v52 = vld [vmem:[#allocation132_spill] sm:$0xff] }
 0x2d7   :  { %v9602_v20 = vadd.f32 %v2139_v45, %v2078_v51  ;;  %v818_v51 = vmul.f32 %v6444_v37, %v7598_v58  ;;  %v11131_v37 = vld [vmem:[#allocation82_spill] sm:$0xff] }
 0x2d8   :  { %1950 = vrot.lane.b32.xlu1 %v1904_v63, %s6493_s29  ;;  %2830 = vrot.lane.b32.xlu0 %v2787_v27, %s6493_s29  ;;  %v1485_v18 = vadd.f32 %v11128_v8, %v1387_v49  ;;  %v11129_v27 = vld [vmem:[#allocation47_spill] sm:$0xff] }
 0x2d9   :  { %v2472_v53 = vadd.f32 %v11129_v27, %v2374_v26  ;;  %v834_v4 = vadd.f32 %v818_v51, %v800_v57  ;;  %v2100_v26 = vmul.f32 %v10960_v16, %v9562_v28  ;;  %v886_v51 = vmul.f32 %v7637_v56, %v11131_v37  ;;  %v6014_v27 = vld [vmem:[%s10543_s3 + $0x270] sm:$0xff] }
 0x2da   :  { %v671_v63 = vpop.permute.xlu1 %670  ;;  %v2727_v38 = vpop.permute.xlu0 %2726  ;;  %v1519_v25 = vadd.f32 %v1503_v33, %v1485_v18 }
 0x2db   :  { %v703_v22 = vadd.f32 %v671_v63, %v605_v9  ;;  %v2570_v45 = vadd.f32 %v9518_v13, %v2472_v53  ;;  %v1537_v9 = vmul.f32 %v11130_v52, %v10915_v46  ;;  %v1709_v13 = vmul.f32 %v11102_v54, %v9562_v28  ;;  %v6008_v54 = vld [vmem:[%s10543_s3 + $0x240] sm:$0xff]  ;;  %v6019_v52 = vld [vmem:[%s10543_s3 + $0x288] sm:$0xff] }
 0x2dc   :  { %1658 = vrot.lane.b32.xlu1 %v1611_v47, %s6492_s15  ;;  %2538 = vrot.lane.b32.xlu0 %v2494_v48, %s6492_s15  ;;  %v868_v57 = vadd.f32 %v852_v44, %v834_v4  ;;  %v6012_v63 = vld [vmem:[%s10543_s3 + $0x260] sm:$0xff]  ;;  %v2690_v53 = vmul.f32 %v11069_v12, %v9442_v41 }
 0x2dd   :  { %v2668_v47 = vadd.f32 %v2629_v15, %v2570_v45  ;;  %v1553_v3 = vadd.f32 %v1537_v9, %v1519_v25  ;;  %v11132_v15 = vld [vmem:[#allocation88_spill] sm:$0xff] }
 0x2de   :  { %v1847_v35 = vpop.permute.xlu1 %1846  ;;  %v1259_v49 = vpop.permute.xlu0 %1258  ;;  %v902_v44 = vadd.f32 %v886_v51, %v868_v57  ;;  %v9672_v25 = vld [vmem:[%s10540_s0 + $0x6a] sm:$0x3]  ;;  %v6025_v51 = vld [vmem:[%s10543_s3 + $0x2b8] sm:$0xff] }
 0x2df   :  { %v1883_v48 = vadd.f32 %v1847_v35, %v1785_v39  ;;  %v1293_v40 = vadd.f32 %v1259_v49, %v1195_v42  ;;  %v2766_v62 = vadd.f32 %v2727_v38, %v2668_v47  ;;  %v1571_v39 = vmul.f32 %v11132_v15, %v11007_v5  ;;  %v5918_v42 = vld [vmem:[%s10542_s2 + $0x8] ss:$0 sm:$0xff]  ;;  %v6010_v38 = vld [vmem:[%s10543_s3 + $0x250] sm:$0xff] }
 0x2e0   :  { %2636 = vrot.lane.b32.xlu1 %v2592_v32, %s6493_s29  ;;  %2048 = vrot.lane.b32.xlu0 %v2002_v2, %s6493_s29  ;;  %v2299_v32 = vmul.f32 %v10959_v24, %v9442_v41  ;;  %v6445_v2 = vld [vmem:[%s10540_s0 + $0x60] sm:$0x3]  ;;  %v6153_v47 = vpack.c.bf16 %v6012_v63, %v6008_v54  ;;  %v2397_v54 = vmul.f32 %v11113_v10, %v9596_v31 }
 0x2e1   :  { %v1506_v4 = vmul.f32 %v6445_v2, %v11126_v29  ;;  %v1587_v9 = vadd.f32 %v1571_v39, %v1553_v3  ;;  %v1540_v3 = vmul.f32 %v10915_v46, %v8984_v61  ;;  %v11133_v39 = vld [vmem:[#allocation104_spill] sm:$0xff] }
 0x2e2   :  { %v2825_v33 = vpop.permute.xlu1 %2824  ;;  %v9645_v8 = vpop.permute.xlu0 %2434 }
 0x2e3   :  { %v2864_v18 = vadd.f32 %v2825_v33, %v2766_v62  ;;  %v6021_v62 = vld [vmem:[%s10543_s3 + $0x298] sm:$0xff]  ;;  %v1685_v33 = vadd.f32 %v11133_v39, %v1587_v9  ;;  %v1522_v63 = vadd.f32 %v1506_v4, %v9536_v34  ;;  %v1905_v34 = vmul.f32 %v7109_v11, %v9397_v21 }
 0x2e4   :  { %2146 = vrot.lane.b32.xlu1 %v2100_v26, %s6493_s29  ;;  %1756 = vrot.lane.b32.xlu0 %v1709_v13, %s6492_s15  ;;  %v6157_v26 = vpack.c.bf16 %v6014_v27, %v6010_v38  ;;  %v6023_v13 = vld [vmem:[%s10543_s3 + $0x2a8] sm:$0xff]  ;;  %v6163_v61 = vpack.c.bf16 %v6025_v51, %v6021_v62  ;;  %v11135_v4 = vld [vmem:[#allocation30_spill] sm:$0xff]  ;;  %v2193_v39 = vmul.f32 %v9569_v6, %v11106_v55  ;;  %v9739_v6 = vld [vmem:[%s10540_s0 + $0x80] sm:$0x3] }
 0x2e5   :  { %v2992_v45 = vadd.f32 %v5918_v42, %v2864_v18  ;;  %v1807_v18 = vmul.f32 %v11114_v23, %v9672_v25  ;;  %v2788_v23 = vmul.f32 %v10812_v43, %v9596_v31 }
 0x2e6   :  { %v967_v35 = vpop.permute.xlu1 %966  ;;  %v769_v49 = vpop.permute.xlu0 %768 }
 0x2e7   :  { %v3008_v57 = vmax.f32 %v2992_v45, 0.0  ;;  %v1000_v15 = vadd.f32 %v967_v35, %v902_v44  ;;  %v9686_v42 = vadd.f32 %v769_v49, %v703_v22  ;;  %v6159_v22 = vpack.c.bf16 %v6023_v13, %v6019_v52  ;;  %v9715_v52 = vld [vmem:[%s10540_s0 + $0x8a] sm:$0x3]  ;;  %v11136_v49 = vld [vmem:[#allocation99_spill] sm:$0xff] }
 0x2e8   :  { %2734 = vrot.lane.b32.xlu1 %v2690_v53, %s6493_s29  ;;  %2344 = vrot.lane.b32.xlu0 %v2299_v32, %s6492_s15  ;;  %v11134_v53 = vld [vmem:[#allocation126_spill] sm:$0xff]  ;;  %v11137_v13 = vld [vmem:[#allocation72_spill] sm:$0xff] }
 0x2e9   :  { %6006 = vmatmul.mubr.msk.f32.vlgmr.msra.gmra.mrb[0].mxu0 %vm3033_vm0, %v3008_v57  ;;  %6007 = vmatmul.mubr.msk.f32.vlgmr.msra.gmra.mrb[0].mxu1 %vm3033_vm0, %v3008_v57  ;;  %v1783_v32 = vadd.f32 %v11134_v53, %v1685_v33  ;;  %v11138_v33 = vld [vmem:[#allocation111_spill] sm:$0xff] }
 0x2ea   :  { %v1945_v38 = vpop.permute.xlu1 %1944  ;;  %v1357_v27 = vpop.permute.xlu0 %1356  ;;  %6154 = vmatpush1.bf16.msra.mxu0 %v6153_v47  ;;  %6158 = vmatpush1.bf16.msra.mxu1 %v6157_v26  ;;  %v2495_v26 = vmul.f32 %v7324_v19, %v9715_v52 }
 0x2eb   :  { %v1981_v2 = vadd.f32 %v1945_v38, %v1883_v48  ;;  %v1391_v45 = vadd.f32 %v1357_v27, %v1293_v40  ;;  %4506 = vmatprep.mubr.f32.mxu0 %v10779_v0  ;;  %4577 = vmatprep.mubr.f32.mxu1 %v10779_v0  ;;  %v1881_v44 = vadd.f32 %v11135_v4, %v1783_v32 }
 0x2ec   :  { %2442 = vrot.lane.b32.xlu1 %v2397_v54, %s6492_s15  ;;  %1854 = vrot.lane.b32.xlu0 %v1807_v18, %s6492_s15  ;;  %v1574_v48 = vmul.f32 %v11007_v5, %v9156_v59  ;;  %v1556_v40 = vadd.f32 %v1540_v3, %v1522_v63  ;;  %v2003_v59 = vmul.f32 %v11096_v30, %v9562_v28 }
 0x2ed   :  { %6160 = vmatprep.subr.bf16.mxu0 %v6159_v22  ;;  %6164 = vmatprep.subr.bf16.mxu1 %v6163_v61  ;;  %v1979_v11 = vadd.f32 %v11136_v49, %v1881_v44  ;;  %v2101_v30 = vmul.f32 %v10960_v16, %v9672_v25  ;;  %v2593_v63 = vmul.f32 %v11095_v50, %v9442_v41  ;;  %v6448_v49 = vld [vmem:[%s10540_s0 + $0x42] sm:$0x3] }
 0x2ee   :  { %v1065_v9 = vpop.permute.xlu1 %1064  ;;  %v2533_v35 = vpop.permute.xlu0 %2532  ;;  %v1590_v51 = vadd.f32 %v1574_v48, %v1556_v40  ;;  %v2227_v27 = vmul.f32 %v9739_v6, %v11111_v36  ;;  %v2691_v16 = vmul.f32 %v11069_v12, %v9596_v31  ;;  %v2300_v32 = vmul.f32 %v10959_v24, %v9596_v31 }
 0x2ef   :  { %v1098_v47 = vadd.f32 %v1065_v9, %v1000_v15  ;;  %v2077_v62 = vadd.f32 %v11137_v13, %v1979_v11  ;;  %v2789_v40 = vmul.f32 %v10812_v43, %v9715_v52  ;;  %v2398_v9 = vmul.f32 %v11113_v10, %v9715_v52 }
 0x2f0   :  { %1952 = vrot.lane.b32.xlu1 %v1905_v34, %s6493_s29  ;;  %2832 = vrot.lane.b32.xlu0 %v2788_v23, %s6493_s29  ;;  %v9754_v23 = vld [vmem:[%s10540_s0 + $0x82] sm:$0x3]  ;;  %v819_v11 = vmul.f32 %v6448_v49, %v7598_v58  ;;  %v2595_v49 = vmul.f32 %v11095_v50, %v9715_v52 }
 0x2f1   :  { %v2175_v15 = vadd.f32 %v11138_v33, %v2077_v62  ;;  %v2594_v62 = vmul.f32 %v11095_v50, %v9596_v31 }
 0x2f2   :  { %v1653_v57 = vpop.permute.xlu1 %1652  ;;  %v1455_v3 = vpop.permute.xlu0 %1454 }
 0x2f3   :  { %v1688_v54 = vadd.f32 %v1653_v57, %v1590_v51  ;;  %v9728_v18 = vadd.f32 %v1455_v3, %v1391_v45  ;;  %v2209_v38 = vadd.f32 %v2193_v39, %v2175_v15  ;;  %v835_v57 = vadd.f32 %v819_v11, %v9686_v42 }
 0x2f4   :  { %2050 = vrot.lane.b32.xlu1 %v2003_v59, %s6493_s29  ;;  %2540 = vrot.lane.b32.xlu0 %v2495_v26, %s6492_s15  ;;  %v853_v3 = vmul.f32 %v7618_v7, %v11131_v37  ;;  %v887_v42 = vmul.f32 %v7637_v56, %v9315_v14  ;;  %v6449_v56 = vld [vmem:[%s10540_s0 + $0x62] sm:$0x3] }
 0x2f5   :  { %v2243_v4 = vadd.f32 %v2227_v27, %v2209_v38  ;;  %v1507_v14 = vmul.f32 %v6449_v56, %v11126_v29 }
 0x2f6   :  { %v2631_v22 = vpop.permute.xlu1 %2630  ;;  %v2043_v61 = vpop.permute.xlu0 %2042  ;;  %v869_v7 = vadd.f32 %v853_v3, %v835_v57 }
 0x2f7   :  { %v9743_v53 = vadd.f32 %v2043_v61, %v1981_v2  ;;  %v2261_v2 = vmul.f32 %v9754_v23, %v11118_v17  ;;  %v1523_v11 = vadd.f32 %v1507_v14, %v9728_v18  ;;  %v6033_v18 = vld [vmem:[%s10543_s3 + $0x2e8] sm:$0xff]  ;;  %v2194_v14 = vmul.f32 %v9739_v6, %v11106_v55 }
 0x2f8   :  { %2148 = vrot.lane.b32.xlu1 %v2101_v30, %s6493_s29  ;;  %2638 = vrot.lane.b32.xlu0 %v2593_v63, %s6493_s29  ;;  %v2692_v30 = vmul.f32 %v11069_v12, %v9715_v52 }
 0x2f9   :  { %v2277_v13 = vadd.f32 %v2261_v2, %v2243_v4 }
 0x2fa   :  { %v1751_v45 = vpop.permute.xlu1 %1750  ;;  %v1163_v34 = vpop.permute.xlu0 %1162 }
 0x2fb   :  { %v1786_v44 = vadd.f32 %v1751_v45, %v1688_v54  ;;  %v1196_v48 = vadd.f32 %v1163_v34, %v1098_v47  ;;  %v9771_v47 = vld [vmem:[%s10540_s0 + $0x8c] sm:$0x3]  ;;  %v2375_v51 = vadd.f32 %v9599_v1, %v2277_v13  ;;  %v2301_v1 = vmul.f32 %v10959_v24, %v9715_v52  ;;  %v5919_v45 = vld [vmem:[%s10542_s2 + $0x9] ss:$0 sm:$0xff] }
 0x2fc   :  { %2736 = vrot.lane.b32.xlu1 %v2691_v16, %s6493_s29  ;;  %2346 = vrot.lane.b32.xlu0 %v2300_v32, %s6492_s15  ;;  %v2496_v58 = vmul.f32 %v7324_v19, %v9771_v47  ;;  %v2790_v27 = vmul.f32 %v10812_v43, %v9771_v47  ;;  %v2399_v24 = vmul.f32 %v11113_v10, %v9771_v47  ;;  %v9813_v16 = vld [vmem:[%s10540_s0 + $0x8e] sm:$0x3]  ;;  %v6018_v10 = vld [vmem:[%s10543_s3 + $0x280] sm:$0xff] }
 0x2fd   :  { %v2473_v15 = vadd.f32 %v9645_v8, %v2375_v51  ;;  %v6029_v51 = vld [vmem:[%s10543_s3 + $0x2c8] sm:$0xff] }
 0x2fe   :  { %v9773_v59 = vpop.permute.xlu1 %2338  ;;  %v9775_v26 = vpop.permute.xlu0 %2140 }
 0x2ff   :  { %v2571_v63 = vadd.f32 %v2533_v35, %v2473_v15 }
 0x300   :  { %2834 = vrot.lane.b32.xlu1 %v2789_v40, %s6493_s29  ;;  %2444 = vrot.lane.b32.xlu0 %v2398_v9, %s6492_s15  ;;  %v6024_v40 = vld [vmem:[%s10543_s3 + $0x2b0] sm:$0xff]  ;;  %v2497_v9 = vmul.f32 %v7324_v19, %v9813_v16 }
 0x301   :  { %v2669_v8 = vadd.f32 %v2631_v22, %v2571_v63  ;;  %v903_v22 = vadd.f32 %v887_v42, %v869_v7  ;;  %v2791_v63 = vmul.f32 %v10812_v43, %v9813_v16  ;;  %v1575_v42 = vmul.f32 %v11007_v5, %v9397_v21 }
 0x302   :  { %v1261_v39 = vpop.permute.xlu1 %1260  ;;  %v2729_v33 = vpop.permute.xlu0 %2728 }
 0x303   :  { %v1294_v54 = vadd.f32 %v1261_v39, %v1196_v48  ;;  %v2767_v35 = vadd.f32 %v2729_v33, %v2669_v8  ;;  %v6020_v48 = vld [vmem:[%s10543_s3 + $0x290] sm:$0xff]  ;;  %v6031_v39 = vld [vmem:[%s10543_s3 + $0x2d8] sm:$0xff] }
 0x304   :  { %2640 = vrot.lane.b32.xlu1 %v2594_v62, %s6493_s29  ;;  %2542 = vrot.lane.b32.xlu0 %v2496_v58, %s6492_s15  ;;  %v9840_v62 = vld [vmem:[%s10540_s0 + $0x64] sm:$0x3]  ;;  %v6165_v50 = vpack.c.bf16 %v6024_v40, %v6020_v48  ;;  %v6035_v33 = vld [vmem:[%s10543_s3 + $0x2f8] sm:$0xff] }
 0x305   :  { %v1541_v58 = vmul.f32 %v9840_v62, %v10915_v46 }
 0x306   :  { %v9796_v37 = vpop.permute.xlu1 %2436  ;;  %v1849_v61 = vpop.permute.xlu0 %1848 }
 0x307   :  { %v9798_v38 = vadd.f32 %v1849_v61, %v1786_v44  ;;  %v6022_v44 = vld [vmem:[%s10543_s3 + $0x2a0] sm:$0xff]  ;;  %v1557_v7 = vadd.f32 %v1541_v58, %v1523_v11  ;;  %v6167_v61 = vpack.c.bf16 %v6033_v18, %v6029_v51 }
 0x308   :  { %2738 = vrot.lane.b32.xlu1 %v2692_v30, %s6493_s29  ;;  %2348 = vrot.lane.b32.xlu0 %v2301_v1, %s6492_s15  ;;  %v6161_v3 = vpack.c.bf16 %v6022_v44, %v6018_v10  ;;  %v2693_v1 = vmul.f32 %v11069_v12, %v9771_v47  ;;  %v2228_v10 = vmul.f32 %v9754_v23, %v11111_v36 }
 0x309   :  { %v1591_v43 = vadd.f32 %v1575_v42, %v1557_v7  ;;  %v2262_v44 = vmul.f32 %v11118_v17, %v9231_v60  ;;  %v6043_v7 = vld [vmem:[%s10543_s3 + $0x328] sm:$0xff] }
 0x30a   :  { %v969_v32 = vpop.permute.xlu1 %968  ;;  %v2827_v34 = vpop.permute.xlu0 %2826 }
 0x30b   :  { %v1001_v2 = vadd.f32 %v969_v32, %v903_v22  ;;  %v2865_v4 = vadd.f32 %v2827_v34, %v2767_v35  ;;  %v2210_v34 = vadd.f32 %v2194_v14, %v9602_v20 }
 0x30c   :  { %2836 = vrot.lane.b32.xlu1 %v2790_v27, %s6493_s29  ;;  %2446 = vrot.lane.b32.xlu0 %v2399_v24, %s6492_s15 }
 0x30d   :  { %v2993_v13 = vadd.f32 %v5919_v45, %v2865_v4  ;;  %v2244_v48 = vadd.f32 %v2228_v10, %v2210_v34 }
 0x30e   :  { %v9847_v57 = vpop.permute.xlu1 %1946  ;;  %v1359_v19 = vpop.permute.xlu0 %1358 }
 0x30f   :  { %v3009_v15 = vmax.f32 %v2993_v13, 0.0  ;;  %v1392_v30 = vadd.f32 %v1359_v19, %v1294_v54  ;;  %v6171_v54 = vpack.c.bf16 %v6035_v33, %v6031_v39  ;;  %v5920_v39 = vld [vmem:[%s10542_s2 + $0xa] ss:$0 sm:$0xff] }
 0x310   :  { %2544 = vrot.lane.b32.xlu0 %v2497_v9, %s6492_s15  ;;  %2642 = vrot.lane.b32.xlu1 %v2595_v49, %s6493_s29  ;;  %v2278_v49 = vadd.f32 %v2262_v44, %v2244_v48 }
 0x311   :  { %6016 = vmatmul.mubr.msk.f32.vlgmr.msra.gmra.mrb[0].mxu0 %vm3033_vm0, %v3009_v15  ;;  %6017 = vmatmul.mubr.msk.f32.vlgmr.msra.gmra.mrb[0].mxu1 %vm3033_vm0, %v3009_v15 }
 0x312   :  { %v1067_v8 = vpop.permute.xlu1 %1066  ;;  %v2535_v27 = vpop.permute.xlu0 %2534  ;;  %6162 = vmatpush1.bf16.msra.mxu0 %v6161_v3  ;;  %6166 = vmatpush1.bf16.msra.mxu1 %v6165_v50  ;;  %v2376_v11 = vadd.f32 %v9773_v59, %v2278_v49  ;;  %v6028_v59 = vld [vmem:[%s10543_s3 + $0x2c0] sm:$0xff]  ;;  %v2263_v49 = vmul.f32 %v11118_v17, %v9442_v41 }
 0x313   :  { %v1099_v24 = vadd.f32 %v1067_v8, %v1001_v2  ;;  %4664 = vmatprep.mubr.f32.mxu0 %v10779_v0  ;;  %4735 = vmatprep.mubr.f32.mxu1 %v10779_v0 }
 0x314   :  { %2740 = vrot.lane.b32.xlu0 %v2693_v1, %s6493_s29  ;;  %2838 = vrot.lane.b32.xlu1 %v2791_v63, %s6493_s29  ;;  %v2474_v58 = vadd.f32 %v9796_v37, %v2376_v11  ;;  %v6032_v37 = vld [vmem:[%s10543_s3 + $0x2e0] sm:$0xff]  ;;  %v6034_v1 = vld [vmem:[%s10543_s3 + $0x2f0] sm:$0xff] }
 0x315   :  { %6168 = vmatprep.subr.bf16.mxu0 %v6167_v61  ;;  %6172 = vmatprep.subr.bf16.mxu1 %v6171_v54  ;;  %v6039_v63 = vld [vmem:[%s10543_s3 + $0x308] sm:$0xff]  ;;  %v6041_v61 = vld [vmem:[%s10543_s3 + $0x318] sm:$0xff] }
 0x316   :  { %v1655_v12 = vpop.permute.xlu1 %1654  ;;  %v1457_v56 = vpop.permute.xlu0 %1456  ;;  %v2572_v51 = vadd.f32 %v2535_v27, %v2474_v58  ;;  %v6045_v54 = vld [vmem:[%s10543_s3 + $0x338] sm:$0xff] }
 0x317   :  { %v9874_v35 = vadd.f32 %v1655_v12, %v1591_v43  ;;  %v9876_v22 = vadd.f32 %v1457_v56, %v1392_v30  ;;  %v6030_v30 = vld [vmem:[%s10543_s3 + $0x2d0] sm:$0xff]  ;;  %v2195_v12 = vmul.f32 %v9754_v23, %v11106_v55  ;;  %v2177_v56 = vadd.f32 %v9775_v26, %v9743_v53  ;;  %v6451_v23 = vld [vmem:[%s10540_s0 + $0x84] sm:$0x3] }
 0x318   :  { %v6173_v43 = vpack.c.bf16 %v6034_v1, %v6030_v30  ;;  %v6179_v34 = vpack.c.bf16 %v6045_v54, %v6041_v61  ;;  %v2229_v53 = vmul.f32 %v6451_v23, %v11111_v36  ;;  %v1982_v30 = vadd.f32 %v9847_v57, %v9798_v38  ;;  %v6042_v57 = vld [vmem:[%s10543_s3 + $0x320] sm:$0xff] }
 0x319   :  { %v2211_v44 = vadd.f32 %v2195_v12, %v2177_v56  ;;  %v2196_v54 = vmul.f32 %v6451_v23, %v11106_v55  ;;  %v6053_v56 = vld [vmem:[%s10543_s3 + $0x368] sm:$0xff] }
 0x31a   :  { %v2633_v32 = vpop.permute.xlu1 %2632  ;;  %v9878_v45 = vpop.permute.xlu0 %2044 }
 0x31b   :  { %v2670_v50 = vadd.f32 %v2633_v32, %v2572_v51  ;;  %v6175_v32 = vpack.c.bf16 %v6043_v7, %v6039_v63  ;;  %v2245_v11 = vadd.f32 %v2229_v53, %v2211_v44  ;;  %v2080_v63 = vadd.f32 %v9878_v45, %v1982_v30  ;;  %v6040_v45 = vld [vmem:[%s10543_s3 + $0x310] sm:$0xff] }
 0x31d   :  { %v2279_v51 = vadd.f32 %v2263_v49, %v2245_v11 }
 0x31e   :  { %v9883_v2 = vpop.permute.xlu1 %1752  ;;  %v1165_v4 = vpop.permute.xlu0 %1164 }
 0x31f   :  { %v9887_v6 = vadd.f32 %v1165_v4, %v1099_v24  ;;  %v6169_v24 = vpack.c.bf16 %v6032_v37, %v6028_v59  ;;  %v1787_v30 = vadd.f32 %v9883_v2, %v9874_v35 }
 0x322   :  { %v2341_v40 = vpop.permute.xlu1 %2340  ;;  %v9889_v9 = vpop.permute.xlu0 %2142 }
 0x326   :  { %v9892_v13 = vpop.permute.xlu1 %1262  ;;  %v2731_v20 = vpop.permute.xlu0 %2730 }
 0x327   :  { %v2768_v60 = vadd.f32 %v2731_v20, %v2670_v50  ;;  %v2377_v50 = vadd.f32 %v2341_v40, %v2279_v51  ;;  %v5921_v40 = vld [vmem:[%s10542_s2 + $0xb] ss:$0 sm:$0xff] }
 0x32a   :  { %v2439_v19 = vpop.permute.xlu1 %2438  ;;  %v9895_v3 = vpop.permute.xlu0 %1850 }
 0x32e   :  { %v9897_v18 = vpop.permute.xlu1 %1360  ;;  %v2829_v33 = vpop.permute.xlu0 %2828 }
 0x32f   :  { %v2866_v15 = vadd.f32 %v2829_v33, %v2768_v60  ;;  %v2475_v33 = vadd.f32 %v2439_v19, %v2377_v50  ;;  %v6038_v19 = vld [vmem:[%s10543_s3 + $0x300] sm:$0xff] }
 0x330   :  { %v6177_v23 = vpack.c.bf16 %v6042_v57, %v6038_v19 }
 0x331   :  { %v2994_v42 = vadd.f32 %v5920_v39, %v2866_v15 }
 0x332   :  { %v2537_v8 = vpop.permute.xlu1 %2536  ;;  %v9926_v27 = vpop.permute.xlu0 %1948 }
 0x333   :  { %v3010_v14 = vmax.f32 %v2994_v42, 0.0  ;;  %v2573_v59 = vadd.f32 %v2537_v8, %v2475_v33  ;;  %v2178_v8 = vadd.f32 %v9889_v9, %v2080_v63  ;;  %v1508_v9 = vmul.f32 %v9840_v62, %v11126_v29 }
 0x334   :  { %v2230_v62 = vmul.f32 %v11111_v36, %v9442_v41  ;;  %v2264_v63 = vmul.f32 %v11118_v17, %v9596_v31 }
 0x335   :  { %6026 = vmatmul.mubr.msk.f32.vlgmr.msra.gmra.mrb[0].mxu0 %vm3033_vm0, %v3010_v14  ;;  %6027 = vmatmul.mubr.msk.f32.vlgmr.msra.gmra.mrb[0].mxu1 %vm3033_vm0, %v3010_v14  ;;  %v6051_v14 = vld [vmem:[%s10543_s3 + $0x358] sm:$0xff]  ;;  %v1524_v50 = vadd.f32 %v1508_v9, %v9876_v22  ;;  %v1885_v22 = vadd.f32 %v9895_v3, %v1787_v30 }
 0x336   :  { %v9934_v10 = vpop.permute.xlu1 %1656  ;;  %v9936_v4 = vpop.permute.xlu0 %1458  ;;  %6170 = vmatpush1.bf16.msra.mxu0 %v6169_v24  ;;  %6174 = vmatpush1.bf16.msra.mxu1 %v6173_v43  ;;  %v6044_v24 = vld [vmem:[%s10543_s3 + $0x330] sm:$0xff]  ;;  %v6049_v43 = vld [vmem:[%s10543_s3 + $0x348] sm:$0xff]  ;;  %v6061_v30 = vld [vmem:[%s10543_s3 + $0x398] sm:$0xff] }
 0x337   :  { %4822 = vmatprep.mubr.f32.mxu0 %v10779_v0  ;;  %4893 = vmatprep.mubr.f32.mxu1 %v10779_v0  ;;  %v6181_v53 = vpack.c.bf16 %v6044_v24, %v6040_v45  ;;  %v6183_v11 = vpack.c.bf16 %v6053_v56, %v6049_v43  ;;  %v1983_v19 = vadd.f32 %v9926_v27, %v1885_v22 }
 0x338   :  { %6176 = vmatprep.subr.bf16.mxu0 %v6175_v32  ;;  %6180 = vmatprep.subr.bf16.mxu1 %v6179_v34  ;;  %v6055_v32 = vld [vmem:[%s10543_s3 + $0x378] sm:$0xff]  ;;  %v2197_v27 = vmul.f32 %v11106_v55, %v9442_v41  ;;  %v2231_v41 = vmul.f32 %v11111_v36, %v9596_v31 }
 0x339   :  { %v6187_v51 = vpack.c.bf16 %v6055_v32, %v6051_v14 }
 0x33a   :  { %v2635_v26 = vpop.permute.xlu1 %2634  ;;  %v9944_v48 = vpop.permute.xlu0 %2046 }
 0x33b   :  { %v2671_v1 = vadd.f32 %v2635_v26, %v2573_v59  ;;  %v2212_v26 = vadd.f32 %v2196_v54, %v2178_v8  ;;  %v6452_v8 = vld [vmem:[%s10540_s0 + $0x66] sm:$0x3]  ;;  %v2081_v3 = vadd.f32 %v9944_v48, %v1983_v19 }
 0x33e   :  { %v9948_v20 = vpop.permute.xlu1 %2144  ;;  %v9950_v58 = vpop.permute.xlu0 %1754 }
 0x33f   :  { %v2179_v43 = vadd.f32 %v9948_v20, %v2081_v3 }
 0x341   :  { %v2213_v14 = vadd.f32 %v2197_v27, %v2179_v43 }
 0x342   :  { %v2733_v60 = vpop.permute.xlu1 %2732  ;;  %v9952_v39 = vpop.permute.xlu0 %2342 }
 0x343   :  { %v2769_v42 = vadd.f32 %v2733_v60, %v2671_v1  ;;  %v1542_v60 = vmul.f32 %v10915_v46, %v9397_v21  ;;  %v2246_v1 = vadd.f32 %v2230_v62, %v2212_v26  ;;  %v1295_v21 = vadd.f32 %v9892_v13, %v9887_v6 }
 0x344   :  { %v2247_v26 = vadd.f32 %v2231_v41, %v2213_v14 }
 0x345   :  { %v2280_v54 = vadd.f32 %v2264_v63, %v2246_v1  ;;  %v6065_v1 = vld [vmem:[%s10543_s3 + $0x3b8] sm:$0xff] }
 0x346   :  { %v9954_v15 = vpop.permute.xlu1 %2440  ;;  %v9956_v37 = vpop.permute.xlu0 %1852 }
 0x347   :  { %v2378_v57 = vadd.f32 %v9952_v39, %v2280_v54  ;;  %v6195_v54 = vpack.c.bf16 %v6065_v1, %v6061_v30 }
 0x349   :  { %v2476_v9 = vadd.f32 %v9954_v15, %v2378_v57  ;;  %v1577_v15 = vmul.f32 %v11007_v5, %v9672_v25  ;;  %v6050_v25 = vld [vmem:[%s10543_s3 + $0x350] sm:$0xff] }
 0x34a   :  { %v9961_v7 = vpop.permute.xlu1 %1950  ;;  %v2831_v61 = vpop.permute.xlu0 %2830 }
 0x34b   :  { %v2867_v38 = vadd.f32 %v2831_v61, %v2769_v42  ;;  %v1576_v42 = vmul.f32 %v11007_v5, %v9562_v28  ;;  %v1393_v61 = vadd.f32 %v9897_v18, %v1295_v21  ;;  %v6052_v5 = vld [vmem:[%s10543_s3 + $0x360] sm:$0xff] }
 0x34d   :  { %v2995_v12 = vadd.f32 %v5921_v40, %v2867_v38  ;;  %v1558_v40 = vadd.f32 %v1542_v60, %v1524_v50  ;;  %v1509_v38 = vmul.f32 %v6452_v8, %v11126_v29  ;;  %v1491_v13 = vadd.f32 %v9936_v4, %v1393_v61 }
 0x34e   :  { %v9994_v34 = vpop.permute.xlu1 %1658  ;;  %v2539_v44 = vpop.permute.xlu0 %2538  ;;  %v1543_v4 = vmul.f32 %v10915_v46, %v9562_v28  ;;  %v5922_v46 = vld [vmem:[%s10542_s2 + $0xc] ss:$0 sm:$0xff]  ;;  %v2198_v50 = vmul.f32 %v11106_v55, %v9596_v31  ;;  %v2232_v61 = vmul.f32 %v11111_v36, %v9715_v52 }
 0x34f   :  { %v3011_v49 = vmax.f32 %v2995_v12, 0.0  ;;  %v1592_v6 = vadd.f32 %v1576_v42, %v1558_v40  ;;  %v1525_v12 = vadd.f32 %v1509_v38, %v1491_v13  ;;  %v2574_v48 = vadd.f32 %v2539_v44, %v2476_v9 }
 0x351   :  { %6036 = vmatmul.mubr.msk.f32.vlgmr.msra.gmra.mrb[0].mxu0 %vm3033_vm0, %v3011_v49  ;;  %6037 = vmatmul.mubr.msk.f32.vlgmr.msra.gmra.mrb[0].mxu1 %vm3033_vm0, %v3011_v49  ;;  %v1690_v18 = vadd.f32 %v9934_v10, %v1592_v6  ;;  %v6054_v49 = vld [vmem:[%s10543_s3 + $0x370] sm:$0xff] }
 0x352   :  { %v2637_v33 = vpop.permute.xlu1 %2636  ;;  %v2049_v59 = vpop.permute.xlu0 %2048  ;;  %6178 = vmatpush1.bf16.msra.mxu0 %v6177_v23  ;;  %6182 = vmatpush1.bf16.msra.mxu1 %v6181_v53  ;;  %v1559_v23 = vadd.f32 %v1543_v4, %v1525_v12  ;;  %v6189_v42 = vpack.c.bf16 %v6054_v49, %v6050_v25 }
 0x353   :  { %4980 = vmatprep.mubr.f32.mxu0 %v10779_v0  ;;  %5051 = vmatprep.mubr.f32.mxu1 %v10779_v0  ;;  %v1788_v29 = vadd.f32 %v9950_v58, %v1690_v18  ;;  %v2672_v10 = vadd.f32 %v2637_v33, %v2574_v48 }
 0x354   :  { %6184 = vmatprep.subr.bf16.mxu0 %v6183_v11  ;;  %6188 = vmatprep.subr.bf16.mxu1 %v6187_v51  ;;  %v6059_v11 = vld [vmem:[%s10543_s3 + $0x388] sm:$0xff]  ;;  %v1593_v51 = vadd.f32 %v1577_v15, %v1559_v23  ;;  %v6062_v15 = vld [vmem:[%s10543_s3 + $0x3a0] sm:$0xff] }
 0x355   :  { %v1886_v32 = vadd.f32 %v9956_v37, %v1788_v29  ;;  %v6048_v37 = vld [vmem:[%s10543_s3 + $0x340] sm:$0xff]  ;;  %v2199_v29 = vmul.f32 %v11106_v55, %v9715_v52  ;;  %v6060_v55 = vld [vmem:[%s10543_s3 + $0x390] sm:$0xff]  ;;  %v6069_v23 = vld [vmem:[%s10543_s3 + $0x3c8] sm:$0xff] }
 0x356   :  { %v2147_v35 = vpop.permute.xlu1 %2146  ;;  %v1757_v2 = vpop.permute.xlu0 %1756  ;;  %v6185_v22 = vpack.c.bf16 %v6052_v5, %v6048_v37  ;;  %v1691_v31 = vadd.f32 %v9994_v34, %v1593_v51  ;;  %v6073_v37 = vld [vmem:[%s10543_s3 + $0x3e8] sm:$0xff] }
 0x357   :  { %v1984_v20 = vadd.f32 %v9961_v7, %v1886_v32  ;;  %v2265_v7 = vmul.f32 %v11118_v17, %v9715_v52  ;;  %v6064_v52 = vld [vmem:[%s10543_s3 + $0x3b0] sm:$0xff]  ;;  %v6199_v51 = vpack.c.bf16 %v6073_v37, %v6069_v23 }
 0x358   :  { %v1789_v38 = vadd.f32 %v1757_v2, %v1691_v31  ;;  %v6197_v25 = vpack.c.bf16 %v6064_v52, %v6060_v55  ;;  %v6072_v31 = vld [vmem:[%s10543_s3 + $0x3e0] sm:$0xff]  ;;  %v5572_v23 = vld [vmem:[%s10545_s5 + $0x30] sm:$0xff] }
 0x359   :  { %v2082_v44 = vadd.f32 %v2049_v59, %v1984_v20  ;;  %v6063_v59 = vld [vmem:[%s10543_s3 + $0x3a8] sm:$0xff]  ;;  %v2281_v40 = vadd.f32 %v2265_v7, %v2247_v26  ;;  %v6075_v26 = vld [vmem:[%s10543_s3 + $0x3f8] sm:$0xff]  ;;  %v5570_v52 = vld [vmem:[%s10545_s5 + $0x20] sm:$0xff] }
 0x35a   :  { %v2735_v45 = vpop.permute.xlu1 %2734  ;;  %v2345_v24 = vpop.permute.xlu0 %2344  ;;  %v6191_v19 = vpack.c.bf16 %v6063_v59, %v6059_v11  ;;  %v5636_v37 = vld [vmem:[%s10545_s5 + $0x230] sm:$0xff] }
 0x35b   :  { %v2770_v58 = vadd.f32 %v2735_v45, %v2672_v10  ;;  %v2180_v60 = vadd.f32 %v2147_v35, %v2082_v44  ;;  %v2379_v6 = vadd.f32 %v2345_v24, %v2281_v40  ;;  %v2266_v24 = vmul.f32 %v11118_v17, %v9771_v47  ;;  %v6058_v10 = vld [vmem:[%s10543_s3 + $0x380] sm:$0xff]  ;;  %v6071_v44 = vld [vmem:[%s10543_s3 + $0x3d8] sm:$0xff]  ;;  %v6070_v40 = vld [vmem:[%s10543_s3 + $0x3d0] sm:$0xff] }
 0x35c   :  { %v6193_v5 = vpack.c.bf16 %v6062_v15, %v6058_v10  ;;  %v5635_v10 = vld [vmem:[%s10545_s5 + $0x228] sm:$0xff] }
 0x35d   :  { %v2214_v8 = vadd.f32 %v2198_v50, %v2180_v60  ;;  %v2267_v60 = vmul.f32 %v11118_v17, %v9813_v16  ;;  %v6068_v17 = vld [vmem:[%s10543_s3 + $0x3c0] sm:$0xff] }
 0x35e   :  { %v2443_v56 = vpop.permute.xlu1 %2442  ;;  %v1855_v39 = vpop.permute.xlu0 %1854 }
 0x35f   :  { %v2477_v57 = vadd.f32 %v2443_v56, %v2379_v6  ;;  %v1887_v34 = vadd.f32 %v1855_v39, %v1789_v38  ;;  %v2248_v2 = vadd.f32 %v2232_v61, %v2214_v8  ;;  %v5923_v39 = vld [vmem:[%s10542_s2 + $0xd] ss:$0 sm:$0xff]  ;;  %v5569_v8 = vld [vmem:[%s10545_s5 + $0x18] sm:$0xff] }
 0x360   :  { %v5567_v61 = vld [vmem:[%s10545_s5 + $0x8] sm:$0xff]  ;;  %v5633_v6 = vld [vmem:[%s10545_s5 + $0x218] sm:$0xff] }
 0x361   :  { %v2282_v56 = vadd.f32 %v2266_v24, %v2248_v2  ;;  %v5631_v38 = vld [vmem:[%s10545_s5 + $0x208] sm:$0xff]  ;;  %v6207_v2 = vpack.c.bf16 %v5569_v8, %v5567_v61 }
 0x362   :  { %v1953_v53 = vpop.permute.xlu1 %1952  ;;  %v2833_v28 = vpop.permute.xlu0 %2832  ;;  %v6271_v24 = vpack.c.bf16 %v5633_v6, %v5631_v38  ;;  %v5647_v61 = vld [vmem:[%s10545_s5 + $0x288] sm:$0xff]  ;;  %v5582_v38 = vld [vmem:[%s10545_s5 + $0x80] sm:$0xff]  ;;  %v5584_v6 = vld [vmem:[%s10545_s5 + $0x90] sm:$0xff] }
 0x363   :  { %v2868_v62 = vadd.f32 %v2833_v28, %v2770_v58  ;;  %v1985_v45 = vadd.f32 %v1953_v53, %v1887_v34  ;;  %v2233_v28 = vmul.f32 %v11111_v36, %v9771_v47  ;;  %v6203_v36 = vpack.c.bf16 %v6075_v26, %v6071_v44  ;;  %v5575_v44 = vld [vmem:[%s10545_s5 + $0x48] sm:$0xff]  ;;  %v5577_v26 = vld [vmem:[%s10545_s5 + $0x58] sm:$0xff] }
 0x365   :  { %v2996_v33 = vadd.f32 %v5922_v46, %v2868_v62 }
 0x366   :  { %v2051_v63 = vpop.permute.xlu1 %2050  ;;  %v2541_v21 = vpop.permute.xlu0 %2540 }
 0x367   :  { %v3012_v35 = vmax.f32 %v2996_v33, 0.0  ;;  %v2575_v18 = vadd.f32 %v2541_v21, %v2477_v57  ;;  %v2083_v9 = vadd.f32 %v2051_v63, %v1985_v45  ;;  %v5924_v63 = vld [vmem:[%s10542_s2 + $0xe] ss:$0 sm:$0xff]  ;;  %v6201_v57 = vpack.c.bf16 %v6072_v31, %v6068_v17  ;;  %v5644_v31 = vld [vmem:[%s10545_s5 + $0x270] sm:$0xff] }
 0x369   :  { %6046 = vmatmul.mubr.msk.f32.vlgmr.msra.gmra.mrb[0].mxu0 %vm3033_vm0, %v3012_v35  ;;  %6047 = vmatmul.mubr.msk.f32.vlgmr.msra.gmra.mrb[0].mxu1 %vm3033_vm0, %v3012_v35  ;;  %v6074_v35 = vld [vmem:[%s10543_s3 + $0x3f0] sm:$0xff] }
 0x36a   :  { %v2149_v13 = vpop.permute.xlu1 %2148  ;;  %v2639_v3 = vpop.permute.xlu0 %2638  ;;  %6186 = vmatpush1.bf16.msra.mxu0 %v6185_v22  ;;  %6190 = vmatpush1.bf16.msra.mxu1 %v6189_v42  ;;  %v6205_v34 = vpack.c.bf16 %v6074_v35, %v6070_v40  ;;  %v5583_v40 = vld [vmem:[%s10545_s5 + $0x88] sm:$0xff]  ;;  %v5585_v35 = vld [vmem:[%s10545_s5 + $0x98] sm:$0xff] }
 0x36b   :  { %5138 = vmatprep.mubr.f32.mxu0 %v10779_v0  ;;  %5209 = vmatprep.mubr.f32.mxu1 %v10779_v0  ;;  %v2673_v12 = vadd.f32 %v2639_v3, %v2575_v18  ;;  %v2181_v4 = vadd.f32 %v2149_v13, %v2083_v9 }
 0x36c   :  { %6192 = vmatprep.subr.bf16.mxu0 %v6191_v19  ;;  %6196 = vmatprep.subr.bf16.mxu1 %v6195_v54 }
 0x36d   :  { %v2215_v58 = vadd.f32 %v2199_v29, %v2181_v4  ;;  %v5925_v29 = vld [vmem:[%s10542_s2 + $0xf] ss:$0 sm:$0xff]  ;;  %v5566_v4 = vld [vmem:[%s10545_s5] sm:$0xff]  ;;  %s5866_s2 = sshll.u32 %s6495_s22, 4  ;;  %s5867_s2 = int_to_ptr.vmem [resolvable:$true] %s5866_s2 }
 0x36e   :  { %v2737_v27 = vpop.permute.xlu1 %2736  ;;  %v2347_v43 = vpop.permute.xlu0 %2346  ;;  %s6465_s23 = scalar_lea.vmem %s5867_s2, 64  ;;  %p6470_p6 = scmp.lt.s32.totalorder %s5867_s2, %s5867_s2 }
 0x36f   :  { %v2771_v48 = vadd.f32 %v2737_v27, %v2673_v12  ;;  %v2380_v41 = vadd.f32 %v2347_v43, %v2282_v56  ;;  %v2249_v50 = vadd.f32 %v2233_v28, %v2215_v58  ;;  %v5634_v28 = vld [vmem:[%s10545_s5 + $0x220] sm:$0xff]  ;;  %p6466_p5 = scmp.ne.s32.totalorder %s5867_s2, %s6465_s23  ;;  %p6471_p7 = scmp.lt.s32.totalorder %s6465_s23, %s6465_s23 }
 0x371   :  { %v2283_v1 = vadd.f32 %v2267_v60, %v2249_v50  ;;  %v5640_v50 = vld [vmem:[%s10545_s5 + $0x250] sm:$0xff]  ;;  %v5579_v60 = vld [vmem:[%s10545_s5 + $0x68] sm:$0xff]  ;;  %p6472_p8 = por %p6471_p7, %p6470_p6 }
 0x372   :  { %v2835_v14 = vpop.permute.xlu1 %2834  ;;  %v2445_v32 = vpop.permute.xlu0 %2444 }
 0x373   :  { %v2869_v20 = vadd.f32 %v2835_v14, %v2771_v48  ;;  %v2478_v46 = vadd.f32 %v2445_v32, %v2380_v41  ;;  %v5568_v48 = vld [vmem:[%s10545_s5 + $0x10] sm:$0xff]  ;;  %v5571_v14 = vld [vmem:[%s10545_s5 + $0x28] sm:$0xff]  ;;  %v5573_v32 = vld [vmem:[%s10545_s5 + $0x38] sm:$0xff]  ;;  %p6473_p9 = pnand %p6472_p8, %p6466_p5 }
 0x374   :  { %v5637_v41 = vld [vmem:[%s10545_s5 + $0x238] sm:$0xff]  ;;  %v6209_v15 = vpack.c.bf16 %v5568_v48, %v5566_v4  ;;  %v5650_v48 = vld [vmem:[%s10545_s5 + $0x2a0] sm:$0xff] }
 0x375   :  { %v2997_v53 = vadd.f32 %v5923_v39, %v2869_v20  ;;  %v5630_v39 = vld [vmem:[%s10545_s5 + $0x200] sm:$0xff] }
 0x376   :  { %v2641_v7 = vpop.permute.xlu1 %2640  ;;  %v2543_v62 = vpop.permute.xlu0 %2542 }
 0x377   :  { %v3013_v49 = vmax.f32 %v2997_v53, 0.0  ;;  %v2576_v11 = vadd.f32 %v2543_v62, %v2478_v46  ;;  %v6211_v53 = vpack.c.bf16 %v5573_v32, %v5571_v14  ;;  %v6275_v46 = vpack.c.bf16 %v5637_v41, %v5635_v10  ;;  %v5641_v62 = vld [vmem:[%s10545_s5 + $0x258] sm:$0xff]  ;;  %v5655_v14 = vld [vmem:[%s10545_s5 + $0x2c8] sm:$0xff] }
 0x378   :  { %v5657_v32 = vld [vmem:[%s10545_s5 + $0x2d8] sm:$0xff] }
 0x379   :  { %6056 = vmatmul.mubr.msk.f32.vlgmr.msra.gmra.mrb[0].mxu0 %vm3033_vm0, %v3013_v49  ;;  %6057 = vmatmul.mubr.msk.f32.vlgmr.msra.gmra.mrb[0].mxu1 %vm3033_vm0, %v3013_v49  ;;  %v2674_v47 = vadd.f32 %v2641_v7, %v2576_v11  ;;  %v5639_v7 = vld [vmem:[%s10545_s5 + $0x248] sm:$0xff]  ;;  %v5574_v49 = vld [vmem:[%s10545_s5 + $0x40] sm:$0xff]  ;;  %v5576_v11 = vld [vmem:[%s10545_s5 + $0x50] sm:$0xff] }
 0x37a   :  { %v2739_v33 = vpop.permute.xlu1 %2738  ;;  %v2349_v59 = vpop.permute.xlu0 %2348  ;;  %6194 = vmatpush1.bf16.msra.mxu0 %v6193_v5  ;;  %6198 = vmatpush1.bf16.msra.mxu1 %v6197_v25  ;;  %v6213_v5 = vpack.c.bf16 %v5572_v23, %v5570_v52  ;;  %v6277_v25 = vpack.c.bf16 %v5636_v37, %v5634_v28  ;;  %v6295_v52 = vpack.c.bf16 %v5657_v32, %v5655_v14  ;;  %v5654_v23 = vld [vmem:[%s10545_s5 + $0x2c0] sm:$0xff]  ;;  %v5659_v28 = vld [vmem:[%s10545_s5 + $0x2e8] sm:$0xff]  ;;  %v5661_v37 = vld [vmem:[%s10545_s5 + $0x2f8] sm:$0xff] }
 0x37b   :  { %5296 = vmatprep.mubr.f32.mxu0 %v10779_v0  ;;  %5367 = vmatprep.mubr.f32.mxu1 %v10779_v0  ;;  %v2772_v30 = vadd.f32 %v2739_v33, %v2674_v47  ;;  %v2381_v16 = vadd.f32 %v2349_v59, %v2283_v1  ;;  %v5638_v47 = vld [vmem:[%s10545_s5 + $0x240] sm:$0xff]  ;;  %v5581_v33 = vld [vmem:[%s10545_s5 + $0x78] sm:$0xff]  ;;  %v5643_v59 = vld [vmem:[%s10545_s5 + $0x268] sm:$0xff]  ;;  %v6217_v1 = vpack.c.bf16 %v5576_v11, %v5574_v49 }
 0x37c   :  { %6200 = vmatprep.subr.bf16.mxu0 %v6199_v51  ;;  %6204 = vmatprep.subr.bf16.mxu1 %v6203_v36  ;;  %v6215_v51 = vpack.c.bf16 %v5577_v26, %v5575_v44  ;;  %v6279_v36 = vpack.c.bf16 %v5641_v62, %v5639_v7  ;;  %v6219_v17 = vpack.c.bf16 %v5581_v33, %v5579_v60  ;;  %v5594_v7 = vld [vmem:[%s10545_s5 + $0xe0] sm:$0xff]  ;;  %v5596_v62 = vld [vmem:[%s10545_s5 + $0xf0] sm:$0xff] }
 0x37d   :  { %v5658_v49 = vld [vmem:[%s10545_s5 + $0x2e0] sm:$0xff]  ;;  %v5660_v11 = vld [vmem:[%s10545_s5 + $0x2f0] sm:$0xff]  ;;  %v6237_v60 = vpack.c.bf16 %v5596_v62, %v5594_v7 }
 0x37e   :  { %v2837_v21 = vpop.permute.xlu1 %2836  ;;  %v2447_v22 = vpop.permute.xlu0 %2446  ;;  %v6301_v33 = vpack.c.bf16 %v5660_v11, %v5658_v49  ;;  %v5610_v14 = vld [vmem:[%s10545_s5 + $0x160] sm:$0xff]  ;;  %v5612_v32 = vld [vmem:[%s10545_s5 + $0x170] sm:$0xff]  ;;  %v5683_v49 = vld [vmem:[%s10545_s5 + $0x3a8] sm:$0xff] }
 0x37f   :  { %v2870_v42 = vadd.f32 %v2837_v21, %v2772_v30  ;;  %v2479_v54 = vadd.f32 %v2447_v22, %v2381_v16  ;;  %v5645_v30 = vld [vmem:[%s10545_s5 + $0x278] sm:$0xff]  ;;  %v5578_v21 = vld [vmem:[%s10545_s5 + $0x60] sm:$0xff]  ;;  %v5580_v22 = vld [vmem:[%s10545_s5 + $0x70] sm:$0xff] }
 0x380   :  { %v6283_v16 = vpack.c.bf16 %v5645_v30, %v5643_v59  ;;  %v5598_v59 = vld [vmem:[%s10545_s5 + $0x100] sm:$0xff]  ;;  %v5600_v30 = vld [vmem:[%s10545_s5 + $0x110] sm:$0xff]  ;;  %v5685_v11 = vld [vmem:[%s10545_s5 + $0x3b8] sm:$0xff] }
 0x381   :  { %v2998_v19 = vadd.f32 %v5924_v63, %v2870_v42  ;;  %v6281_v63 = vpack.c.bf16 %v5640_v50, %v5638_v47  ;;  %v5642_v42 = vld [vmem:[%s10545_s5 + $0x260] sm:$0xff]  ;;  %v5663_v47 = vld [vmem:[%s10545_s5 + $0x308] sm:$0xff]  ;;  %v5665_v50 = vld [vmem:[%s10545_s5 + $0x318] sm:$0xff] }
 0x382   :  { %v2545_v13 = vpop.permute.xlu0 %2544  ;;  %v2643_v3 = vpop.permute.xlu1 %2642  ;;  %v6285_v8 = vpack.c.bf16 %v5644_v31, %v5642_v42  ;;  %v5667_v42 = vld [vmem:[%s10545_s5 + $0x328] sm:$0xff]  ;;  %v5669_v31 = vld [vmem:[%s10545_s5 + $0x338] sm:$0xff]  ;;  %v5678_v7 = vld [vmem:[%s10545_s5 + $0x380] sm:$0xff] }
 0x383   :  { %v3014_v45 = vmax.f32 %v2998_v19, 0.0  ;;  %v2577_v18 = vadd.f32 %v2545_v13, %v2479_v54  ;;  %v5649_v19 = vld [vmem:[%s10545_s5 + $0x298] sm:$0xff]  ;;  %v6221_v54 = vpack.c.bf16 %v5580_v22, %v5578_v21  ;;  %v6223_v13 = vpack.c.bf16 %v5585_v35, %v5583_v40  ;;  %v5662_v21 = vld [vmem:[%s10545_s5 + $0x300] sm:$0xff]  ;;  %v5664_v22 = vld [vmem:[%s10545_s5 + $0x310] sm:$0xff] }
 0x384   :  { %v6241_v40 = vpack.c.bf16 %v5600_v30, %v5598_v59  ;;  %v6305_v35 = vpack.c.bf16 %v5664_v22, %v5662_v21  ;;  %v5680_v62 = vld [vmem:[%s10545_s5 + $0x390] sm:$0xff]  ;;  %v5682_v59 = vld [vmem:[%s10545_s5 + $0x3a0] sm:$0xff]  ;;  %v5687_v21 = vld [vmem:[%s10545_s5 + $0x3c8] sm:$0xff] }
 0x385   :  { %v2675_v27 = vadd.f32 %v2643_v3, %v2577_v18  ;;  %6066 = vmatmul.mubr.msk.f32.vlgmr.msra.gmra.mrb[0].mxu0 %vm3033_vm0, %v3014_v45  ;;  %6067 = vmatmul.mubr.msk.f32.vlgmr.msra.gmra.mrb[0].mxu1 %vm3033_vm0, %v3014_v45  ;;  %v6287_v3 = vpack.c.bf16 %v5649_v19, %v5647_v61  ;;  %v5587_v45 = vld [vmem:[%s10545_s5 + $0xa8] sm:$0xff]  ;;  %v5589_v18 = vld [vmem:[%s10545_s5 + $0xb8] sm:$0xff]  ;;  %v5602_v61 = vld [vmem:[%s10545_s5 + $0x120] sm:$0xff] }
 0x386   :  { %v2741_v43 = vpop.permute.xlu0 %2740  ;;  %6202 = vmatpush1.bf16.msra.mxu0 %v6201_v57  ;;  %v2839_v9 = vpop.permute.xlu1 %2838  ;;  %6206 = vmatpush1.bf16.msra.mxu1 %v6205_v34  ;;  %v5646_v57 = vld [vmem:[%s10545_s5 + $0x280] sm:$0xff]  ;;  %v5648_v34 = vld [vmem:[%s10545_s5 + $0x290] sm:$0xff]  ;;  %v5689_v22 = vld [vmem:[%s10545_s5 + $0x3d8] sm:$0xff] }
 0x387   :  { %v2773_v12 = vadd.f32 %v2741_v43, %v2675_v27  ;;  %5454 = vmatprep.mubr.f32.mxu0 %v10779_v0  ;;  %5525 = vmatprep.mubr.f32.mxu1 %v10779_v0  ;;  %v5632_v0 = vld [vmem:[%s10545_s5 + $0x210] sm:$0xff]  ;;  %v6225_v27 = vpack.c.bf16 %v5584_v6, %v5582_v38  ;;  %v6289_v43 = vpack.c.bf16 %v5648_v34, %v5646_v57  ;;  %v5666_v38 = vld [vmem:[%s10545_s5 + $0x320] sm:$0xff]  ;;  %v5671_v57 = vld [vmem:[%s10545_s5 + $0x348] sm:$0xff] }
 0x388   :  { %6208 = vmatprep.subr.bf16.mxu1 %v6207_v2  ;;  %6272 = vmatprep.subr.bf16.mxu0 %v6271_v24  ;;  %v6273_v55 = vpack.c.bf16 %v5632_v0, %v5630_v39  ;;  %v5651_v2 = vld [vmem:[%s10545_s5 + $0x2a8] sm:$0xff]  ;;  %v5653_v24 = vld [vmem:[%s10545_s5 + $0x2b8] sm:$0xff]  ;;  %v5604_v19 = vld [vmem:[%s10545_s5 + $0x130] sm:$0xff] }
 0x389   :  { %v2871_v56 = vadd.f32 %v2839_v9, %v2773_v12  ;;  %v5586_v9 = vld [vmem:[%s10545_s5 + $0xa0] sm:$0xff]  ;;  %v5588_v12 = vld [vmem:[%s10545_s5 + $0xb0] sm:$0xff]  ;;  %v6291_v4 = vpack.c.bf16 %v5653_v24, %v5651_v2  ;;  %v5591_v39 = vld [vmem:[%s10545_s5 + $0xc8] sm:$0xff] }
 0x38a   :  { %v5593_v0 = vld [vmem:[%s10545_s5 + $0xd8] sm:$0xff]  ;;  %v6229_v10 = vpack.c.bf16 %v5588_v12, %v5586_v9  ;;  %v5668_v6 = vld [vmem:[%s10545_s5 + $0x330] sm:$0xff]  ;;  %v5606_v2 = vld [vmem:[%s10545_s5 + $0x140] sm:$0xff] }
 0x38b   :  { %v2999_v20 = vadd.f32 %v5925_v29, %v2871_v56  ;;  %v6227_v29 = vpack.c.bf16 %v5589_v18, %v5587_v45  ;;  %v5652_v56 = vld [vmem:[%s10545_s5 + $0x2b0] sm:$0xff]  ;;  %v5673_v34 = vld [vmem:[%s10545_s5 + $0x358] sm:$0xff]  ;;  %v6245_v45 = vpack.c.bf16 %v5604_v19, %v5602_v61  ;;  %v6309_v18 = vpack.c.bf16 %v5668_v6, %v5666_v38  ;;  %v5670_v9 = vld [vmem:[%s10545_s5 + $0x340] sm:$0xff] }
 0x38c   :  { %v6293_v41 = vpack.c.bf16 %v5652_v56, %v5650_v48  ;;  %v5608_v24 = vld [vmem:[%s10545_s5 + $0x150] sm:$0xff]  ;;  %v5675_v48 = vld [vmem:[%s10545_s5 + $0x368] sm:$0xff]  ;;  %v5677_v56 = vld [vmem:[%s10545_s5 + $0x378] sm:$0xff] }
 0x38d   :  { %v3015_v58 = vmax.f32 %v2999_v20, 0.0  ;;  %v5590_v20 = vld [vmem:[%s10545_s5 + $0xc0] sm:$0xff]  ;;  %v5672_v12 = vld [vmem:[%s10545_s5 + $0x350] sm:$0xff]  ;;  %v5627_v38 = vld [vmem:[%s10545_s5 + $0x1e8] sm:$0xff] }
 0x38e   :  { %v5684_v30 = vld [vmem:[%s10545_s5 + $0x3b0] sm:$0xff]  ;;  %v5686_v61 = vld [vmem:[%s10545_s5 + $0x3c0] sm:$0xff]  ;;  %v5629_v6 = vld [vmem:[%s10545_s5 + $0x1f8] sm:$0xff] }
 0x38f   :  { %6076 = vmatmul.mubr.msk.f32.vlgmr.msra.gmra.mrb[0].mxu0 %vm3033_vm0, %v3015_v58  ;;  %6077 = vmatmul.mubr.msk.f32.vlgmr.msra.gmra.mrb[0].mxu1 %vm3033_vm0, %v3015_v58  ;;  %v5656_v58 = vld [vmem:[%s10545_s5 + $0x2d0] sm:$0xff] }
 0x390   :  { %6210 = vmatpush1.bf16.msra.mxu1 %v6209_v15  ;;  %6274 = vmatpush1.bf16.msra.mxu0 %v6273_v55  ;;  %v5592_v15 = vld [vmem:[%s10545_s5 + $0xd0] sm:$0xff]  ;;  %v6231_v55 = vpack.c.bf16 %v5593_v0, %v5591_v39  ;;  %v6297_v26 = vpack.c.bf16 %v5656_v58, %v5654_v23  ;;  %v6249_v39 = vpack.c.bf16 %v5608_v24, %v5606_v2  ;;  %v5679_v23 = vld [vmem:[%s10545_s5 + $0x388] sm:$0xff]  ;;  %v5681_v58 = vld [vmem:[%s10545_s5 + $0x398] sm:$0xff] }
 0x391   :  { %6212 = vmatprep.subr.bf16.mxu1 %v6211_v53  ;;  %6276 = vmatprep.subr.bf16.mxu0 %v6275_v46  ;;  %v5595_v53 = vld [vmem:[%s10545_s5 + $0xe8] sm:$0xff]  ;;  %v5597_v46 = vld [vmem:[%s10545_s5 + $0xf8] sm:$0xff]  ;;  %v6233_v44 = vpack.c.bf16 %v5592_v15, %v5590_v20  ;;  %v6313_v0 = vpack.c.bf16 %v5672_v12, %v5670_v9  ;;  %v5674_v20 = vld [vmem:[%s10545_s5 + $0x360] sm:$0xff]  ;;  %v5538_v9 = vlaneseq }
 0x392   :  { %v5676_v15 = vld [vmem:[%s10545_s5 + $0x370] sm:$0xff]  ;;  %v5690_v24 = vld [vmem:[%s10545_s5 + $0x3e0] sm:$0xff] }
 0x393   :  { %v5539_v12 = vshrl.u32 %v5538_v9, 7 }
 0x394   :  { %6214 = vmatpush1.bf16.msra.mxu1 %v6213_v5  ;;  %6278 = vmatpush1.bf16.msra.mxu0 %v6277_v25  ;;  %v6235_v5 = vpack.c.bf16 %v5597_v46, %v5595_v53  ;;  %v6299_v25 = vpack.c.bf16 %v5661_v37, %v5659_v28  ;;  %v6253_v53 = vpack.c.bf16 %v5612_v32, %v5610_v14  ;;  %v5614_v28 = vld [vmem:[%s10545_s5 + $0x180] sm:$0xff]  ;;  %v5616_v37 = vld [vmem:[%s10545_s5 + $0x190] sm:$0xff] }
 0x395   :  { %6216 = vmatprep.subr.bf16.mxu1 %v6215_v51  ;;  %6280 = vmatprep.subr.bf16.mxu0 %v6279_v36  ;;  %v5599_v51 = vld [vmem:[%s10545_s5 + $0x108] sm:$0xff]  ;;  %v5601_v36 = vld [vmem:[%s10545_s5 + $0x118] sm:$0xff]  ;;  %v6317_v46 = vpack.c.bf16 %v5676_v15, %v5674_v20 }
 0x398   :  { %6218 = vmatpush1.bf16.msra.mxu1 %v6217_v1  ;;  %6282 = vmatpush1.bf16.msra.mxu0 %v6281_v63  ;;  %v6239_v1 = vpack.c.bf16 %v5601_v36, %v5599_v51  ;;  %v6303_v63 = vpack.c.bf16 %v5665_v50, %v5663_v47  ;;  %v6257_v51 = vpack.c.bf16 %v5616_v37, %v5614_v28  ;;  %v5618_v47 = vld [vmem:[%s10545_s5 + $0x1a0] sm:$0xff]  ;;  %v5620_v50 = vld [vmem:[%s10545_s5 + $0x1b0] sm:$0xff] }
 0x399   :  { %6220 = vmatprep.subr.bf16.mxu1 %v6219_v17  ;;  %6284 = vmatprep.subr.bf16.mxu0 %v6283_v16  ;;  %v5603_v17 = vld [vmem:[%s10545_s5 + $0x128] sm:$0xff]  ;;  %v5605_v16 = vld [vmem:[%s10545_s5 + $0x138] sm:$0xff]  ;;  %v6321_v36 = vpack.c.bf16 %v5680_v62, %v5678_v7 }
 0x39c   :  { %6222 = vmatpush1.bf16.msra.mxu1 %v6221_v54  ;;  %6286 = vmatpush1.bf16.msra.mxu0 %v6285_v8  ;;  %v6243_v54 = vpack.c.bf16 %v5605_v16, %v5603_v17  ;;  %v6307_v8 = vpack.c.bf16 %v5669_v31, %v5667_v42  ;;  %v6261_v17 = vpack.c.bf16 %v5620_v50, %v5618_v47 }
 0x39d   :  { %6224 = vmatprep.subr.bf16.mxu1 %v6223_v13  ;;  %6288 = vmatprep.subr.bf16.mxu0 %v6287_v3  ;;  %v5607_v13 = vld [vmem:[%s10545_s5 + $0x148] sm:$0xff]  ;;  %v5609_v3 = vld [vmem:[%s10545_s5 + $0x158] sm:$0xff]  ;;  %v6325_v16 = vpack.c.bf16 %v5684_v30, %v5682_v59  ;;  %v6327_v31 = vpack.c.bf16 %v5689_v22, %v5687_v21 }
 0x3a0   :  { %6226 = vmatpush1.bf16.msra.mxu1 %v6225_v27  ;;  %6290 = vmatpush1.bf16.msra.mxu0 %v6289_v43  ;;  %v6247_v27 = vpack.c.bf16 %v5609_v3, %v5607_v13  ;;  %v6311_v43 = vpack.c.bf16 %v5673_v34, %v5671_v57  ;;  %v5691_v13 = vld [vmem:[%s10545_s5 + $0x3e8] sm:$0xff]  ;;  %v6267_v3 = vpack.c.bf16 %v5629_v6, %v5627_v38  ;;  %v5693_v57 = vld [vmem:[%s10545_s5 + $0x3f8] sm:$0xff]  ;;  %v5626_v34 = vld [vmem:[%s10545_s5 + $0x1e0] sm:$0xff] }
 0x3a1   :  { %6228 = vmatprep.subr.bf16.mxu1 %v6227_v29  ;;  %6292 = vmatprep.subr.bf16.mxu0 %v6291_v4  ;;  %v5611_v29 = vld [vmem:[%s10545_s5 + $0x168] sm:$0xff]  ;;  %v5613_v4 = vld [vmem:[%s10545_s5 + $0x178] sm:$0xff] }
 0x3a4   :  { %6230 = vmatpush1.bf16.msra.mxu1 %v6229_v10  ;;  %6294 = vmatpush1.bf16.msra.mxu0 %v6293_v41  ;;  %v6251_v10 = vpack.c.bf16 %v5613_v4, %v5611_v29  ;;  %v6315_v41 = vpack.c.bf16 %v5677_v56, %v5675_v48  ;;  %v5540_v29 = vsub.s32 0, %v5539_v12  ;;  %v5548_v4 = vsub.s32 2, %v5539_v12  ;;  %v5536_v48 = vld [vmem:[%s10544_s4] sm:$0xf] }
 0x3a5   :  { %6232 = vmatprep.subr.bf16.mxu1 %v6231_v55  ;;  %6296 = vmatprep.subr.bf16.mxu0 %v6295_v52  ;;  %v5615_v55 = vld [vmem:[%s10545_s5 + $0x188] sm:$0xff]  ;;  %v5617_v52 = vld [vmem:[%s10545_s5 + $0x198] sm:$0xff]  ;;  %v5544_v56 = vsub.s32 1, %v5539_v12 }
 0x3a6   :  { %v5549_v14 = vrot.slane %v5536_v48, %v5548_v4 }
 0x3a7   :  { %v5545_v32 = vrot.slane %v5536_v48, %v5544_v56 }
 0x3a8   :  { %6234 = vmatpush1.bf16.msra.mxu1 %v6233_v44  ;;  %6298 = vmatpush1.bf16.msra.mxu0 %v6297_v26  ;;  %v6255_v44 = vpack.c.bf16 %v5617_v52, %v5615_v55  ;;  %v6319_v26 = vpack.c.bf16 %v5681_v58, %v5679_v23 }
 0x3a9   :  { %6236 = vmatprep.subr.bf16.mxu1 %v6235_v5  ;;  %6300 = vmatprep.subr.bf16.mxu0 %v6299_v25  ;;  %v5619_v5 = vld [vmem:[%s10545_s5 + $0x1a8] sm:$0xff]  ;;  %v5621_v25 = vld [vmem:[%s10545_s5 + $0x1b8] sm:$0xff] }
 0x3ac   :  { %6238 = vmatpush1.bf16.msra.mxu1 %v6237_v60  ;;  %6302 = vmatpush1.bf16.msra.mxu0 %v6301_v33  ;;  %v6259_v60 = vpack.c.bf16 %v5621_v25, %v5619_v5  ;;  %v6323_v33 = vpack.c.bf16 %v5685_v11, %v5683_v49 }
 0x3ad   :  { %6240 = vmatprep.subr.bf16.mxu1 %v6239_v1  ;;  %6304 = vmatprep.subr.bf16.mxu0 %v6303_v63  ;;  %v5623_v1 = vld [vmem:[%s10545_s5 + $0x1c8] sm:$0xff]  ;;  %v5625_v63 = vld [vmem:[%s10545_s5 + $0x1d8] sm:$0xff] }
 0x3ae   :  { %v6263_v42 = vpack.c.bf16 %v5625_v63, %v5623_v1 }
 0x3b0   :  { %6242 = vmatpush1.bf16.msra.mxu1 %v6241_v40  ;;  %6306 = vmatpush1.bf16.msra.mxu0 %v6305_v35  ;;  %v5622_v40 = vld [vmem:[%s10545_s5 + $0x1c0] sm:$0xff]  ;;  %v5624_v35 = vld [vmem:[%s10545_s5 + $0x1d0] sm:$0xff] }
 0x3b1   :  { %6244 = vmatprep.subr.bf16.mxu1 %v6243_v54  ;;  %6308 = vmatprep.subr.bf16.mxu0 %v6307_v8  ;;  %v6265_v19 = vpack.c.bf16 %v5624_v35, %v5622_v40  ;;  %v5688_v54 = vld [vmem:[%s10545_s5 + $0x3d0] sm:$0xff] }
 0x3b2   :  { %v6329_v8 = vpack.c.bf16 %v5688_v54, %v5686_v61 }
 0x3b4   :  { %6246 = vmatpush1.bf16.msra.mxu1 %v6245_v45  ;;  %6310 = vmatpush1.bf16.msra.mxu0 %v6309_v18  ;;  %v5628_v45 = vld [vmem:[%s10545_s5 + $0x1f0] sm:$0xff]  ;;  %v6331_v18 = vpack.c.bf16 %v5693_v57, %v5691_v13 }
 0x3b5   :  { %6248 = vmatprep.subr.bf16.mxu1 %v6247_v27  ;;  %6312 = vmatprep.subr.bf16.mxu0 %v6311_v43  ;;  %v6269_v2 = vpack.c.bf16 %v5628_v45, %v5626_v34  ;;  %v5692_v27 = vld [vmem:[%s10545_s5 + $0x3f0] sm:$0xff] }
 0x3b6   :  { %v6333_v43 = vpack.c.bf16 %v5692_v27, %v5690_v24 }
 0x3b8   :  { %6250 = vmatpush1.bf16.msra.mxu1 %v6249_v39  ;;  %6314 = vmatpush1.bf16.msra.mxu0 %v6313_v0  ;;  %v5552_v39 = vsub.s32 3, %v5539_v12  ;;  %v5541_v0 = vrot.slane %v5536_v48, %v5540_v29 }
 0x3b9   :  { %6252 = vmatprep.subr.bf16.mxu1 %v6251_v10  ;;  %6316 = vmatprep.subr.bf16.mxu0 %v6315_v41 }
 0x3ba   :  { %v5553_v10 = vrot.slane %v5536_v48, %v5552_v39 }
 0x3bc   :  { %6254 = vmatpush1.bf16.msra.mxu1 %v6253_v53  ;;  %6318 = vmatpush1.bf16.msra.mxu0 %v6317_v46 }
 0x3bd   :  { %6256 = vmatprep.subr.bf16.mxu1 %v6255_v44  ;;  %6320 = vmatprep.subr.bf16.mxu0 %v6319_v26  ;;  %v5694_v26 = vld [vmem:[%s10546_s6] sm:$0x3] }
 0x3be   :  { %v5699_v7 = vrot.slane %v5694_v26, %v5540_v29  ;;  %v5703_v62 = vrot.slane %v5694_v26, %v5544_v56 }
 0x3c0   :  { %6258 = vmatpush1.bf16.msra.mxu1 %v6257_v51  ;;  %6322 = vmatpush1.bf16.msra.mxu0 %v6321_v36 }
 0x3c1   :  { %6260 = vmatprep.subr.bf16.mxu1 %v6259_v60  ;;  %6324 = vmatprep.subr.bf16.mxu0 %v6323_v33 }
 0x3c4   :  { %6262 = vmatpush1.bf16.msra.mxu1 %v6261_v17  ;;  %6326 = vmatpush1.bf16.msra.mxu0 %v6325_v16 }
 0x3c5   :  { %6264 = vmatprep.subr.bf16.mxu1 %v6263_v42  ;;  %6328 = vmatprep.subr.bf16.mxu0 %v6327_v31 }
 0x3c8   :  { %6266 = vmatpush1.bf16.msra.mxu1 %v6265_v19  ;;  %6330 = vmatpush1.bf16.msra.mxu0 %v6329_v8 }
 0x3c9   :  { %6268 = vmatprep.subr.bf16.mxu1 %v6267_v3  ;;  %6332 = vmatprep.subr.bf16.mxu0 %v6331_v18 }
 0x3cc   :  { %6270 = vmatpush1.bf16.msra.mxu1 %v6269_v2  ;;  %6334 = vmatpush1.bf16.msra.mxu0 %v6333_v43 }
 0x462   :  { %v5456_v41 = vpop.f32.mrb[0].mxu0  ;;  %v5527_v20 = vpop.f32.mrb[0].mxu1 }
 0x463   :  { %v5558_v15 = vadd.f32 %v5541_v0, %v5456_v41  ;;  %v5560_v55 = vadd.f32 %v5549_v14, %v5527_v20  ;;  %v5458_v52 = vpop.f32.mrb[1].mxu0  ;;  %v5529_v23 = vpop.f32.mrb[1].mxu1 }
 0x464   :  { %v5559_v58 = vadd.f32 %v5545_v32, %v5458_v52  ;;  %v5561_v53 = vadd.f32 %v5553_v10, %v5529_v23 }
 0x465   :  { %v5562_v37 = vmax.f32 %v5558_v15, 0.0  ;;  %v5564_v44 = vmax.f32 %v5560_v55, 0.0 }
 0x466   :  { %v5563_v46 = vmax.f32 %v5559_v58, 0.0  ;;  %v5565_v28 = vmax.f32 %v5561_v53, 0.0 }
 0x468   :  { %5770 = vmatprep.mubr.f32.mxu1 %v5563_v46  ;;  %5841 = vmatprep.mubr.f32.mxu0 %v5565_v28 }
 0x469   :  { %5771 = vmatmul.mubr.f32.vlgmr.msra.gmra.mrb[2].mxu1 %v5562_v37  ;;  %5842 = vmatmul.mubr.f32.vlgmr.msra.gmra.mrb[2].mxu0 %v5564_v44 }
 0x53c   :  { %v5772_v5 = vpop.f32.mrb[2].mxu1  ;;  %v5843_v25 = vpop.f32.mrb[2].mxu0 }
 0x53d   :  { %v5773_v49 = vadd.f32 %v5772_v5, %v5699_v7  ;;  %v5774_v11 = vpop.f32.mrb[3].mxu1  ;;  %v5845_v51 = vpop.f32.mrb[3].mxu0 }
 0x53e   :  { %v5775_v36 = vadd.f32 %v5774_v11, %v5703_v62 }
 0x53f   :  { %v5844_v47 = vadd.f32 %v5843_v25, %v5773_v49 }
 0x540   :  { %v5846_v50 = vadd.f32 %v5845_v51, %v5775_v36 }
 0x542   :  { %v5850_v60 = vcombine.low %v5844_v47, %v5846_v50 }
 0x544   :  { %6078 = vst.sshfl [vmem:[#allocation5] sm:$0x33 pattern:$0x76325410] %v5850_v60 }
 0x545   :  { %6476 = shalt.err (!%p6473_p9)
}
 0x546   :  { %s6477_s25 = scalar_lea.hbm %s10547_s7, 64 }
 0x547   :  { %p6478_p10 = scmp.ne.s32.totalorder %s10547_s7, %s6477_s25  ;;  %p6481_p11 = scmp.lt.u32.totalorder %s6477_s25, %s10547_s7 }
 0x549   :  { %p6483_p12 = pnand %p6481_p11, %p6478_p10 }
 0x54b   :  { %6486 = shalt.err (!%p6483_p12)
}
 0x54c   :  { %5869 = dma.vmem_to_hbm [thread:$0]  %s5867_s2, 64, %s10547_s7, [#allocation3]  }
 0x54d   :  { %6489 = dma.done.wait [#allocation3], 64  }
 0x54e   :  { %6490 = vsyncadd [#allocation3], 4294967232 }
 0x54f   :  { %5873 = vsyncpa [#allocation3], 1 }
 0x550   :  { %5874 = vsyncpa [#allocation4], 1 }

</bundles_post_ra>
